<compile_context>
chip_gen: v6e
topology: v6e:2x2x1
jax: 0.10.0
libtpu: 0.0.40
codegen_flags: <defaults>
</compile_context>

<pallas_src>
import jax
import jax.numpy as jnp
import numpy as np
from jax import lax
from jax.experimental import pallas as pl
from jax.experimental.pallas import tpu as pltpu

K = 5                       # conv kernel size

# stage 1 (conv1: 3 -> 6 channels, 32x32 -> 28x28 -> pool -> 14x14)
H1_IN, W1_IN, C1_IN = 32, 32, 3
R1_CONV = H1_IN - K + 1     # 28 conv rows
NPOOL1 = R1_CONV // 2       # 14 pooled rows / cols
PW1_PAD = 16                # pooled cols padded 14 -> 16  (lane-dense)
C1_PAD = 8                  # out channels padded 6 -> 8
LANES1 = PW1_PAD * C1_PAD   # 128

# stage 2 (conv2: 6 -> 16 channels, 14x14 -> 10x10 -> pool -> 5x5)
R2_CONV = NPOOL1 - K + 1    # 10 conv rows
NPOOL2 = R2_CONV // 2       # 5
PW2_PAD = 8                 # pooled cols padded 5 -> 8
C2_PAD = 16
LANES2 = PW2_PAD * C2_PAD   # 128

FC_PAD = 128                # every FC width zero-padded to 128 lanes

# Flip to jnp.bfloat16 on v6e/v7x for less DMA / better vreg packing (f32 accumulation kept).
COMPUTE_DTYPE = jnp.float32


# ---------------------------------------------------------------------------
# The fused kernel: conv1+relu+pool -> conv2+relu+pool -> fc1/relu -> fc2/relu -> fc3
# ---------------------------------------------------------------------------
def _make_convnet_kernel(tb):
    """tb = batch-tile size (multiple of 8).  One grid step processes tb images."""
    r1, r2 = R1_CONV, R2_CONV
    p1, p2 = NPOOL1, NPOOL2

    def kernel(x_ref, w1_ref, b1_ref, w2_ref, b2_ref,
               f1w_ref, f1b_ref, f2w_ref, f2b_ref, f3w_ref, f3b_ref, o_ref):
        cdt = w1_ref.dtype

        # ---- stage 1: conv1 (5x5) + bias + ReLU + 2x2 max-pool -------------------
        # x rows are (input_row, image) with image minor -> per-tap LHS is a
        # sublane-aligned contiguous slice; one (28*tb, 96) x (96, 256) matmul per kh.
        xx = x_ref[...].reshape(H1_IN * tb, W1_IN * C1_IN)          # (32*tb, 96)
        acc1 = jnp.zeros((r1 * tb, 2 * LANES1), jnp.float32)        # (28*tb, 256)
        for kh in range(K):
            lhs = xx[kh * tb:(kh + r1) * tb, :]
            acc1 = acc1 + jnp.dot(lhs, w1_ref[kh],
                                  preferred_element_type=jnp.float32)
        # horizontal pool (dx): the two 128-lane halves of the merged output
        hmax = jnp.maximum(acc1[:, :LANES1], acc1[:, LANES1:])      # (28*tb, 128)
        # vertical pool (dy): even/odd conv rows are the two tb-row halves per group
        hmax = hmax.reshape(p1, 2 * tb, LANES1)
        pooled1 = jnp.maximum(hmax[:, :tb, :], hmax[:, tb:, :])     # (14, tb, 128)
        h1 = jnp.maximum(pooled1 + b1_ref[...], 0.0).astype(cdt)    # (14, tb, 128)

        # ---- stage 2: conv2 (5x5) + bias + ReLU + 2x2 max-pool -------------------
        hh1 = h1.reshape(p1 * tb, LANES1)                           # (14*tb, 128)
        acc2 = jnp.zeros((r2 * tb, 2 * LANES2), jnp.float32)        # (10*tb, 256)
        for kh in range(K):
            lhs = hh1[kh * tb:(kh + r2) * tb, :]
            acc2 = acc2 + jnp.dot(lhs, w2_ref[kh],
                                  preferred_element_type=jnp.float32)
        hmax2 = jnp.maximum(acc2[:, :LANES2], acc2[:, LANES2:])     # (10*tb, 128)
        hmax2 = hmax2.reshape(p2, 2 * tb, LANES2)
        pooled2 = jnp.maximum(hmax2[:, :tb, :], hmax2[:, tb:, :])   # (5, tb, 128)
        h2 = jnp.maximum(pooled2 + b2_ref[...], 0.0).astype(cdt)    # (5, tb, 128)

        # ---- fc1 + relu -> fc2 + relu -> fc3 (torch NCHW flatten folded into fc1) --
        # fc1 is applied as 5 row-chunks so NO transpose of h2 is ever needed.
        y = jnp.zeros((tb, FC_PAD), jnp.float32)
        for rr in range(p2):
            y = y + jnp.dot(h2[rr], f1w_ref[rr],
                            preferred_element_type=jnp.float32)
        y = jnp.maximum(y + f1b_ref[...], 0.0).astype(cdt)
        y = jnp.dot(y, f2w_ref[...], preferred_element_type=jnp.float32) + f2b_ref[...]
        y = jnp.maximum(y, 0.0).astype(cdt)
        y = jnp.dot(y, f3w_ref[...], preferred_element_type=jnp.float32) + f3b_ref[...]
        o_ref[...] = y.astype(o_ref.dtype)                          # (tb, 128) lane-dense

    return kernel


# ---------------------------------------------------------------------------
# One-time weight preprocessing (host side, not in the hot path)
# ---------------------------------------------------------------------------
def _lower_conv_weight(w_oihw, *, in_w_real, in_w_pad, cin, cin_pad, cout, cout_pad,
                       n_half_real, n_half_pad):
    """Lower a (Cout, Cin, 5, 5) conv weight into K dx-merged block-Toeplitz matrices.

    Result (K, in_w_pad*cin_pad, 2*n_half_pad*cout_pad).  Matrix kh maps one input row
    (laid out as (col, cin)) onto (dx, pooled_col, cout) output lanes, so conv + both
    horizontal pool taps become a single matmul per vertical tap kh.  Padded output
    columns (pooled_col >= n_half_real) are exact zeros."""
    w = np.asarray(w_oihw, np.float32)
    lanes = n_half_pad * cout_pad
    low = np.zeros((K, in_w_pad * cin_pad, 2 * lanes), np.float32)
    for kh in range(K):
        for dx in range(2):
            for pw in range(n_half_real):
                for kw in range(K):
                    wi = 2 * pw + dx + kw           # input column read by this tap
                    if wi >= in_w_real:
                        continue
                    r0 = wi * cin_pad
                    c0 = dx * lanes + pw * cout_pad
                    low[kh, r0:r0 + cin, c0:c0 + cout] = w[:, :, kh, kw].T
    return low


def _tile_bias(b, *, cout_pad, n_half_real, n_half_pad):
    b = np.asarray(b, np.float32)
    t = np.zeros((n_half_pad, cout_pad), np.float32)
    t[:n_half_real, :b.shape[0]] = b[None, :]       # padded lanes stay exactly zero
    return t.reshape(1, n_half_pad * cout_pad)


def _chunk_fc1(fc1_w):
    """Fold torch's NCHW flatten order (c*25 + r*5 + q) into 5 per-row (128,128) chunks
    matching the kernel's (pooled_col_pad(8) x cout(16)) lane layout."""
    fc1 = np.asarray(fc1_w, np.float32)                            # (400, 120), (in, out)
    t = fc1.reshape(16, 5, 5, 120).transpose(1, 2, 0, 3)           # (r, q, c, 120)
    out = np.zeros((NPOOL2, LANES2, FC_PAD), np.float32)           # (5, 128, 128)
    for q in range(5):
        out[:, q * C2_PAD:q * C2_PAD + 16, :120] = t[:, q, :, :]
    return out


def _pad2d(w, rows, cols):
    out = np.zeros((rows, cols), np.float32)
    w = np.asarray(w, np.float32)
    out[:w.shape[0], :w.shape[1]] = w
    return out


def prepare_params(params, compute_dtype=COMPUTE_DTYPE):
    """Convert torch-layout parameters into the kernel layouts (one-time preprocessing)."""
    w1l = _lower_conv_weight(params["conv1_w"], in_w_real=W1_IN, in_w_pad=W1_IN,
                             cin=3, cin_pad=3, cout=6, cout_pad=C1_PAD,
                             n_half_real=NPOOL1, n_half_pad=PW1_PAD)       # (5, 96, 256)
    w2l = _lower_conv_weight(params["conv2_w"], in_w_real=NPOOL1, in_w_pad=PW1_PAD,
                             cin=6, cin_pad=C1_PAD, cout=16, cout_pad=C2_PAD,
                             n_half_real=NPOOL2, n_half_pad=PW2_PAD)       # (5, 128, 256)
    return {
        "w1l": jnp.asarray(w1l, compute_dtype),
        "b1t": jnp.asarray(_tile_bias(params["conv1_b"], cout_pad=C1_PAD,
                                      n_half_real=NPOOL1, n_half_pad=PW1_PAD)),
        "w2l": jnp.asarray(w2l, compute_dtype),
        "b2t": jnp.asarray(_tile_bias(params["conv2_b"], cout_pad=C2_PAD,
                                      n_half_real=NPOOL2, n_half_pad=PW2_PAD)),
        "fc1_w": jnp.asarray(_chunk_fc1(params["fc1_w"]), compute_dtype),  # (5, 128, 128)
        "fc1_b": jnp.asarray(_pad2d(np.asarray(params["fc1_b"])[None, :], 1, FC_PAD)),
        "fc2_w": jnp.asarray(_pad2d(params["fc2_w"], FC_PAD, FC_PAD), compute_dtype),
        "fc2_b": jnp.asarray(_pad2d(np.asarray(params["fc2_b"])[None, :], 1, FC_PAD)),
        "fc3_w": jnp.asarray(_pad2d(params["fc3_w"], FC_PAD, FC_PAD), compute_dtype),
        "fc3_b": jnp.asarray(_pad2d(np.asarray(params["fc3_b"])[None, :], 1, FC_PAD)),
    }


def init_params(key):
    # PyTorch-default-style init: U(-1/sqrt(fan_in), 1/sqrt(fan_in)).
    def uniform(k, shape, fan_in):
        bound = 1.0 / jnp.sqrt(float(fan_in))
        return jax.random.uniform(k, shape, jnp.float32, -bound, bound)

    ks = jax.random.split(key, 10)
    return {
        "conv1_w": uniform(ks[0], (6, 3, 5, 5), 3 * 5 * 5),
        "conv1_b": uniform(ks[1], (6,), 3 * 5 * 5),
        "conv2_w": uniform(ks[2], (16, 6, 5, 5), 6 * 5 * 5),
        "conv2_b": uniform(ks[3], (16,), 6 * 5 * 5),
        "fc1_w": uniform(ks[4], (400, 120), 400),   # stored as (in, out) == torch W.T
        "fc1_b": uniform(ks[5], (120,), 400),
        "fc2_w": uniform(ks[6], (120, 84), 120),
        "fc2_b": uniform(ks[7], (84,), 120),
        "fc3_w": uniform(ks[8], (84, 10), 84),
        "fc3_b": uniform(ks[9], (10,), 84),
    }


def _round_up(x, m):
    return (x + m - 1) // m * m


# ---------------------------------------------------------------------------
# Forward pass: a single pallas_call gridded over batch tiles
# ---------------------------------------------------------------------------
@jax.jit
def convnet_forward(prepared, x_nchw):
    bsz = x_nchw.shape[0]
    assert x_nchw.shape[1:] == (3, 32, 32)
    dt = prepared["w1l"].dtype

    # Batch tile: multiple of 8 (free sublane-aligned reshapes/slices), capped at 32
    # (M = 28*TB / 10*TB >= 256 fills MXU rows on every generation; keeps grid >= 2 for
    # v7x's two TensorCores once the batch is non-trivial).
    tb = min(32, _round_up(bsz, 8))
    b_pad = _round_up(bsz, tb)
    if b_pad != bsz:
        x_nchw = jnp.pad(x_nchw, ((0, b_pad - bsz), (0, 0), (0, 0), (0, 0)))

    # Single cheap pre-shuffle of the raw input: NCHW -> (H, B, W*C) with C minor.
    x = jnp.transpose(x_nchw, (2, 0, 3, 1)).reshape(H1_IN, b_pad, W1_IN * C1_IN)
    x = x.astype(dt)

    kernel = _make_convnet_kernel(tb)
    const3 = lambda b: (0, 0, 0)
    const2 = lambda b: (0, 0)
    logits = pl.pallas_call(
        kernel,
        out_shape=jax.ShapeDtypeStruct((b_pad, FC_PAD), jnp.float32),
        grid=(b_pad // tb,),
        in_specs=[
            pl.BlockSpec((H1_IN, tb, W1_IN * C1_IN), lambda b: (0, b, 0)),  # input tile
            pl.BlockSpec(prepared["w1l"].shape, const3),    # weights: resident across steps
            pl.BlockSpec(prepared["b1t"].shape, const2),
            pl.BlockSpec(prepared["w2l"].shape, const3),
            pl.BlockSpec(prepared["b2t"].shape, const2),
            pl.BlockSpec(prepared["fc1_w"].shape, const3),
            pl.BlockSpec(prepared["fc1_b"].shape, const2),
            pl.BlockSpec(prepared["fc2_w"].shape, const2),
            pl.BlockSpec(prepared["fc2_b"].shape, const2),
            pl.BlockSpec(prepared["fc3_w"].shape, const2),
            pl.BlockSpec(prepared["fc3_b"].shape, const2),
        ],
        out_specs=pl.BlockSpec((tb, FC_PAD), lambda b: (b, 0)),
        compiler_params=pltpu.CompilerParams(dimension_semantics=("parallel",)),
    )(x, prepared["w1l"], prepared["b1t"], prepared["w2l"], prepared["b2t"],
      prepared["fc1_w"], prepared["fc1_b"], prepared["fc2_w"], prepared["fc2_b"],
      prepared["fc3_w"], prepared["fc3_b"])
    return logits[:bsz, :10]


# ---------------------------------------------------------------------------
# Pure-JAX reference (for self-check only)
# ---------------------------------------------------------------------------
def reference_forward(params, x_nchw):
    hp = lax.Precision.HIGHEST
    y = lax.conv_general_dilated(x_nchw, params["conv1_w"], (1, 1), "VALID",
                                 dimension_numbers=("NCHW", "OIHW", "NCHW"), precision=hp)
    y = jax.nn.relu(y + params["conv1_b"][None, :, None, None])
    y = lax.reduce_window(y, -jnp.inf, lax.max, (1, 1, 2, 2), (1, 1, 2, 2), "VALID")
    y = lax.conv_general_dilated(y, params["conv2_w"], (1, 1), "VALID",
                                 dimension_numbers=("NCHW", "OIHW", "NCHW"), precision=hp)
    y = jax.nn.relu(y + params["conv2_b"][None, :, None, None])
    y = lax.reduce_window(y, -jnp.inf, lax.max, (1, 1, 2, 2), (1, 1, 2, 2), "VALID")
    y = y.reshape(y.shape[0], -1)
    y = jax.nn.relu(jnp.dot(y, params["fc1_w"], precision=hp) + params["fc1_b"])
    y = jax.nn.relu(jnp.dot(y, params["fc2_w"], precision=hp) + params["fc2_b"])
    return jnp.dot(y, params["fc3_w"], precision=hp) + params["fc3_b"]


if __name__ == "__main__":
    key = jax.random.PRNGKey(0)
    pkey, xkey = jax.random.split(key)
    params = init_params(pkey)
    prepared = prepare_params(params)
    x = jax.random.normal(xkey, (2, 3, 32, 32), jnp.float32)

    out = jax.block_until_ready(convnet_forward(prepared, x))
    assert out.shape == (2, 10) and out.dtype == jnp.float32

    ref = jax.block_until_ready(reference_forward(params, x))
    err = float(jnp.max(jnp.abs(out - ref)))
    # f32 compute path typically matches to ~1e-4; keep a conservative bound.
    assert err < 5e-2, f"mismatch vs reference: {err}"
    print("KERNEL_OK")
</pallas_src>

<mosaic_0001>
module attributes {stable_mosaic.version = 11 : i64} {
  func.func @kernel(%arg0: i32, %arg1: memref<32x8x96xf32, #tpu.memory_space<vmem>>, %arg2: memref<5x96x256xf32, #tpu.memory_space<vmem>>, %arg3: memref<1x128xf32, #tpu.memory_space<vmem>>, %arg4: memref<5x128x256xf32, #tpu.memory_space<vmem>>, %arg5: memref<1x128xf32, #tpu.memory_space<vmem>>, %arg6: memref<5x128x128xf32, #tpu.memory_space<vmem>>, %arg7: memref<1x128xf32, #tpu.memory_space<vmem>>, %arg8: memref<128x128xf32, #tpu.memory_space<vmem>>, %arg9: memref<1x128xf32, #tpu.memory_space<vmem>>, %arg10: memref<128x128xf32, #tpu.memory_space<vmem>>, %arg11: memref<1x128xf32, #tpu.memory_space<vmem>>, %arg12: memref<8x128xf32, #tpu.memory_space<vmem>>) attributes {dimension_semantics = [#tpu.dimension_semantics<parallel>], iteration_bounds = array<i64: 1>, scalar_prefetch = 0 : i64, scratch_operands = 0 : i64, tpu.core_type = #tpu.core_type<tc>, window_params = [{transform_indices = @transform_0, window_bounds = array<i64: 32, 8, 96>}, {pipeline_mode = #tpu.pipeline_mode<synchronous>, transform_indices = @transform_1, window_bounds = array<i64: 5, 96, 256>}, {pipeline_mode = #tpu.pipeline_mode<synchronous>, transform_indices = @transform_2, window_bounds = array<i64: 1, 128>}, {pipeline_mode = #tpu.pipeline_mode<synchronous>, transform_indices = @transform_3, window_bounds = array<i64: 5, 128, 256>}, {pipeline_mode = #tpu.pipeline_mode<synchronous>, transform_indices = @transform_4, window_bounds = array<i64: 1, 128>}, {pipeline_mode = #tpu.pipeline_mode<synchronous>, transform_indices = @transform_5, window_bounds = array<i64: 5, 128, 128>}, {pipeline_mode = #tpu.pipeline_mode<synchronous>, transform_indices = @transform_6, window_bounds = array<i64: 1, 128>}, {pipeline_mode = #tpu.pipeline_mode<synchronous>, transform_indices = @transform_7, window_bounds = array<i64: 128, 128>}, {pipeline_mode = #tpu.pipeline_mode<synchronous>, transform_indices = @transform_8, window_bounds = array<i64: 1, 128>}, {pipeline_mode = #tpu.pipeline_mode<synchronous>, transform_indices = @transform_9, window_bounds = array<i64: 128, 128>}, {pipeline_mode = #tpu.pipeline_mode<synchronous>, transform_indices = @transform_10, window_bounds = array<i64: 1, 128>}, {transform_indices = @transform_11, window_bounds = array<i64: 8, 128>}]} {
    %c0 = arith.constant 0 : index
    %c0_0 = arith.constant 0 : index
    %c0_1 = arith.constant 0 : index
    %0 = vector.load %arg1[%c0, %c0_0, %c0_1] : memref<32x8x96xf32, #tpu.memory_space<vmem>>, vector<32x8x96xf32>
    %1 = vector.shape_cast %0 : vector<32x8x96xf32> to vector<256x96xf32>
    %cst = arith.constant 0.000000e+00 : f32
    %2 = vector.broadcast %cst : f32 to vector<224x256xf32>
    %3 = vector.extract_strided_slice %1 {offsets = [0, 0], sizes = [224, 96], strides = [1, 1]} : vector<256x96xf32> to vector<224x96xf32>
    %c0_2 = arith.constant 0 : index
    %c0_3 = arith.constant 0 : index
    %c0_4 = arith.constant 0 : index
    %4 = vector.load %arg2[%c0_2, %c0_3, %c0_4] : memref<5x96x256xf32, #tpu.memory_space<vmem>>, vector<1x96x256xf32>
    %5 = vector.shape_cast %4 : vector<1x96x256xf32> to vector<96x256xf32>
    %cst_5 = arith.constant dense<0.000000e+00> : vector<224x256xf32>
    %6 = tpu.matmul %3, %5, %cst_5 {dimension_numbers = #tpu.dot_dimension_numbers<[1], [0], [0], [1], [0, 0, 1, 1], [], []>} : vector<224x96xf32>, vector<96x256xf32>, vector<224x256xf32> -> vector<224x256xf32>
    %7 = arith.addf %2, %6 : vector<224x256xf32>
    %8 = vector.extract_strided_slice %1 {offsets = [8, 0], sizes = [224, 96], strides = [1, 1]} : vector<256x96xf32> to vector<224x96xf32>
    %c1 = arith.constant 1 : index
    %c0_6 = arith.constant 0 : index
    %c0_7 = arith.constant 0 : index
    %9 = vector.load %arg2[%c1, %c0_6, %c0_7] : memref<5x96x256xf32, #tpu.memory_space<vmem>>, vector<1x96x256xf32>
    %10 = vector.shape_cast %9 : vector<1x96x256xf32> to vector<96x256xf32>
    %cst_8 = arith.constant dense<0.000000e+00> : vector<224x256xf32>
    %11 = tpu.matmul %8, %10, %cst_8 {dimension_numbers = #tpu.dot_dimension_numbers<[1], [0], [0], [1], [0, 0, 1, 1], [], []>} : vector<224x96xf32>, vector<96x256xf32>, vector<224x256xf32> -> vector<224x256xf32>
    %12 = arith.addf %7, %11 : vector<224x256xf32>
    %13 = vector.extract_strided_slice %1 {offsets = [16, 0], sizes = [224, 96], strides = [1, 1]} : vector<256x96xf32> to vector<224x96xf32>
    %c2 = arith.constant 2 : index
    %c0_9 = arith.constant 0 : index
    %c0_10 = arith.constant 0 : index
    %14 = vector.load %arg2[%c2, %c0_9, %c0_10] : memref<5x96x256xf32, #tpu.memory_space<vmem>>, vector<1x96x256xf32>
    %15 = vector.shape_cast %14 : vector<1x96x256xf32> to vector<96x256xf32>
    %cst_11 = arith.constant dense<0.000000e+00> : vector<224x256xf32>
    %16 = tpu.matmul %13, %15, %cst_11 {dimension_numbers = #tpu.dot_dimension_numbers<[1], [0], [0], [1], [0, 0, 1, 1], [], []>} : vector<224x96xf32>, vector<96x256xf32>, vector<224x256xf32> -> vector<224x256xf32>
    %17 = arith.addf %12, %16 : vector<224x256xf32>
    %18 = vector.extract_strided_slice %1 {offsets = [24, 0], sizes = [224, 96], strides = [1, 1]} : vector<256x96xf32> to vector<224x96xf32>
    %c3 = arith.constant 3 : index
    %c0_12 = arith.constant 0 : index
    %c0_13 = arith.constant 0 : index
    %19 = vector.load %arg2[%c3, %c0_12, %c0_13] : memref<5x96x256xf32, #tpu.memory_space<vmem>>, vector<1x96x256xf32>
    %20 = vector.shape_cast %19 : vector<1x96x256xf32> to vector<96x256xf32>
    %cst_14 = arith.constant dense<0.000000e+00> : vector<224x256xf32>
    %21 = tpu.matmul %18, %20, %cst_14 {dimension_numbers = #tpu.dot_dimension_numbers<[1], [0], [0], [1], [0, 0, 1, 1], [], []>} : vector<224x96xf32>, vector<96x256xf32>, vector<224x256xf32> -> vector<224x256xf32>
    %22 = arith.addf %17, %21 : vector<224x256xf32>
    %23 = vector.extract_strided_slice %1 {offsets = [32, 0], sizes = [224, 96], strides = [1, 1]} : vector<256x96xf32> to vector<224x96xf32>
    %c4 = arith.constant 4 : index
    %c0_15 = arith.constant 0 : index
    %c0_16 = arith.constant 0 : index
    %24 = vector.load %arg2[%c4, %c0_15, %c0_16] : memref<5x96x256xf32, #tpu.memory_space<vmem>>, vector<1x96x256xf32>
    %25 = vector.shape_cast %24 : vector<1x96x256xf32> to vector<96x256xf32>
    %cst_17 = arith.constant dense<0.000000e+00> : vector<224x256xf32>
    %26 = tpu.matmul %23, %25, %cst_17 {dimension_numbers = #tpu.dot_dimension_numbers<[1], [0], [0], [1], [0, 0, 1, 1], [], []>} : vector<224x96xf32>, vector<96x256xf32>, vector<224x256xf32> -> vector<224x256xf32>
    %27 = arith.addf %22, %26 : vector<224x256xf32>
    %28 = vector.extract_strided_slice %27 {offsets = [0, 0], sizes = [224, 128], strides = [1, 1]} : vector<224x256xf32> to vector<224x128xf32>
    %29 = vector.extract_strided_slice %27 {offsets = [0, 128], sizes = [224, 128], strides = [1, 1]} : vector<224x256xf32> to vector<224x128xf32>
    %30 = arith.maximumf %28, %29 : vector<224x128xf32>
    %31 = vector.shape_cast %30 : vector<224x128xf32> to vector<14x16x128xf32>
    %32 = vector.extract_strided_slice %31 {offsets = [0, 0, 0], sizes = [14, 8, 128], strides = [1, 1, 1]} : vector<14x16x128xf32> to vector<14x8x128xf32>
    %33 = vector.extract_strided_slice %31 {offsets = [0, 8, 0], sizes = [14, 8, 128], strides = [1, 1, 1]} : vector<14x16x128xf32> to vector<14x8x128xf32>
    %34 = arith.maximumf %32, %33 : vector<14x8x128xf32>
    %c0_18 = arith.constant 0 : index
    %c0_19 = arith.constant 0 : index
    %35 = vector.load %arg3[%c0_18, %c0_19] : memref<1x128xf32, #tpu.memory_space<vmem>>, vector<1x128xf32>
    %36 = vector.shape_cast %35 : vector<1x128xf32> to vector<1x1x128xf32>
    %37 = vector.broadcast %36 : vector<1x1x128xf32> to vector<14x8x128xf32>
    %38 = arith.addf %34, %37 : vector<14x8x128xf32>
    %cst_20 = arith.constant 0.000000e+00 : f32
    %39 = vector.broadcast %cst_20 : f32 to vector<14x8x128xf32>
    %40 = arith.maximumf %38, %39 : vector<14x8x128xf32>
    %41 = vector.shape_cast %40 : vector<14x8x128xf32> to vector<112x128xf32>
    %cst_21 = arith.constant 0.000000e+00 : f32
    %42 = vector.broadcast %cst_21 : f32 to vector<80x256xf32>
    %43 = vector.extract_strided_slice %41 {offsets = [0, 0], sizes = [80, 128], strides = [1, 1]} : vector<112x128xf32> to vector<80x128xf32>
    %c0_22 = arith.constant 0 : index
    %c0_23 = arith.constant 0 : index
    %c0_24 = arith.constant 0 : index
    %44 = vector.load %arg4[%c0_22, %c0_23, %c0_24] : memref<5x128x256xf32, #tpu.memory_space<vmem>>, vector<1x128x256xf32>
    %45 = vector.shape_cast %44 : vector<1x128x256xf32> to vector<128x256xf32>
    %cst_25 = arith.constant dense<0.000000e+00> : vector<80x256xf32>
    %46 = tpu.matmul %43, %45, %cst_25 {dimension_numbers = #tpu.dot_dimension_numbers<[1], [0], [0], [1], [0, 0, 1, 1], [], []>} : vector<80x128xf32>, vector<128x256xf32>, vector<80x256xf32> -> vector<80x256xf32>
    %47 = arith.addf %42, %46 : vector<80x256xf32>
    %48 = vector.extract_strided_slice %41 {offsets = [8, 0], sizes = [80, 128], strides = [1, 1]} : vector<112x128xf32> to vector<80x128xf32>
    %c1_26 = arith.constant 1 : index
    %c0_27 = arith.constant 0 : index
    %c0_28 = arith.constant 0 : index
    %49 = vector.load %arg4[%c1_26, %c0_27, %c0_28] : memref<5x128x256xf32, #tpu.memory_space<vmem>>, vector<1x128x256xf32>
    %50 = vector.shape_cast %49 : vector<1x128x256xf32> to vector<128x256xf32>
    %cst_29 = arith.constant dense<0.000000e+00> : vector<80x256xf32>
    %51 = tpu.matmul %48, %50, %cst_29 {dimension_numbers = #tpu.dot_dimension_numbers<[1], [0], [0], [1], [0, 0, 1, 1], [], []>} : vector<80x128xf32>, vector<128x256xf32>, vector<80x256xf32> -> vector<80x256xf32>
    %52 = arith.addf %47, %51 : vector<80x256xf32>
    %53 = vector.extract_strided_slice %41 {offsets = [16, 0], sizes = [80, 128], strides = [1, 1]} : vector<112x128xf32> to vector<80x128xf32>
    %c2_30 = arith.constant 2 : index
    %c0_31 = arith.constant 0 : index
    %c0_32 = arith.constant 0 : index
    %54 = vector.load %arg4[%c2_30, %c0_31, %c0_32] : memref<5x128x256xf32, #tpu.memory_space<vmem>>, vector<1x128x256xf32>
    %55 = vector.shape_cast %54 : vector<1x128x256xf32> to vector<128x256xf32>
    %cst_33 = arith.constant dense<0.000000e+00> : vector<80x256xf32>
    %56 = tpu.matmul %53, %55, %cst_33 {dimension_numbers = #tpu.dot_dimension_numbers<[1], [0], [0], [1], [0, 0, 1, 1], [], []>} : vector<80x128xf32>, vector<128x256xf32>, vector<80x256xf32> -> vector<80x256xf32>
    %57 = arith.addf %52, %56 : vector<80x256xf32>
    %58 = vector.extract_strided_slice %41 {offsets = [24, 0], sizes = [80, 128], strides = [1, 1]} : vector<112x128xf32> to vector<80x128xf32>
    %c3_34 = arith.constant 3 : index
    %c0_35 = arith.constant 0 : index
    %c0_36 = arith.constant 0 : index
    %59 = vector.load %arg4[%c3_34, %c0_35, %c0_36] : memref<5x128x256xf32, #tpu.memory_space<vmem>>, vector<1x128x256xf32>
    %60 = vector.shape_cast %59 : vector<1x128x256xf32> to vector<128x256xf32>
    %cst_37 = arith.constant dense<0.000000e+00> : vector<80x256xf32>
    %61 = tpu.matmul %58, %60, %cst_37 {dimension_numbers = #tpu.dot_dimension_numbers<[1], [0], [0], [1], [0, 0, 1, 1], [], []>} : vector<80x128xf32>, vector<128x256xf32>, vector<80x256xf32> -> vector<80x256xf32>
    %62 = arith.addf %57, %61 : vector<80x256xf32>
    %63 = vector.extract_strided_slice %41 {offsets = [32, 0], sizes = [80, 128], strides = [1, 1]} : vector<112x128xf32> to vector<80x128xf32>
    %c4_38 = arith.constant 4 : index
    %c0_39 = arith.constant 0 : index
    %c0_40 = arith.constant 0 : index
    %64 = vector.load %arg4[%c4_38, %c0_39, %c0_40] : memref<5x128x256xf32, #tpu.memory_space<vmem>>, vector<1x128x256xf32>
    %65 = vector.shape_cast %64 : vector<1x128x256xf32> to vector<128x256xf32>
    %cst_41 = arith.constant dense<0.000000e+00> : vector<80x256xf32>
    %66 = tpu.matmul %63, %65, %cst_41 {dimension_numbers = #tpu.dot_dimension_numbers<[1], [0], [0], [1], [0, 0, 1, 1], [], []>} : vector<80x128xf32>, vector<128x256xf32>, vector<80x256xf32> -> vector<80x256xf32>
    %67 = arith.addf %62, %66 : vector<80x256xf32>
    %68 = vector.extract_strided_slice %67 {offsets = [0, 0], sizes = [80, 128], strides = [1, 1]} : vector<80x256xf32> to vector<80x128xf32>
    %69 = vector.extract_strided_slice %67 {offsets = [0, 128], sizes = [80, 128], strides = [1, 1]} : vector<80x256xf32> to vector<80x128xf32>
    %70 = arith.maximumf %68, %69 : vector<80x128xf32>
    %71 = vector.shape_cast %70 : vector<80x128xf32> to vector<5x16x128xf32>
    %72 = vector.extract_strided_slice %71 {offsets = [0, 0, 0], sizes = [5, 8, 128], strides = [1, 1, 1]} : vector<5x16x128xf32> to vector<5x8x128xf32>
    %73 = vector.extract_strided_slice %71 {offsets = [0, 8, 0], sizes = [5, 8, 128], strides = [1, 1, 1]} : vector<5x16x128xf32> to vector<5x8x128xf32>
    %74 = arith.maximumf %72, %73 : vector<5x8x128xf32>
    %c0_42 = arith.constant 0 : index
    %c0_43 = arith.constant 0 : index
    %75 = vector.load %arg5[%c0_42, %c0_43] : memref<1x128xf32, #tpu.memory_space<vmem>>, vector<1x128xf32>
    %76 = vector.shape_cast %75 : vector<1x128xf32> to vector<1x1x128xf32>
    %77 = vector.broadcast %76 : vector<1x1x128xf32> to vector<5x8x128xf32>
    %78 = arith.addf %74, %77 : vector<5x8x128xf32>
    %cst_44 = arith.constant 0.000000e+00 : f32
    %79 = vector.broadcast %cst_44 : f32 to vector<5x8x128xf32>
    %80 = arith.maximumf %78, %79 : vector<5x8x128xf32>
    %cst_45 = arith.constant 0.000000e+00 : f32
    %81 = vector.broadcast %cst_45 : f32 to vector<8x128xf32>
    %82 = vector.extract_strided_slice %80 {offsets = [0, 0, 0], sizes = [1, 8, 128], strides = [1, 1, 1]} : vector<5x8x128xf32> to vector<1x8x128xf32>
    %83 = vector.shape_cast %82 : vector<1x8x128xf32> to vector<8x128xf32>
    %c0_46 = arith.constant 0 : index
    %c0_47 = arith.constant 0 : index
    %c0_48 = arith.constant 0 : index
    %84 = vector.load %arg6[%c0_46, %c0_47, %c0_48] : memref<5x128x128xf32, #tpu.memory_space<vmem>>, vector<1x128x128xf32>
    %85 = vector.shape_cast %84 : vector<1x128x128xf32> to vector<128x128xf32>
    %cst_49 = arith.constant dense<0.000000e+00> : vector<8x128xf32>
    %86 = tpu.matmul %83, %85, %cst_49 {dimension_numbers = #tpu.dot_dimension_numbers<[1], [0], [0], [1], [0, 0, 1, 1], [], []>} : vector<8x128xf32>, vector<128x128xf32>, vector<8x128xf32> -> vector<8x128xf32>
    %87 = arith.addf %81, %86 : vector<8x128xf32>
    %88 = vector.extract_strided_slice %80 {offsets = [1, 0, 0], sizes = [1, 8, 128], strides = [1, 1, 1]} : vector<5x8x128xf32> to vector<1x8x128xf32>
    %89 = vector.shape_cast %88 : vector<1x8x128xf32> to vector<8x128xf32>
    %c1_50 = arith.constant 1 : index
    %c0_51 = arith.constant 0 : index
    %c0_52 = arith.constant 0 : index
    %90 = vector.load %arg6[%c1_50, %c0_51, %c0_52] : memref<5x128x128xf32, #tpu.memory_space<vmem>>, vector<1x128x128xf32>
    %91 = vector.shape_cast %90 : vector<1x128x128xf32> to vector<128x128xf32>
    %cst_53 = arith.constant dense<0.000000e+00> : vector<8x128xf32>
    %92 = tpu.matmul %89, %91, %cst_53 {dimension_numbers = #tpu.dot_dimension_numbers<[1], [0], [0], [1], [0, 0, 1, 1], [], []>} : vector<8x128xf32>, vector<128x128xf32>, vector<8x128xf32> -> vector<8x128xf32>
    %93 = arith.addf %87, %92 : vector<8x128xf32>
    %94 = vector.extract_strided_slice %80 {offsets = [2, 0, 0], sizes = [1, 8, 128], strides = [1, 1, 1]} : vector<5x8x128xf32> to vector<1x8x128xf32>
    %95 = vector.shape_cast %94 : vector<1x8x128xf32> to vector<8x128xf32>
    %c2_54 = arith.constant 2 : index
    %c0_55 = arith.constant 0 : index
    %c0_56 = arith.constant 0 : index
    %96 = vector.load %arg6[%c2_54, %c0_55, %c0_56] : memref<5x128x128xf32, #tpu.memory_space<vmem>>, vector<1x128x128xf32>
    %97 = vector.shape_cast %96 : vector<1x128x128xf32> to vector<128x128xf32>
    %cst_57 = arith.constant dense<0.000000e+00> : vector<8x128xf32>
    %98 = tpu.matmul %95, %97, %cst_57 {dimension_numbers = #tpu.dot_dimension_numbers<[1], [0], [0], [1], [0, 0, 1, 1], [], []>} : vector<8x128xf32>, vector<128x128xf32>, vector<8x128xf32> -> vector<8x128xf32>
    %99 = arith.addf %93, %98 : vector<8x128xf32>
    %100 = vector.extract_strided_slice %80 {offsets = [3, 0, 0], sizes = [1, 8, 128], strides = [1, 1, 1]} : vector<5x8x128xf32> to vector<1x8x128xf32>
    %101 = vector.shape_cast %100 : vector<1x8x128xf32> to vector<8x128xf32>
    %c3_58 = arith.constant 3 : index
    %c0_59 = arith.constant 0 : index
    %c0_60 = arith.constant 0 : index
    %102 = vector.load %arg6[%c3_58, %c0_59, %c0_60] : memref<5x128x128xf32, #tpu.memory_space<vmem>>, vector<1x128x128xf32>
    %103 = vector.shape_cast %102 : vector<1x128x128xf32> to vector<128x128xf32>
    %cst_61 = arith.constant dense<0.000000e+00> : vector<8x128xf32>
    %104 = tpu.matmul %101, %103, %cst_61 {dimension_numbers = #tpu.dot_dimension_numbers<[1], [0], [0], [1], [0, 0, 1, 1], [], []>} : vector<8x128xf32>, vector<128x128xf32>, vector<8x128xf32> -> vector<8x128xf32>
    %105 = arith.addf %99, %104 : vector<8x128xf32>
    %106 = vector.extract_strided_slice %80 {offsets = [4, 0, 0], sizes = [1, 8, 128], strides = [1, 1, 1]} : vector<5x8x128xf32> to vector<1x8x128xf32>
    %107 = vector.shape_cast %106 : vector<1x8x128xf32> to vector<8x128xf32>
    %c4_62 = arith.constant 4 : index
    %c0_63 = arith.constant 0 : index
    %c0_64 = arith.constant 0 : index
    %108 = vector.load %arg6[%c4_62, %c0_63, %c0_64] : memref<5x128x128xf32, #tpu.memory_space<vmem>>, vector<1x128x128xf32>
    %109 = vector.shape_cast %108 : vector<1x128x128xf32> to vector<128x128xf32>
    %cst_65 = arith.constant dense<0.000000e+00> : vector<8x128xf32>
    %110 = tpu.matmul %107, %109, %cst_65 {dimension_numbers = #tpu.dot_dimension_numbers<[1], [0], [0], [1], [0, 0, 1, 1], [], []>} : vector<8x128xf32>, vector<128x128xf32>, vector<8x128xf32> -> vector<8x128xf32>
    %111 = arith.addf %105, %110 : vector<8x128xf32>
    %c0_66 = arith.constant 0 : index
    %c0_67 = arith.constant 0 : index
    %112 = vector.load %arg7[%c0_66, %c0_67] : memref<1x128xf32, #tpu.memory_space<vmem>>, vector<1x128xf32>
    %113 = vector.broadcast %112 : vector<1x128xf32> to vector<8x128xf32>
    %114 = arith.addf %111, %113 : vector<8x128xf32>
    %cst_68 = arith.constant 0.000000e+00 : f32
    %115 = vector.broadcast %cst_68 : f32 to vector<8x128xf32>
    %116 = arith.maximumf %114, %115 : vector<8x128xf32>
    %c0_69 = arith.constant 0 : index
    %c0_70 = arith.constant 0 : index
    %117 = vector.load %arg8[%c0_69, %c0_70] : memref<128x128xf32, #tpu.memory_space<vmem>>, vector<128x128xf32>
    %cst_71 = arith.constant dense<0.000000e+00> : vector<8x128xf32>
    %118 = tpu.matmul %116, %117, %cst_71 {dimension_numbers = #tpu.dot_dimension_numbers<[1], [0], [0], [1], [0, 0, 1, 1], [], []>} : vector<8x128xf32>, vector<128x128xf32>, vector<8x128xf32> -> vector<8x128xf32>
    %c0_72 = arith.constant 0 : index
    %c0_73 = arith.constant 0 : index
    %119 = vector.load %arg9[%c0_72, %c0_73] : memref<1x128xf32, #tpu.memory_space<vmem>>, vector<1x128xf32>
    %120 = vector.broadcast %119 : vector<1x128xf32> to vector<8x128xf32>
    %121 = arith.addf %118, %120 : vector<8x128xf32>
    %cst_74 = arith.constant 0.000000e+00 : f32
    %122 = vector.broadcast %cst_74 : f32 to vector<8x128xf32>
    %123 = arith.maximumf %121, %122 : vector<8x128xf32>
    %c0_75 = arith.constant 0 : index
    %c0_76 = arith.constant 0 : index
    %124 = vector.load %arg10[%c0_75, %c0_76] : memref<128x128xf32, #tpu.memory_space<vmem>>, vector<128x128xf32>
    %cst_77 = arith.constant dense<0.000000e+00> : vector<8x128xf32>
    %125 = tpu.matmul %123, %124, %cst_77 {dimension_numbers = #tpu.dot_dimension_numbers<[1], [0], [0], [1], [0, 0, 1, 1], [], []>} : vector<8x128xf32>, vector<128x128xf32>, vector<8x128xf32> -> vector<8x128xf32>
    %c0_78 = arith.constant 0 : index
    %c0_79 = arith.constant 0 : index
    %126 = vector.load %arg11[%c0_78, %c0_79] : memref<1x128xf32, #tpu.memory_space<vmem>>, vector<1x128xf32>
    %127 = vector.broadcast %126 : vector<1x128xf32> to vector<8x128xf32>
    %128 = arith.addf %125, %127 : vector<8x128xf32>
    %c0_80 = arith.constant 0 : index
    %c0_81 = arith.constant 0 : index
    %129 = vector.load %arg12[%c0_80, %c0_81] : memref<8x128xf32, #tpu.memory_space<vmem>>, vector<8x128xf32>
    tpu.vector_store %arg12[%c0_80, %c0_81], %128 {strides = array<i32>} : memref<8x128xf32, #tpu.memory_space<vmem>>, vector<8x128xf32>,
    return
  }
  func.func @transform_0(%arg0: i32) -> (i32, i32, i32) {
    %c0_i32 = arith.constant 0 : i32
    %c0_i32_0 = arith.constant 0 : i32
    %c0_i32_1 = arith.constant 0 : i32
    return %c0_i32, %arg0, %c0_i32_0 : i32, i32, i32
  }
  func.func @transform_1(%arg0: i32) -> (i32, i32, i32) {
    %c0_i32 = arith.constant 0 : i32
    %c0_i32_0 = arith.constant 0 : i32
    %c0_i32_1 = arith.constant 0 : i32
    %c0_i32_2 = arith.constant 0 : i32
    return %c0_i32, %c0_i32_0, %c0_i32_1 : i32, i32, i32
  }
  func.func @transform_2(%arg0: i32) -> (i32, i32) {
    %c0_i32 = arith.constant 0 : i32
    %c0_i32_0 = arith.constant 0 : i32
    %c0_i32_1 = arith.constant 0 : i32
    return %c0_i32, %c0_i32_0 : i32, i32
  }
  func.func @transform_3(%arg0: i32) -> (i32, i32, i32) {
    %c0_i32 = arith.constant 0 : i32
    %c0_i32_0 = arith.constant 0 : i32
    %c0_i32_1 = arith.constant 0 : i32
    %c0_i32_2 = arith.constant 0 : i32
    return %c0_i32, %c0_i32_0, %c0_i32_1 : i32, i32, i32
  }
  func.func @transform_4(%arg0: i32) -> (i32, i32) {
    %c0_i32 = arith.constant 0 : i32
    %c0_i32_0 = arith.constant 0 : i32
    %c0_i32_1 = arith.constant 0 : i32
    return %c0_i32, %c0_i32_0 : i32, i32
  }
  func.func @transform_5(%arg0: i32) -> (i32, i32, i32) {
    %c0_i32 = arith.constant 0 : i32
    %c0_i32_0 = arith.constant 0 : i32
    %c0_i32_1 = arith.constant 0 : i32
    %c0_i32_2 = arith.constant 0 : i32
    return %c0_i32, %c0_i32_0, %c0_i32_1 : i32, i32, i32
  }
  func.func @transform_6(%arg0: i32) -> (i32, i32) {
    %c0_i32 = arith.constant 0 : i32
    %c0_i32_0 = arith.constant 0 : i32
    %c0_i32_1 = arith.constant 0 : i32
    return %c0_i32, %c0_i32_0 : i32, i32
  }
  func.func @transform_7(%arg0: i32) -> (i32, i32) {
    %c0_i32 = arith.constant 0 : i32
    %c0_i32_0 = arith.constant 0 : i32
    %c0_i32_1 = arith.constant 0 : i32
    return %c0_i32, %c0_i32_0 : i32, i32
  }
  func.func @transform_8(%arg0: i32) -> (i32, i32) {
    %c0_i32 = arith.constant 0 : i32
    %c0_i32_0 = arith.constant 0 : i32
    %c0_i32_1 = arith.constant 0 : i32
    return %c0_i32, %c0_i32_0 : i32, i32
  }
  func.func @transform_9(%arg0: i32) -> (i32, i32) {
    %c0_i32 = arith.constant 0 : i32
    %c0_i32_0 = arith.constant 0 : i32
    %c0_i32_1 = arith.constant 0 : i32
    return %c0_i32, %c0_i32_0 : i32, i32
  }
  func.func @transform_10(%arg0: i32) -> (i32, i32) {
    %c0_i32 = arith.constant 0 : i32
    %c0_i32_0 = arith.constant 0 : i32
    %c0_i32_1 = arith.constant 0 : i32
    return %c0_i32, %c0_i32_0 : i32, i32
  }
  func.func @transform_11(%arg0: i32) -> (i32, i32) {
    %c0_i32 = arith.constant 0 : i32
    %c0_i32_0 = arith.constant 0 : i32
    return %arg0, %c0_i32 : i32, i32
  }
}

</mosaic_0001>

<bundles_post_ra>
// kernel: convnet_forward.1
= control target key start
LH: loop header
LB: loop body
LE: loop exit
PB: predicated region body
PF: predicated region fallthrough
CT: control target
= control target key end

     0   :  { %v6794_v3 = vmov 0.0   ;;  %vm119_vm0 = vcmask 785408   ;;  %vm4021_vm1 = vmmov 0   ;;  %s6782_s1 = inlined_call_operand.vmem [shape: f32[5,96,256], index: 1, kind: input, shape index: {}]   ;;  %s6783_s0 = inlined_call_operand.vmem [shape: f32[32,8,96], index: 0, kind: input, shape index: {}]   ;;  %s6784_s3 = inlined_call_operand.vmem [shape: f32[5,128,256], index: 3, kind: input, shape index: {}]   ;;  %s6785_s2 = inlined_call_operand.vmem [shape: f32[1,128], index: 2, kind: input, shape index: {}]   ;;  %s6786_s5 = inlined_call_operand.vmem [shape: f32[5,128,128], index: 5, kind: input, shape index: {}]   ;;  %s6787_s4 = inlined_call_operand.vmem [shape: f32[1,128], index: 4, kind: input, shape index: {}]   ;;  %s6788_s7 = inlined_call_operand.vmem [shape: f32[128,128], index: 7, kind: input, shape index: {}]   ;;  %s6789_s9 = inlined_call_operand.vmem [shape: f32[128,128], index: 9, kind: input, shape index: {}]   ;;  %s6790_s6 = inlined_call_operand.vmem [shape: f32[1,128], index: 6, kind: input, shape index: {}]   ;;  %s6791_s8 = inlined_call_operand.vmem [shape: f32[1,128], index: 8, kind: input, shape index: {}]   ;;  %s6792_s10 = inlined_call_operand.vmem [shape: f32[1,128], index: 10, kind: input, shape index: {}]   ;;  %s6793_s11 = inlined_call_operand.vmem [shape: f32[8,128], index: 11, kind: output, shape index: {}]  }
   0x1   :  { %v3243_v0 = vld [vmem:[%s6782_s1 + $0x178] sm:$0xff]  ;;  %v3242_v2 = vld [vmem:[%s6782_s1 + $0x170] sm:$0xff]  ;;  %268 = vmatprep.mubr.f32.mxu0 %v6794_v3  ;;  %504 = vmatprep.mubr.f32.mxu1 %v6794_v3  ;;  %v3241_v5 = vld [vmem:[%s6782_s1 + $0x168] sm:$0xff] }
   0x2   :  { %v93_v1 = vld [vmem:[%s6782_s1 + $0xb8] sm:$0xff]  ;;  %212 = vmatprep.subr.mxu0 %v3243_v0  ;;  %v92_v4 = vld [vmem:[%s6782_s1 + $0xb0] sm:$0xff]  ;;  %v91_v6 = vld [vmem:[%s6782_s1 + $0xa8] sm:$0xff] }
   0x3   :  { %448 = vmatprep.subr.mxu1 %v93_v1  ;;  %213 = vmatpush1.msra.mxu0 %v3242_v2  ;;  %v3240_v7 = vld [vmem:[%s6782_s1 + $0x160] sm:$0xff]  ;;  %v3239_v9 = vld [vmem:[%s6782_s1 + $0x158] sm:$0xff]  ;;  %v3238_v11 = vld [vmem:[%s6782_s1 + $0x150] sm:$0xff] }
   0x4   :  { %449 = vmatpush1.msra.mxu1 %v92_v4  ;;  %v90_v8 = vld [vmem:[%s6782_s1 + $0xa0] sm:$0xff]  ;;  %214 = vmatprep.subr.mxu0 %v3241_v5  ;;  %v89_v10 = vld [vmem:[%s6782_s1 + $0x98] sm:$0xff]  ;;  %v88_v12 = vld [vmem:[%s6782_s1 + $0x90] sm:$0xff] }
   0x5   :  { %450 = vmatprep.subr.mxu1 %v91_v6  ;;  %215 = vmatpush1.msra.mxu0 %v3240_v7  ;;  %v3237_v13 = vld [vmem:[%s6782_s1 + $0x148] sm:$0xff]  ;;  %v3236_v15 = vld [vmem:[%s6782_s1 + $0x140] sm:$0xff]  ;;  %v3235_v17 = vld [vmem:[%s6782_s1 + $0x138] sm:$0xff] }
   0x6   :  { %451 = vmatpush1.msra.mxu1 %v90_v8  ;;  %v87_v14 = vld [vmem:[%s6782_s1 + $0x88] sm:$0xff]  ;;  %216 = vmatprep.subr.mxu0 %v3239_v9  ;;  %v86_v16 = vld [vmem:[%s6782_s1 + $0x80] sm:$0xff]  ;;  %v85_v18 = vld [vmem:[%s6782_s1 + $0x78] sm:$0xff] }
   0x7   :  { %452 = vmatprep.subr.mxu1 %v89_v10  ;;  %217 = vmatpush1.msra.mxu0 %v3238_v11  ;;  %v3234_v19 = vld [vmem:[%s6782_s1 + $0x130] sm:$0xff]  ;;  %v3233_v21 = vld [vmem:[%s6782_s1 + $0x128] sm:$0xff]  ;;  %v3232_v23 = vld [vmem:[%s6782_s1 + $0x120] sm:$0xff] }
   0x8   :  { %453 = vmatpush1.msra.mxu1 %v88_v12  ;;  %218 = vmatprep.subr.mxu0 %v3237_v13  ;;  %v84_v20 = vld [vmem:[%s6782_s1 + $0x70] sm:$0xff]  ;;  %v83_v22 = vld [vmem:[%s6782_s1 + $0x68] sm:$0xff]  ;;  %v82_v24 = vld [vmem:[%s6782_s1 + $0x60] sm:$0xff] }
   0x9   :  { %454 = vmatprep.subr.mxu1 %v87_v14  ;;  %219 = vmatpush1.msra.mxu0 %v3236_v15  ;;  %v3231_v25 = vld [vmem:[%s6782_s1 + $0x118] sm:$0xff]  ;;  %v3230_v27 = vld [vmem:[%s6782_s1 + $0x110] sm:$0xff]  ;;  %v3229_v29 = vld [vmem:[%s6782_s1 + $0x108] sm:$0xff] }
   0xa   :  { %455 = vmatpush1.msra.mxu1 %v86_v16  ;;  %220 = vmatprep.subr.mxu0 %v3235_v17  ;;  %v81_v26 = vld [vmem:[%s6782_s1 + $0x58] sm:$0xff]  ;;  %v80_v28 = vld [vmem:[%s6782_s1 + $0x50] sm:$0xff]  ;;  %v79_v30 = vld [vmem:[%s6782_s1 + $0x48] sm:$0xff] }
   0xb   :  { %456 = vmatprep.subr.mxu1 %v85_v18  ;;  %221 = vmatpush1.msra.mxu0 %v3234_v19  ;;  %v3228_v31 = vld [vmem:[%s6782_s1 + $0x100] sm:$0xff]  ;;  %v3227_v33 = vld [vmem:[%s6782_s1 + $0xf8] sm:$0xff]  ;;  %v3226_v35 = vld [vmem:[%s6782_s1 + $0xf0] sm:$0xff] }
   0xc   :  { %457 = vmatpush1.msra.mxu1 %v84_v20  ;;  %222 = vmatprep.subr.mxu0 %v3233_v21  ;;  %v78_v32 = vld [vmem:[%s6782_s1 + $0x40] sm:$0xff]  ;;  %v77_v34 = vld [vmem:[%s6782_s1 + $0x38] sm:$0xff]  ;;  %v76_v36 = vld [vmem:[%s6782_s1 + $0x30] sm:$0xff] }
   0xd   :  { %458 = vmatprep.subr.mxu1 %v83_v22  ;;  %223 = vmatpush1.msra.mxu0 %v3232_v23  ;;  %v3225_v37 = vld [vmem:[%s6782_s1 + $0xe8] sm:$0xff]  ;;  %v3224_v39 = vld [vmem:[%s6782_s1 + $0xe0] sm:$0xff]  ;;  %v3223_v41 = vld [vmem:[%s6782_s1 + $0xd8] sm:$0xff] }
   0xe   :  { %459 = vmatpush1.msra.mxu1 %v82_v24  ;;  %224 = vmatprep.subr.mxu0 %v3231_v25  ;;  %v75_v38 = vld [vmem:[%s6782_s1 + $0x28] sm:$0xff]  ;;  %v74_v40 = vld [vmem:[%s6782_s1 + $0x20] sm:$0xff]  ;;  %v73_v42 = vld [vmem:[%s6782_s1 + $0x18] sm:$0xff] }
   0xf   :  { %460 = vmatprep.subr.mxu1 %v81_v26  ;;  %225 = vmatpush1.msra.mxu0 %v3230_v27  ;;  %v3222_v43 = vld [vmem:[%s6782_s1 + $0xd0] sm:$0xff]  ;;  %v3221_v45 = vld [vmem:[%s6782_s1 + $0xc8] sm:$0xff]  ;;  %v3220_v47 = vld [vmem:[%s6782_s1 + $0xc0] sm:$0xff] }
  0x10   :  { %461 = vmatpush1.msra.mxu1 %v80_v28  ;;  %226 = vmatprep.subr.mxu0 %v3229_v29  ;;  %v72_v44 = vld [vmem:[%s6782_s1 + $0x10] sm:$0xff]  ;;  %v71_v46 = vld [vmem:[%s6782_s1 + $0x8] sm:$0xff]  ;;  %v70_v48 = vld [vmem:[%s6782_s1] sm:$0xff] }
  0x11   :  { %462 = vmatprep.subr.mxu1 %v79_v30  ;;  %227 = vmatpush1.msra.mxu0 %v3228_v31  ;;  %v39_v49 = vld [vmem:[%s6783_s0 + $0x8] sm:$0xff]  ;;  %v38_v50 = vld [vmem:[%s6783_s0] sm:$0xff]  ;;  %v3323_v51 = vld [vmem:[%s6782_s1 + $0x238] sm:$0xff] }
  0x12   :  { %463 = vmatpush1.msra.mxu1 %v78_v32  ;;  %228 = vmatprep.subr.mxu0 %v3227_v33  ;;  %v3322_v52 = vld [vmem:[%s6782_s1 + $0x230] sm:$0xff]  ;;  %v3321_v53 = vld [vmem:[%s6782_s1 + $0x228] sm:$0xff]  ;;  %v3320_v55 = vld [vmem:[%s6782_s1 + $0x220] sm:$0xff] }
  0x13   :  { %464 = vmatprep.subr.mxu1 %v77_v34  ;;  %229 = vmatpush1.msra.mxu0 %v3226_v35  ;;  %v4249_v54 = vld [vmem:[%s6783_s0 + $0x10] sm:$0xff]  ;;  %v3319_v56 = vld [vmem:[%s6782_s1 + $0x218] sm:$0xff]  ;;  %v3373_v61 = vld [vmem:[%s6782_s1 + $0x2e8] sm:$0xff] }
  0x14   :  { %465 = vmatpush1.msra.mxu1 %v76_v36  ;;  %230 = vmatprep.subr.mxu0 %v3225_v37  ;;  %v4266_v57 = vld [vmem:[%s6783_s0 + $0x18] sm:$0xff]  ;;  %v3374_v59 = vld [vmem:[%s6782_s1 + $0x2f0] sm:$0xff]  ;;  %v3317_v62 = vld [vmem:[%s6782_s1 + $0x208] sm:$0xff] }
  0x15   :  { %466 = vmatprep.subr.mxu1 %v75_v38  ;;  %231 = vmatpush1.msra.mxu0 %v3224_v39  ;;  %v3375_v58 = vld [vmem:[%s6782_s1 + $0x2f8] sm:$0xff]  ;;  %v3318_v60 = vld [vmem:[%s6782_s1 + $0x210] sm:$0xff]  ;;  %v3372_v63 = vld [vmem:[%s6782_s1 + $0x2e0] sm:$0xff] }
  0x16   :  { %467 = vmatpush1.msra.mxu1 %v74_v40  ;;  %232 = vmatprep.subr.mxu0 %v3223_v41  ;;  %v4295_v0 = vld [vmem:[%s6783_s0 + $0x20] sm:$0xff]  ;;  %v3371_v2 = vld [vmem:[%s6782_s1 + $0x2d8] sm:$0xff]  ;;  %v3370_v5 = vld [vmem:[%s6782_s1 + $0x2d0] sm:$0xff] }
  0x17   :  { %468 = vmatprep.subr.mxu1 %v73_v42  ;;  %233 = vmatpush1.msra.mxu0 %v3222_v43  ;;  %v3316_v1 = vld [vmem:[%s6782_s1 + $0x200] sm:$0xff]  ;;  %v3315_v4 = vld [vmem:[%s6782_s1 + $0x1f8] sm:$0xff]  ;;  %v4318_v6 = vld [vmem:[%s6783_s0 + $0x28] sm:$0xff] }
  0x18   :  { %469 = vmatpush1.msra.mxu1 %v72_v44  ;;  %234 = vmatprep.subr.mxu0 %v3221_v45  ;;  %v3314_v7 = vld [vmem:[%s6782_s1 + $0x1f0] sm:$0xff]  ;;  %v3369_v8 = vld [vmem:[%s6782_s1 + $0x2c8] sm:$0xff]  ;;  %v3368_v10 = vld [vmem:[%s6782_s1 + $0x2c0] sm:$0xff] }
  0x19   :  { %470 = vmatprep.subr.mxu1 %v71_v46  ;;  %235 = vmatpush1.msra.mxu0 %v3220_v47  ;;  %v3313_v9 = vld [vmem:[%s6782_s1 + $0x1e8] sm:$0xff]  ;;  %v4341_v11 = vld [vmem:[%s6783_s0 + $0x30] sm:$0xff]  ;;  %v3312_v12 = vld [vmem:[%s6782_s1 + $0x1e0] sm:$0xff] }
  0x1a   :  { %471 = vmatpush1.msra.mxu1 %v70_v48  ;;  %3244 = vmatmul.mubr.msk.f32.vlgmr.msra.gmra.mxu0 %vm119_vm0, %v39_v49  ;;  %v3367_v13 = vld [vmem:[%s6782_s1 + $0x2b8] sm:$0xff]  ;;  %v3366_v15 = vld [vmem:[%s6782_s1 + $0x2b0] sm:$0xff]  ;;  %v3365_v18 = vld [vmem:[%s6782_s1 + $0x2a8] sm:$0xff] }
  0x1b   :  { %3272 = vmatmul.mubr.msk.f32.vlgmr.msra.gmra.mxu1 %vm119_vm0, %v38_v50  ;;  %709 = vmatprep.subr.mxu0 %v3323_v51  ;;  %v3311_v14 = vld [vmem:[%s6782_s1 + $0x1d8] sm:$0xff]  ;;  %v3310_v17 = vld [vmem:[%s6782_s1 + $0x1d0] sm:$0xff]  ;;  %v3309_v19 = vld [vmem:[%s6782_s1 + $0x1c8] sm:$0xff] }
  0x1c   :  { %274 = vmatprep.mubr.f32.mxu0 %v6794_v3  ;;  %710 = vmatpush1.msra.mxu0 %v3322_v52  ;;  %v4364_v16 = vld [vmem:[%s6783_s0 + $0x38] sm:$0xff]  ;;  %v3364_v20 = vld [vmem:[%s6782_s1 + $0x2a0] sm:$0xff]  ;;  %v3362_v25 = vld [vmem:[%s6782_s1 + $0x290] sm:$0xff] }
  0x1d   :  { %510 = vmatprep.mubr.f32.mxu1 %v6794_v3  ;;  %711 = vmatprep.subr.mxu0 %v3321_v53  ;;  %v4387_v21 = vld [vmem:[%s6783_s0 + $0x40] sm:$0xff]  ;;  %v3363_v23 = vld [vmem:[%s6782_s1 + $0x298] sm:$0xff]  ;;  %v4410_v26 = vld [vmem:[%s6783_s0 + $0x48] sm:$0xff] }
  0x1e   :  { %3245 = vmatmul.mubr.msk.f32.gmra.mxu0 %vm119_vm0, %v4249_v54  ;;  %1026 = vmatprep.subr.mxu1 %v3375_v58  ;;  %v3308_v22 = vld [vmem:[%s6782_s1 + $0x1c0] sm:$0xff]  ;;  %v3307_v24 = vld [vmem:[%s6782_s1 + $0x1b8] sm:$0xff]  ;;  %v3306_v27 = vld [vmem:[%s6782_s1 + $0x1b0] sm:$0xff] }
  0x1f   :  { %3273 = vmatmul.mubr.msk.f32.gmra.mxu1 %vm119_vm0, %v39_v49  ;;  %280 = vmatprep.mubr.f32.mxu0 %v6794_v3  ;;  %v3361_v28 = vld [vmem:[%s6782_s1 + $0x288] sm:$0xff]  ;;  %v3360_v30 = vld [vmem:[%s6782_s1 + $0x280] sm:$0xff]  ;;  %v4433_v31 = vld [vmem:[%s6783_s0 + $0x50] sm:$0xff] }
  0x20   :  { %516 = vmatprep.mubr.f32.mxu1 %v6794_v3  ;;  %712 = vmatpush1.msra.mxu0 %v3320_v55  ;;  %v3305_v29 = vld [vmem:[%s6782_s1 + $0x1a8] sm:$0xff]  ;;  %v3304_v32 = vld [vmem:[%s6782_s1 + $0x1a0] sm:$0xff]  ;;  %v3359_v33 = vld [vmem:[%s6782_s1 + $0x278] sm:$0xff] }
  0x21   :  { %713 = vmatprep.subr.mxu0 %v3319_v56  ;;  %1027 = vmatpush1.msra.mxu1 %v3374_v59  ;;  %v3303_v34 = vld [vmem:[%s6782_s1 + $0x198] sm:$0xff]  ;;  %v3358_v35 = vld [vmem:[%s6782_s1 + $0x270] sm:$0xff]  ;;  %v3357_v38 = vld [vmem:[%s6782_s1 + $0x268] sm:$0xff] }
  0x22   :  { %3246 = vmatmul.mubr.msk.f32.gmra.mxu0 %vm119_vm0, %v4266_v57  ;;  %1028 = vmatprep.subr.mxu1 %v3373_v61  ;;  %v4456_v36 = vld [vmem:[%s6783_s0 + $0x58] sm:$0xff]  ;;  %v3302_v37 = vld [vmem:[%s6782_s1 + $0x190] sm:$0xff]  ;;  %v3301_v39 = vld [vmem:[%s6782_s1 + $0x188] sm:$0xff] }
  0x23   :  { %3274 = vmatmul.mubr.msk.f32.gmra.mxu1 %vm119_vm0, %v4249_v54  ;;  %286 = vmatprep.mubr.f32.mxu0 %v6794_v3  ;;  %v3356_v40 = vld [vmem:[%s6782_s1 + $0x260] sm:$0xff]  ;;  %v3355_v43 = vld [vmem:[%s6782_s1 + $0x258] sm:$0xff]  ;;  %v3354_v44 = vld [vmem:[%s6782_s1 + $0x250] sm:$0xff] }
  0x24   :  { %522 = vmatprep.mubr.f32.mxu1 %v6794_v3  ;;  %714 = vmatpush1.msra.mxu0 %v3318_v60  ;;  %v4479_v41 = vld [vmem:[%s6783_s0 + $0x60] sm:$0xff]  ;;  %v3427_v45 = vld [vmem:[%s6782_s1 + $0x3b8] sm:$0xff]  ;;  %v4502_v46 = vld [vmem:[%s6783_s0 + $0x68] sm:$0xff] }
  0x25   :  { %715 = vmatprep.subr.mxu0 %v3317_v62  ;;  %1029 = vmatpush1.msra.mxu1 %v3372_v63  ;;  %v3300_v42 = vld [vmem:[%s6782_s1 + $0x180] sm:$0xff]  ;;  %v3353_v47 = vld [vmem:[%s6782_s1 + $0x248] sm:$0xff]  ;;  %v4519_v49 = vld [vmem:[%s6783_s0 + $0x70] sm:$0xff] }
  0x26   :  { %3247 = vmatmul.mubr.msk.f32.gmra.mxu0 %vm119_vm0, %v4295_v0  ;;  %1030 = vmatprep.subr.mxu1 %v3371_v2  ;;  %v3352_v48 = vld [vmem:[%s6782_s1 + $0x240] sm:$0xff]  ;;  %v4530_v50 = vld [vmem:[%s6783_s0 + $0x78] sm:$0xff]  ;;  %v4552_v52 = vld [vmem:[%s6783_s0 + $0x88] sm:$0xff] }
  0x27   :  { %3275 = vmatmul.mubr.msk.f32.gmra.mxu1 %vm119_vm0, %v4266_v57  ;;  %292 = vmatprep.mubr.f32.mxu0 %v6794_v3  ;;  %v4541_v51 = vld [vmem:[%s6783_s0 + $0x80] sm:$0xff]  ;;  %v4563_v53 = vld [vmem:[%s6783_s0 + $0x90] sm:$0xff]  ;;  %v4574_v55 = vld [vmem:[%s6783_s0 + $0x98] sm:$0xff] }
  0x28   :  { %528 = vmatprep.mubr.f32.mxu1 %v6794_v3  ;;  %716 = vmatpush1.msra.mxu0 %v3316_v1  ;;  %v4585_v56 = vld [vmem:[%s6783_s0 + $0xa0] sm:$0xff]  ;;  %v4596_v58 = vld [vmem:[%s6783_s0 + $0xa8] sm:$0xff]  ;;  %v4607_v59 = vld [vmem:[%s6783_s0 + $0xb0] sm:$0xff] }
  0x29   :  { %717 = vmatprep.subr.mxu0 %v3315_v4  ;;  %1031 = vmatpush1.msra.mxu1 %v3370_v5  ;;  %v4618_v60 = vld [vmem:[%s6783_s0 + $0xb8] sm:$0xff]  ;;  %v4629_v61 = vld [vmem:[%s6783_s0 + $0xc0] sm:$0xff]  ;;  %v4640_v62 = vld [vmem:[%s6783_s0 + $0xc8] sm:$0xff] }
  0x2a   :  { %3248 = vmatmul.mubr.msk.f32.gmra.mxu0 %vm119_vm0, %v4318_v6  ;;  %1032 = vmatprep.subr.mxu1 %v3369_v8  ;;  %v4651_v63 = vld [vmem:[%s6783_s0 + $0xd0] sm:$0xff]  ;;  %v4662_v1 = vld [vmem:[%s6783_s0 + $0xd8] sm:$0xff]  ;;  %v4673_v2 = vld [vmem:[%s6783_s0 + $0xe0] sm:$0xff] }
  0x2b   :  { %3276 = vmatmul.mubr.msk.f32.gmra.mxu1 %vm119_vm0, %v4295_v0  ;;  %298 = vmatprep.mubr.f32.mxu0 %v6794_v3  ;;  %v3426_v4 = vld [vmem:[%s6782_s1 + $0x3b0] sm:$0xff]  ;;  %v3425_v5 = vld [vmem:[%s6782_s1 + $0x3a8] sm:$0xff]  ;;  %v3423_v8 = vld [vmem:[%s6782_s1 + $0x398] sm:$0xff] }
  0x2c   :  { %534 = vmatprep.mubr.f32.mxu1 %v6794_v3  ;;  %718 = vmatpush1.msra.mxu0 %v3314_v7  ;;  %v3424_v7 = vld [vmem:[%s6782_s1 + $0x3a0] sm:$0xff] }
  0x2d   :  { %719 = vmatprep.subr.mxu0 %v3313_v9  ;;  %1033 = vmatpush1.msra.mxu1 %v3368_v10  ;;  %v3421_v9 = vld [vmem:[%s6782_s1 + $0x388] sm:$0xff]  ;;  %v3419_v10 = vld [vmem:[%s6782_s1 + $0x378] sm:$0xff] }
  0x2e   :  { %3249 = vmatmul.mubr.msk.f32.gmra.mxu0 %vm119_vm0, %v4341_v11  ;;  %1034 = vmatprep.subr.mxu1 %v3367_v13  ;;  %v3417_v13 = vld [vmem:[%s6782_s1 + $0x368] sm:$0xff] }
  0x2f   :  { %3277 = vmatmul.mubr.msk.f32.gmra.mxu1 %vm119_vm0, %v4318_v6  ;;  %304 = vmatprep.mubr.f32.mxu0 %v6794_v3 }
  0x30   :  { %540 = vmatprep.mubr.f32.mxu1 %v6794_v3  ;;  %720 = vmatpush1.msra.mxu0 %v3312_v12  ;;  %v3418_v12 = vld [vmem:[%s6782_s1 + $0x370] sm:$0xff] }
  0x31   :  { %721 = vmatprep.subr.mxu0 %v3311_v14  ;;  %1035 = vmatpush1.msra.mxu1 %v3366_v15  ;;  %v3416_v14 = vld [vmem:[%s6782_s1 + $0x360] sm:$0xff]  ;;  %v3415_v15 = vld [vmem:[%s6782_s1 + $0x358] sm:$0xff] }
  0x32   :  { %3250 = vmatmul.mubr.msk.f32.gmra.mxu0 %vm119_vm0, %v4364_v16  ;;  %1036 = vmatprep.subr.mxu1 %v3365_v18  ;;  %v3413_v18 = vld [vmem:[%s6782_s1 + $0x348] sm:$0xff] }
  0x33   :  { %3278 = vmatmul.mubr.msk.f32.gmra.mxu1 %vm119_vm0, %v4341_v11  ;;  %310 = vmatprep.mubr.f32.mxu0 %v6794_v3 }
  0x34   :  { %546 = vmatprep.mubr.f32.mxu1 %v6794_v3  ;;  %722 = vmatpush1.msra.mxu0 %v3310_v17  ;;  %v3414_v17 = vld [vmem:[%s6782_s1 + $0x350] sm:$0xff] }
  0x35   :  { %723 = vmatprep.subr.mxu0 %v3309_v19  ;;  %1037 = vmatpush1.msra.mxu1 %v3364_v20  ;;  %v3412_v19 = vld [vmem:[%s6782_s1 + $0x340] sm:$0xff]  ;;  %v3411_v20 = vld [vmem:[%s6782_s1 + $0x338] sm:$0xff] }
  0x36   :  { %3251 = vmatmul.mubr.msk.f32.gmra.mxu0 %vm119_vm0, %v4387_v21  ;;  %1038 = vmatprep.subr.mxu1 %v3363_v23  ;;  %v3409_v23 = vld [vmem:[%s6782_s1 + $0x328] sm:$0xff] }
  0x37   :  { %3279 = vmatmul.mubr.msk.f32.gmra.mxu1 %vm119_vm0, %v4364_v16  ;;  %316 = vmatprep.mubr.f32.mxu0 %v6794_v3 }
  0x38   :  { %552 = vmatprep.mubr.f32.mxu1 %v6794_v3  ;;  %724 = vmatpush1.msra.mxu0 %v3308_v22  ;;  %v3410_v22 = vld [vmem:[%s6782_s1 + $0x330] sm:$0xff] }
  0x39   :  { %725 = vmatprep.subr.mxu0 %v3307_v24  ;;  %1039 = vmatpush1.msra.mxu1 %v3362_v25  ;;  %v3408_v24 = vld [vmem:[%s6782_s1 + $0x320] sm:$0xff]  ;;  %v3407_v25 = vld [vmem:[%s6782_s1 + $0x318] sm:$0xff] }
  0x3a   :  { %3252 = vmatmul.mubr.msk.f32.gmra.mxu0 %vm119_vm0, %v4410_v26  ;;  %1040 = vmatprep.subr.mxu1 %v3361_v28  ;;  %v3405_v28 = vld [vmem:[%s6782_s1 + $0x308] sm:$0xff] }
  0x3b   :  { %3280 = vmatmul.mubr.msk.f32.gmra.mxu1 %vm119_vm0, %v4387_v21  ;;  %322 = vmatprep.mubr.f32.mxu0 %v6794_v3 }
  0x3c   :  { %558 = vmatprep.mubr.f32.mxu1 %v6794_v3  ;;  %726 = vmatpush1.msra.mxu0 %v3306_v27  ;;  %v3406_v27 = vld [vmem:[%s6782_s1 + $0x310] sm:$0xff] }
  0x3d   :  { %727 = vmatprep.subr.mxu0 %v3305_v29  ;;  %1041 = vmatpush1.msra.mxu1 %v3360_v30  ;;  %v3404_v29 = vld [vmem:[%s6782_s1 + $0x300] sm:$0xff] }
  0x3e   :  { %3253 = vmatmul.mubr.msk.f32.gmra.mxu0 %vm119_vm0, %v4433_v31  ;;  %1042 = vmatprep.subr.mxu1 %v3359_v33 }
  0x3f   :  { %3281 = vmatmul.mubr.msk.f32.gmra.mxu1 %vm119_vm0, %v4410_v26  ;;  %328 = vmatprep.mubr.f32.mxu0 %v6794_v3 }
  0x40   :  { %564 = vmatprep.mubr.f32.mxu1 %v6794_v3  ;;  %728 = vmatpush1.msra.mxu0 %v3304_v32 }
  0x41   :  { %729 = vmatprep.subr.mxu0 %v3303_v34  ;;  %1043 = vmatpush1.msra.mxu1 %v3358_v35 }
  0x42   :  { %3254 = vmatmul.mubr.msk.f32.gmra.mxu0 %vm119_vm0, %v4456_v36  ;;  %1044 = vmatprep.subr.mxu1 %v3357_v38 }
  0x43   :  { %3282 = vmatmul.mubr.msk.f32.gmra.mxu1 %vm119_vm0, %v4433_v31  ;;  %334 = vmatprep.mubr.f32.mxu0 %v6794_v3 }
  0x44   :  { %570 = vmatprep.mubr.f32.mxu1 %v6794_v3  ;;  %730 = vmatpush1.msra.mxu0 %v3302_v37 }
  0x45   :  { %731 = vmatprep.subr.mxu0 %v3301_v39  ;;  %1045 = vmatpush1.msra.mxu1 %v3356_v40 }
  0x46   :  { %3255 = vmatmul.mubr.msk.f32.gmra.mxu0 %vm119_vm0, %v4479_v41  ;;  %1046 = vmatprep.subr.mxu1 %v3355_v43 }
  0x47   :  { %3283 = vmatmul.mubr.msk.f32.gmra.mxu1 %vm119_vm0, %v4456_v36  ;;  %340 = vmatprep.mubr.f32.mxu0 %v6794_v3 }
  0x48   :  { %576 = vmatprep.mubr.f32.mxu1 %v6794_v3  ;;  %732 = vmatpush1.msra.mxu0 %v3300_v42 }
  0x49   :  { %1047 = vmatpush1.msra.mxu1 %v3354_v44  ;;  %1343 = vmatprep.subr.mxu0 %v3427_v45 }
  0x4a   :  { %3256 = vmatmul.mubr.msk.f32.gmra.mxu0 %vm119_vm0, %v4502_v46  ;;  %1048 = vmatprep.subr.mxu1 %v3353_v47 }
  0x4b   :  { %3284 = vmatmul.mubr.msk.f32.gmra.mxu1 %vm119_vm0, %v4479_v41  ;;  %346 = vmatprep.mubr.f32.mxu0 %v6794_v3 }
  0x4c   :  { %582 = vmatprep.mubr.f32.mxu1 %v6794_v3  ;;  %1049 = vmatpush1.msra.mxu1 %v3352_v48 }
  0x4e   :  { %3257 = vmatmul.mubr.msk.f32.gmra.mxu0 %vm119_vm0, %v4519_v49 }
  0x4f   :  { %3285 = vmatmul.mubr.msk.f32.gmra.mxu1 %vm119_vm0, %v4502_v46  ;;  %352 = vmatprep.mubr.f32.mxu0 %v6794_v3 }
  0x50   :  { %588 = vmatprep.mubr.f32.mxu1 %v6794_v3 }
  0x52   :  { %3258 = vmatmul.mubr.msk.f32.gmra.mxu0 %vm119_vm0, %v4530_v50 }
  0x53   :  { %3286 = vmatmul.mubr.msk.f32.gmra.mxu1 %vm119_vm0, %v4519_v49  ;;  %358 = vmatprep.mubr.f32.mxu0 %v6794_v3 }
  0x54   :  { %594 = vmatprep.mubr.f32.mxu1 %v6794_v3 }
  0x56   :  { %3259 = vmatmul.mubr.msk.f32.gmra.mxu0 %vm119_vm0, %v4541_v51 }
  0x57   :  { %3287 = vmatmul.mubr.msk.f32.gmra.mxu1 %vm119_vm0, %v4530_v50  ;;  %364 = vmatprep.mubr.f32.mxu0 %v6794_v3 }
  0x58   :  { %600 = vmatprep.mubr.f32.mxu1 %v6794_v3 }
  0x5a   :  { %3260 = vmatmul.mubr.msk.f32.gmra.mxu0 %vm119_vm0, %v4552_v52 }
  0x5b   :  { %3288 = vmatmul.mubr.msk.f32.gmra.mxu1 %vm119_vm0, %v4541_v51  ;;  %370 = vmatprep.mubr.f32.mxu0 %v6794_v3 }
  0x5c   :  { %606 = vmatprep.mubr.f32.mxu1 %v6794_v3 }
  0x5e   :  { %3261 = vmatmul.mubr.msk.f32.gmra.mxu0 %vm119_vm0, %v4563_v53 }
  0x5f   :  { %3289 = vmatmul.mubr.msk.f32.gmra.mxu1 %vm119_vm0, %v4552_v52  ;;  %376 = vmatprep.mubr.f32.mxu0 %v6794_v3 }
  0x60   :  { %612 = vmatprep.mubr.f32.mxu1 %v6794_v3 }
  0x62   :  { %3262 = vmatmul.mubr.msk.f32.gmra.mxu0 %vm119_vm0, %v4574_v55 }
  0x63   :  { %3290 = vmatmul.mubr.msk.f32.gmra.mxu1 %vm119_vm0, %v4563_v53  ;;  %382 = vmatprep.mubr.f32.mxu0 %v6794_v3 }
  0x64   :  { %618 = vmatprep.mubr.f32.mxu1 %v6794_v3 }
  0x66   :  { %3263 = vmatmul.mubr.msk.f32.gmra.mxu0 %vm119_vm0, %v4585_v56 }
  0x67   :  { %3291 = vmatmul.mubr.msk.f32.gmra.mxu1 %vm119_vm0, %v4574_v55  ;;  %388 = vmatprep.mubr.f32.mxu0 %v6794_v3 }
  0x68   :  { %624 = vmatprep.mubr.f32.mxu1 %v6794_v3 }
  0x6a   :  { %3264 = vmatmul.mubr.msk.f32.gmra.mxu0 %vm119_vm0, %v4596_v58 }
  0x6b   :  { %3292 = vmatmul.mubr.msk.f32.gmra.mxu1 %vm119_vm0, %v4585_v56  ;;  %394 = vmatprep.mubr.f32.mxu0 %v6794_v3 }
  0x6c   :  { %630 = vmatprep.mubr.f32.mxu1 %v6794_v3 }
  0x6e   :  { %3265 = vmatmul.mubr.msk.f32.gmra.mxu0 %vm119_vm0, %v4607_v59 }
  0x6f   :  { %3293 = vmatmul.mubr.msk.f32.gmra.mxu1 %vm119_vm0, %v4596_v58  ;;  %400 = vmatprep.mubr.f32.mxu0 %v6794_v3 }
  0x70   :  { %636 = vmatprep.mubr.f32.mxu1 %v6794_v3 }
  0x72   :  { %3266 = vmatmul.mubr.msk.f32.gmra.mxu0 %vm119_vm0, %v4618_v60 }
  0x73   :  { %3294 = vmatmul.mubr.msk.f32.gmra.mxu1 %vm119_vm0, %v4607_v59  ;;  %406 = vmatprep.mubr.f32.mxu0 %v6794_v3 }
  0x74   :  { %642 = vmatprep.mubr.f32.mxu1 %v6794_v3 }
  0x76   :  { %3267 = vmatmul.mubr.msk.f32.gmra.mxu0 %vm119_vm0, %v4629_v61 }
  0x77   :  { %3295 = vmatmul.mubr.msk.f32.gmra.mxu1 %vm119_vm0, %v4618_v60  ;;  %412 = vmatprep.mubr.f32.mxu0 %v6794_v3 }
  0x78   :  { %648 = vmatprep.mubr.f32.mxu1 %v6794_v3 }
  0x7a   :  { %3268 = vmatmul.mubr.msk.f32.gmra.mxu0 %vm119_vm0, %v4640_v62 }
  0x7b   :  { %3296 = vmatmul.mubr.msk.f32.gmra.mxu1 %vm119_vm0, %v4629_v61  ;;  %418 = vmatprep.mubr.f32.mxu0 %v6794_v3 }
  0x7c   :  { %654 = vmatprep.mubr.f32.mxu1 %v6794_v3 }
  0x7e   :  { %3269 = vmatmul.mubr.msk.f32.gmra.mxu0 %vm119_vm0, %v4651_v63 }
  0x7f   :  { %3297 = vmatmul.mubr.msk.f32.gmra.mxu1 %vm119_vm0, %v4640_v62  ;;  %424 = vmatprep.mubr.f32.mxu0 %v6794_v3 }
  0x80   :  { %660 = vmatprep.mubr.f32.mxu1 %v6794_v3 }
  0x82   :  { %3270 = vmatmul.mubr.msk.f32.gmra.mxu0 %vm119_vm0, %v4662_v1 }
  0x83   :  { %3298 = vmatmul.mubr.msk.f32.gmra.mxu1 %vm119_vm0, %v4651_v63  ;;  %430 = vmatprep.mubr.f32.mxu0 %v6794_v3 }
  0x84   :  { %666 = vmatprep.mubr.f32.mxu1 %v6794_v3 }
  0x86   :  { %3271 = vmatmul.mubr.msk.f32.gmra.mxu0 %vm119_vm0, %v4673_v2 }
  0x87   :  { %3299 = vmatmul.mubr.msk.f32.gmra.mxu1 %vm119_vm0, %v4662_v1  ;;  %765 = vmatprep.mubr.f32.mxu0 %v6794_v3 }
  0x88   :  { %1082 = vmatprep.mubr.f32.mxu1 %v6794_v3 }
  0x8a   :  { %3324 = vmatmul.mubr.msk.f32.vlgmr.msra.gmra.mxu0 %vm119_vm0, %v4249_v54  ;;  %v3422_v54 = vld [vmem:[%s6782_s1 + $0x390] sm:$0xff] }
  0x8b   :  { %3376 = vmatmul.mubr.msk.f32.vlgmr.msra.gmra.mxu1 %vm119_vm0, %v4266_v57  ;;  %1344 = vmatpush1.msra.mxu0 %v3426_v4 }
  0x8c   :  { %771 = vmatprep.mubr.f32.mxu0 %v6794_v3  ;;  %1088 = vmatprep.mubr.f32.mxu1 %v6794_v3 }
  0x8d   :  { %1345 = vmatprep.subr.mxu0 %v3425_v5 }
  0x8e   :  { %1346 = vmatpush1.msra.mxu0 %v3424_v7 }
  0x8f   :  { %3325 = vmatmul.mubr.msk.f32.gmra.mxu0 %vm119_vm0, %v4266_v57  ;;  %3377 = vmatmul.mubr.msk.f32.gmra.mxu1 %vm119_vm0, %v4295_v0  ;;  %v3420_v57 = vld [vmem:[%s6782_s1 + $0x380] sm:$0xff] }
  0x90   :  { %777 = vmatprep.mubr.f32.mxu0 %v6794_v3  ;;  %1094 = vmatprep.mubr.f32.mxu1 %v6794_v3 }
  0x91   :  { %1347 = vmatprep.subr.mxu0 %v3423_v8 }
  0x92   :  { %1348 = vmatpush1.msra.mxu0 %v3422_v54 }
  0x93   :  { %3326 = vmatmul.mubr.msk.f32.gmra.mxu0 %vm119_vm0, %v4295_v0  ;;  %3378 = vmatmul.mubr.msk.f32.gmra.mxu1 %vm119_vm0, %v4318_v6 }
  0x94   :  { %783 = vmatprep.mubr.f32.mxu0 %v6794_v3  ;;  %1100 = vmatprep.mubr.f32.mxu1 %v6794_v3 }
  0x95   :  { %1349 = vmatprep.subr.mxu0 %v3421_v9 }
  0x96   :  { %1350 = vmatpush1.msra.mxu0 %v3420_v57 }
  0x97   :  { %3327 = vmatmul.mubr.msk.f32.gmra.mxu0 %vm119_vm0, %v4318_v6  ;;  %3379 = vmatmul.mubr.msk.f32.gmra.mxu1 %vm119_vm0, %v4341_v11 }
  0x98   :  { %789 = vmatprep.mubr.f32.mxu0 %v6794_v3  ;;  %1106 = vmatprep.mubr.f32.mxu1 %v6794_v3 }
  0x99   :  { %1351 = vmatprep.subr.mxu0 %v3419_v10 }
  0x9a   :  { %1352 = vmatpush1.msra.mxu0 %v3418_v12 }
  0x9b   :  { %3328 = vmatmul.mubr.msk.f32.gmra.mxu0 %vm119_vm0, %v4341_v11  ;;  %3380 = vmatmul.mubr.msk.f32.gmra.mxu1 %vm119_vm0, %v4364_v16 }
  0x9c   :  { %795 = vmatprep.mubr.f32.mxu0 %v6794_v3  ;;  %1112 = vmatprep.mubr.f32.mxu1 %v6794_v3 }
  0x9d   :  { %1353 = vmatprep.subr.mxu0 %v3417_v13 }
  0x9e   :  { %1354 = vmatpush1.msra.mxu0 %v3416_v14 }
  0x9f   :  { %3329 = vmatmul.mubr.msk.f32.gmra.mxu0 %vm119_vm0, %v4364_v16  ;;  %3381 = vmatmul.mubr.msk.f32.gmra.mxu1 %vm119_vm0, %v4387_v21 }
  0xa0   :  { %801 = vmatprep.mubr.f32.mxu0 %v6794_v3  ;;  %1118 = vmatprep.mubr.f32.mxu1 %v6794_v3 }
  0xa1   :  { %1355 = vmatprep.subr.mxu0 %v3415_v15 }
  0xa2   :  { %1356 = vmatpush1.msra.mxu0 %v3414_v17 }
  0xa3   :  { %3330 = vmatmul.mubr.msk.f32.gmra.mxu0 %vm119_vm0, %v4387_v21  ;;  %3382 = vmatmul.mubr.msk.f32.gmra.mxu1 %vm119_vm0, %v4410_v26 }
  0xa4   :  { %807 = vmatprep.mubr.f32.mxu0 %v6794_v3  ;;  %1124 = vmatprep.mubr.f32.mxu1 %v6794_v3 }
  0xa5   :  { %1357 = vmatprep.subr.mxu0 %v3413_v18  ;;  %v4941_v18 = vld [vmem:[%s6783_s0 + $0xe8] sm:$0xff] }
  0xa6   :  { %1358 = vmatpush1.msra.mxu0 %v3412_v19 }
  0xa7   :  { %3331 = vmatmul.mubr.msk.f32.gmra.mxu0 %vm119_vm0, %v4410_v26  ;;  %3383 = vmatmul.mubr.msk.f32.gmra.mxu1 %vm119_vm0, %v4433_v31 }
  0xa8   :  { %813 = vmatprep.mubr.f32.mxu0 %v6794_v3  ;;  %1130 = vmatprep.mubr.f32.mxu1 %v6794_v3 }
  0xa9   :  { %1359 = vmatprep.subr.mxu0 %v3411_v20 }
  0xaa   :  { %1360 = vmatpush1.msra.mxu0 %v3410_v22 }
  0xab   :  { %3332 = vmatmul.mubr.msk.f32.gmra.mxu0 %vm119_vm0, %v4433_v31  ;;  %3384 = vmatmul.mubr.msk.f32.gmra.mxu1 %vm119_vm0, %v4456_v36 }
  0xac   :  { %819 = vmatprep.mubr.f32.mxu0 %v6794_v3  ;;  %1136 = vmatprep.mubr.f32.mxu1 %v6794_v3 }
  0xad   :  { %1361 = vmatprep.subr.mxu0 %v3409_v23 }
  0xae   :  { %1362 = vmatpush1.msra.mxu0 %v3408_v24 }
  0xaf   :  { %3333 = vmatmul.mubr.msk.f32.gmra.mxu0 %vm119_vm0, %v4456_v36  ;;  %3385 = vmatmul.mubr.msk.f32.gmra.mxu1 %vm119_vm0, %v4479_v41 }
  0xb0   :  { %825 = vmatprep.mubr.f32.mxu0 %v6794_v3  ;;  %1142 = vmatprep.mubr.f32.mxu1 %v6794_v3 }
  0xb1   :  { %1363 = vmatprep.subr.mxu0 %v3407_v25  ;;  %v4958_v25 = vld [vmem:[%s6783_s0 + $0xf0] sm:$0xff] }
  0xb2   :  { %1364 = vmatpush1.msra.mxu0 %v3406_v27 }
  0xb3   :  { %3334 = vmatmul.mubr.msk.f32.gmra.mxu0 %vm119_vm0, %v4479_v41  ;;  %3386 = vmatmul.mubr.msk.f32.gmra.mxu1 %vm119_vm0, %v4502_v46 }
  0xb4   :  { %831 = vmatprep.mubr.f32.mxu0 %v6794_v3  ;;  %1148 = vmatprep.mubr.f32.mxu1 %v6794_v3 }
  0xb5   :  { %1365 = vmatprep.subr.mxu0 %v3405_v28 }
  0xb6   :  { %1366 = vmatpush1.msra.mxu0 %v3404_v29 }
  0xb7   :  { %3335 = vmatmul.mubr.msk.f32.gmra.mxu0 %vm119_vm0, %v4502_v46  ;;  %3387 = vmatmul.mubr.msk.f32.gmra.mxu1 %vm119_vm0, %v4519_v49 }
  0xb8   :  { %837 = vmatprep.mubr.f32.mxu0 %v6794_v3  ;;  %1154 = vmatprep.mubr.f32.mxu1 %v6794_v3 }
  0xbb   :  { %3336 = vmatmul.mubr.msk.f32.gmra.mxu0 %vm119_vm0, %v4519_v49  ;;  %3388 = vmatmul.mubr.msk.f32.gmra.mxu1 %vm119_vm0, %v4530_v50 }
  0xbc   :  { %843 = vmatprep.mubr.f32.mxu0 %v6794_v3  ;;  %1160 = vmatprep.mubr.f32.mxu1 %v6794_v3 }
  0xbf   :  { %3337 = vmatmul.mubr.msk.f32.gmra.mxu0 %vm119_vm0, %v4530_v50  ;;  %3389 = vmatmul.mubr.msk.f32.gmra.mxu1 %vm119_vm0, %v4541_v51 }
  0xc0   :  { %849 = vmatprep.mubr.f32.mxu0 %v6794_v3  ;;  %1166 = vmatprep.mubr.f32.mxu1 %v6794_v3 }
  0xc3   :  { %3338 = vmatmul.mubr.msk.f32.gmra.mxu0 %vm119_vm0, %v4541_v51  ;;  %3390 = vmatmul.mubr.msk.f32.gmra.mxu1 %vm119_vm0, %v4552_v52 }
  0xc4   :  { %855 = vmatprep.mubr.f32.mxu0 %v6794_v3  ;;  %1172 = vmatprep.mubr.f32.mxu1 %v6794_v3 }
  0xc7   :  { %3339 = vmatmul.mubr.msk.f32.gmra.mxu0 %vm119_vm0, %v4552_v52  ;;  %3391 = vmatmul.mubr.msk.f32.gmra.mxu1 %vm119_vm0, %v4563_v53 }
  0xc8   :  { %861 = vmatprep.mubr.f32.mxu0 %v6794_v3  ;;  %1178 = vmatprep.mubr.f32.mxu1 %v6794_v3 }
  0xcb   :  { %3340 = vmatmul.mubr.msk.f32.gmra.mxu0 %vm119_vm0, %v4563_v53  ;;  %3392 = vmatmul.mubr.msk.f32.gmra.mxu1 %vm119_vm0, %v4574_v55 }
  0xcc   :  { %867 = vmatprep.mubr.f32.mxu0 %v6794_v3  ;;  %1184 = vmatprep.mubr.f32.mxu1 %v6794_v3 }
  0xcf   :  { %3341 = vmatmul.mubr.msk.f32.gmra.mxu0 %vm119_vm0, %v4574_v55  ;;  %3393 = vmatmul.mubr.msk.f32.gmra.mxu1 %vm119_vm0, %v4585_v56 }
  0xd0   :  { %873 = vmatprep.mubr.f32.mxu0 %v6794_v3  ;;  %1190 = vmatprep.mubr.f32.mxu1 %v6794_v3 }
  0xd3   :  { %3342 = vmatmul.mubr.msk.f32.gmra.mxu0 %vm119_vm0, %v4585_v56  ;;  %3394 = vmatmul.mubr.msk.f32.gmra.mxu1 %vm119_vm0, %v4596_v58 }
  0xd4   :  { %879 = vmatprep.mubr.f32.mxu0 %v6794_v3  ;;  %1196 = vmatprep.mubr.f32.mxu1 %v6794_v3 }
  0xd7   :  { %3343 = vmatmul.mubr.msk.f32.gmra.mxu0 %vm119_vm0, %v4596_v58  ;;  %3395 = vmatmul.mubr.msk.f32.gmra.mxu1 %vm119_vm0, %v4607_v59 }
  0xd8   :  { %885 = vmatprep.mubr.f32.mxu0 %v6794_v3  ;;  %1202 = vmatprep.mubr.f32.mxu1 %v6794_v3 }
  0xda   :  { %v270_v30 = vpop.f32.mrf.mxu0 }
  0xdb   :  { %v506_v32 = vpop.f32.mrf.mxu1  ;;  %3344 = vmatmul.mubr.msk.f32.gmra.mxu0 %vm119_vm0, %v4607_v59  ;;  %3396 = vmatmul.mubr.msk.f32.gmra.mxu1 %vm119_vm0, %v4618_v60 }
  0xdc   :  { %v4874_v33 = vadd.f32 %v506_v32, %v270_v30  ;;  %891 = vmatprep.mubr.f32.mxu0 %v6794_v3  ;;  %1208 = vmatprep.mubr.f32.mxu1 %v6794_v3  ;;  %v4878_v34 = vpop.f32.mrf.mxu0 }
  0xdd   :  { %6797 = vst [vmem:[#allocation2_spill] sm:$0xff] %v4878_v34  ;;  %v4880_v35 = vpop.f32.mrf.mxu1 }
  0xde   :  { %6798 = vst [vmem:[#allocation3_spill] sm:$0xff] %v4880_v35  ;;  %v276_v37 = vpop.f32.mrf.mxu0 }
  0xdf   :  { %v512_v38 = vpop.f32.mrf.mxu1  ;;  %3345 = vmatmul.mubr.msk.f32.gmra.mxu0 %vm119_vm0, %v4618_v60  ;;  %3397 = vmatmul.mubr.msk.f32.gmra.mxu1 %vm119_vm0, %v4629_v61 }
  0xe0   :  { %v4886_v39 = vadd.f32 %v512_v38, %v276_v37  ;;  %897 = vmatprep.mubr.f32.mxu0 %v6794_v3  ;;  %1214 = vmatprep.mubr.f32.mxu1 %v6794_v3  ;;  %v4890_v40 = vpop.f32.mrf.mxu0 }
  0xe1   :  { %6799 = vst [vmem:[#allocation4_spill] sm:$0xff] %v4890_v40  ;;  %v4892_v42 = vpop.f32.mrf.mxu1 }
  0xe2   :  { %6800 = vst [vmem:[#allocation5_spill] sm:$0xff] %v4892_v42  ;;  %v282_v43 = vpop.f32.mrf.mxu0 }
  0xe3   :  { %v518_v44 = vpop.f32.mrf.mxu1  ;;  %3346 = vmatmul.mubr.msk.f32.gmra.mxu0 %vm119_vm0, %v4629_v61  ;;  %3398 = vmatmul.mubr.msk.f32.gmra.mxu1 %vm119_vm0, %v4640_v62 }
  0xe4   :  { %v4898_v45 = vadd.f32 %v518_v44, %v282_v43  ;;  %903 = vmatprep.mubr.f32.mxu0 %v6794_v3  ;;  %1220 = vmatprep.mubr.f32.mxu1 %v6794_v3  ;;  %v4902_v47 = vpop.f32.mrf.mxu0 }
  0xe5   :  { %6801 = vst [vmem:[#allocation6_spill] sm:$0xff] %v4902_v47  ;;  %v4904_v48 = vpop.f32.mrf.mxu1 }
  0xe6   :  { %6802 = vst [vmem:[#allocation7_spill] sm:$0xff] %v4904_v48  ;;  %v288_v4 = vpop.f32.mrf.mxu0 }
  0xe7   :  { %v524_v5 = vpop.f32.mrf.mxu1  ;;  %3347 = vmatmul.mubr.msk.f32.gmra.mxu0 %vm119_vm0, %v4640_v62  ;;  %3399 = vmatmul.mubr.msk.f32.gmra.mxu1 %vm119_vm0, %v4651_v63 }
  0xe8   :  { %v4910_v7 = vadd.f32 %v524_v5, %v288_v4  ;;  %909 = vmatprep.mubr.f32.mxu0 %v6794_v3  ;;  %1226 = vmatprep.mubr.f32.mxu1 %v6794_v3  ;;  %v4914_v8 = vpop.f32.mrf.mxu0 }
  0xe9   :  { %6803 = vst [vmem:[#allocation8_spill] sm:$0xff] %v4914_v8  ;;  %v4916_v54 = vpop.f32.mrf.mxu1  ;;  %v3476_v8 = vld [vmem:[%s6784_s3 + $0x198] sm:$0xff] }
  0xea   :  { %6804 = vst [vmem:[#allocation9_spill] sm:$0xff] %v4916_v54  ;;  %v294_v9 = vpop.f32.mrf.mxu0 }
  0xeb   :  { %v530_v57 = vpop.f32.mrf.mxu1  ;;  %3348 = vmatmul.mubr.msk.f32.gmra.mxu0 %vm119_vm0, %v4651_v63  ;;  %3400 = vmatmul.mubr.msk.f32.gmra.mxu1 %vm119_vm0, %v4662_v1 }
  0xec   :  { %v4922_v10 = vadd.f32 %v530_v57, %v294_v9  ;;  %915 = vmatprep.mubr.f32.mxu0 %v6794_v3  ;;  %1232 = vmatprep.mubr.f32.mxu1 %v6794_v3  ;;  %v4926_v12 = vpop.f32.mrf.mxu0 }
  0xed   :  { %6805 = vst [vmem:[#allocation10_spill] sm:$0xff] %v4926_v12  ;;  %v4928_v13 = vpop.f32.mrf.mxu1 }
  0xee   :  { %6806 = vst [vmem:[#allocation11_spill] sm:$0xff] %v4928_v13  ;;  %v300_v14 = vpop.f32.mrf.mxu0 }
  0xef   :  { %v536_v15 = vpop.f32.mrf.mxu1  ;;  %3349 = vmatmul.mubr.msk.f32.gmra.mxu0 %vm119_vm0, %v4662_v1  ;;  %3401 = vmatmul.mubr.msk.f32.gmra.mxu1 %vm119_vm0, %v4673_v2 }
  0xf0   :  { %v4934_v17 = vadd.f32 %v536_v15, %v300_v14  ;;  %921 = vmatprep.mubr.f32.mxu0 %v6794_v3  ;;  %1238 = vmatprep.mubr.f32.mxu1 %v6794_v3  ;;  %v4943_v19 = vpop.f32.mrf.mxu0 }
  0xf1   :  { %6807 = vst [vmem:[#allocation12_spill] sm:$0xff] %v4943_v19  ;;  %v4945_v20 = vpop.f32.mrf.mxu1 }
  0xf2   :  { %6808 = vst [vmem:[#allocation13_spill] sm:$0xff] %v4945_v20  ;;  %v306_v22 = vpop.f32.mrf.mxu0 }
  0xf3   :  { %v542_v23 = vpop.f32.mrf.mxu1  ;;  %3350 = vmatmul.mubr.msk.f32.gmra.mxu0 %vm119_vm0, %v4673_v2  ;;  %3402 = vmatmul.mubr.msk.f32.gmra.mxu1 %vm119_vm0, %v4941_v18 }
  0xf4   :  { %v4951_v24 = vadd.f32 %v542_v23, %v306_v22  ;;  %927 = vmatprep.mubr.f32.mxu0 %v6794_v3  ;;  %1244 = vmatprep.mubr.f32.mxu1 %v6794_v3  ;;  %v4960_v27 = vpop.f32.mrf.mxu0 }
  0xf5   :  { %6809 = vst [vmem:[#allocation14_spill] sm:$0xff] %v4960_v27  ;;  %v4962_v28 = vpop.f32.mrf.mxu1 }
  0xf6   :  { %6810 = vst [vmem:[#allocation15_spill] sm:$0xff] %v4962_v28  ;;  %v312_v29 = vpop.f32.mrf.mxu0 }
  0xf7   :  { %v548_v30 = vpop.f32.mrf.mxu1  ;;  %3351 = vmatmul.mubr.msk.f32.gmra.mxu0 %vm119_vm0, %v4941_v18  ;;  %3403 = vmatmul.mubr.msk.f32.gmra.mxu1 %vm119_vm0, %v4958_v25 }
  0xf8   :  { %v4968_v32 = vadd.f32 %v548_v30, %v312_v29  ;;  %1399 = vmatprep.mubr.f32.mxu0 %v6794_v3  ;;  %1830 = vmatprep.mubr.f32.mxu1 %v6794_v3  ;;  %v4972_v37 = vpop.f32.mrf.mxu0 }
  0xf9   :  { %6811 = vst [vmem:[#allocation16_spill] sm:$0xff] %v4972_v37  ;;  %v4974_v38 = vpop.f32.mrf.mxu1 }
  0xfa   :  { %6812 = vst [vmem:[#allocation17_spill] sm:$0xff] %v4974_v38  ;;  %v318_v43 = vpop.f32.mrf.mxu0 }
  0xfb   :  { %v554_v44 = vpop.f32.mrf.mxu1  ;;  %3428 = vmatmul.mubr.msk.f32.vlgmr.msra.gmra.mxu0 %vm119_vm0, %v4295_v0 }
  0xfc   :  { %v4978_v4 = vadd.f32 %v554_v44, %v318_v43  ;;  %1405 = vmatprep.mubr.f32.mxu0 %v6794_v3  ;;  %v4981_v5 = vpop.f32.mrf.mxu0 }
  0xfd   :  { %6813 = vst [vmem:[#allocation18_spill] sm:$0xff] %v4981_v5  ;;  %v4983_v9 = vpop.f32.mrf.mxu1 }
  0xfe   :  { %6814 = vst [vmem:[#allocation19_spill] sm:$0xff] %v4983_v9  ;;  %v324_v57 = vpop.f32.mrf.mxu0 }
  0xff   :  { %v560_v14 = vpop.f32.mrf.mxu1  ;;  %3429 = vmatmul.mubr.msk.f32.gmra.mxu0 %vm119_vm0, %v4318_v6 }
 0x100   :  { %v4987_v15 = vadd.f32 %v560_v14, %v324_v57  ;;  %1411 = vmatprep.mubr.f32.mxu0 %v6794_v3  ;;  %v4990_v22 = vpop.f32.mrf.mxu0 }
 0x101   :  { %6815 = vst [vmem:[#allocation20_spill] sm:$0xff] %v4990_v22  ;;  %v4992_v0 = vpop.f32.mrf.mxu1 }
 0x102   :  { %6816 = vst [vmem:[#allocation21_spill] sm:$0xff] %v4992_v0  ;;  %v330_v23 = vpop.f32.mrf.mxu0 }
 0x103   :  { %v566_v29 = vpop.f32.mrf.mxu1  ;;  %3430 = vmatmul.mubr.msk.f32.gmra.mxu0 %vm119_vm0, %v4341_v11 }
 0x104   :  { %v4996_v30 = vadd.f32 %v566_v29, %v330_v23  ;;  %1417 = vmatprep.mubr.f32.mxu0 %v6794_v3  ;;  %v4999_v43 = vpop.f32.mrf.mxu0  ;;  %v3488_v23 = vld [vmem:[%s6784_s3 + $0x1f8] sm:$0xff]  ;;  %v3487_v29 = vld [vmem:[%s6784_s3 + $0x1f0] sm:$0xff] }
 0x105   :  { %6817 = vst [vmem:[#allocation22_spill] sm:$0xff] %v4999_v43  ;;  %v5001_v6 = vpop.f32.mrf.mxu1  ;;  %1766 = vmatprep.subr.mxu1 %v3488_v23 }
 0x106   :  { %6818 = vst [vmem:[#allocation23_spill] sm:$0xff] %v5001_v6  ;;  %v336_v44 = vpop.f32.mrf.mxu0  ;;  %1767 = vmatpush1.msra.mxu1 %v3487_v29 }
 0x107   :  { %v572_v57 = vpop.f32.mrf.mxu1  ;;  %3431 = vmatmul.mubr.msk.f32.gmra.mxu0 %vm119_vm0, %v4364_v16 }
 0x108   :  { %v5005_v14 = vadd.f32 %v572_v57, %v336_v44  ;;  %1423 = vmatprep.mubr.f32.mxu0 %v6794_v3  ;;  %v5008_v0 = vpop.f32.mrf.mxu0 }
 0x109   :  { %6819 = vst [vmem:[#allocation24_spill] sm:$0xff] %v5008_v0  ;;  %v5010_v11 = vpop.f32.mrf.mxu1 }
 0x10a   :  { %6820 = vst [vmem:[#allocation25_spill] sm:$0xff] %v5010_v11  ;;  %v342_v6 = vpop.f32.mrf.mxu0 }
 0x10b   :  { %v578_v43 = vpop.f32.mrf.mxu1  ;;  %3432 = vmatmul.mubr.msk.f32.gmra.mxu0 %vm119_vm0, %v4387_v21  ;;  %v3486_v21 = vld [vmem:[%s6784_s3 + $0x1e8] sm:$0xff] }
 0x10c   :  { %v5020_v16 = vadd.f32 %v578_v43, %v342_v6  ;;  %1429 = vmatprep.mubr.f32.mxu0 %v6794_v3  ;;  %v5023_v44 = vpop.f32.mrf.mxu0  ;;  %v3485_v43 = vld [vmem:[%s6784_s3 + $0x1e0] sm:$0xff]  ;;  %1768 = vmatprep.subr.mxu1 %v3486_v21 }
 0x10d   :  { %6821 = vst [vmem:[#allocation26_spill] sm:$0xff] %v5023_v44  ;;  %v5025_v57 = vpop.f32.mrf.mxu1  ;;  %1769 = vmatpush1.msra.mxu1 %v3485_v43 }
 0x10e   :  { %6822 = vst [vmem:[#allocation27_spill] sm:$0xff] %v5025_v57  ;;  %v348_v11 = vpop.f32.mrf.mxu0 }
 0x10f   :  { %v584_v23 = vpop.f32.mrf.mxu1  ;;  %3433 = vmatmul.mubr.msk.f32.gmra.mxu0 %vm119_vm0, %v4410_v26 }
 0x110   :  { %v5029_v0 = vadd.f32 %v584_v23, %v348_v11  ;;  %1435 = vmatprep.mubr.f32.mxu0 %v6794_v3  ;;  %v5038_v6 = vpop.f32.mrf.mxu0 }
 0x111   :  { %6823 = vst [vmem:[#allocation28_spill] sm:$0xff] %v5038_v6  ;;  %v5040_v29 = vpop.f32.mrf.mxu1  ;;  %v3484_v6 = vld [vmem:[%s6784_s3 + $0x1d8] sm:$0xff] }
 0x112   :  { %6824 = vst [vmem:[#allocation29_spill] sm:$0xff] %v5040_v29  ;;  %v354_v57 = vpop.f32.mrf.mxu0  ;;  %1770 = vmatprep.subr.mxu1 %v3484_v6 }
 0x113   :  { %v590_v26 = vpop.f32.mrf.mxu1  ;;  %3434 = vmatmul.mubr.msk.f32.gmra.mxu0 %vm119_vm0, %v4433_v31  ;;  %v3483_v31 = vld [vmem:[%s6784_s3 + $0x1d0] sm:$0xff] }
 0x114   :  { %v5044_v11 = vadd.f32 %v590_v26, %v354_v57  ;;  %1441 = vmatprep.mubr.f32.mxu0 %v6794_v3  ;;  %v5047_v23 = vpop.f32.mrf.mxu0  ;;  %1771 = vmatpush1.msra.mxu1 %v3483_v31  ;;  %v3481_v31 = vld [vmem:[%s6784_s3 + $0x1c0] sm:$0xff] }
 0x115   :  { %v5049_v44 = vpop.f32.mrf.mxu1 }
 0x116   :  { %v360_v29 = vpop.f32.mrf.mxu0 }
 0x117   :  { %v596_v21 = vpop.f32.mrf.mxu1  ;;  %3435 = vmatmul.mubr.msk.f32.gmra.mxu0 %vm119_vm0, %v4456_v36 }
 0x118   :  { %v5056_v43 = vadd.f32 %v596_v21, %v360_v29  ;;  %1447 = vmatprep.mubr.f32.mxu0 %v6794_v3  ;;  %v5062_v57 = vpop.f32.mrf.mxu0  ;;  %v3482_v21 = vld [vmem:[%s6784_s3 + $0x1c8] sm:$0xff] }
 0x119   :  { %v5064_v26 = vpop.f32.mrf.mxu1  ;;  %1772 = vmatprep.subr.mxu1 %v3482_v21  ;;  %v3479_v21 = vld [vmem:[%s6784_s3 + $0x1b0] sm:$0xff] }
 0x11a   :  { %v366_v22 = vpop.f32.mrf.mxu0  ;;  %1773 = vmatpush1.msra.mxu1 %v3481_v31 }
 0x11b   :  { %v602_v9 = vpop.f32.mrf.mxu1  ;;  %3436 = vmatmul.mubr.msk.f32.gmra.mxu0 %vm119_vm0, %v4479_v41 }
 0x11c   :  { %v5068_v36 = vadd.f32 %v602_v9, %v366_v22  ;;  %1453 = vmatprep.mubr.f32.mxu0 %v6794_v3  ;;  %v5071_v6 = vpop.f32.mrf.mxu0 }
 0x11d   :  { %v5073_v29 = vpop.f32.mrf.mxu1 }
 0x11e   :  { %v372_v5 = vpop.f32.mrf.mxu0 }
 0x11f   :  { %v608_v38 = vpop.f32.mrf.mxu1  ;;  %3437 = vmatmul.mubr.msk.f32.gmra.mxu0 %vm119_vm0, %v4502_v46  ;;  %v3480_v46 = vld [vmem:[%s6784_s3 + $0x1b8] sm:$0xff] }
 0x120   :  { %v5083_v41 = vadd.f32 %v608_v38, %v372_v5  ;;  %1459 = vmatprep.mubr.f32.mxu0 %v6794_v3  ;;  %v5086_v9 = vpop.f32.mrf.mxu0  ;;  %1774 = vmatprep.subr.mxu1 %v3480_v46 }
 0x121   :  { %v5088_v22 = vpop.f32.mrf.mxu1  ;;  %1775 = vmatpush1.msra.mxu1 %v3479_v21 }
 0x122   :  { %v378_v37 = vpop.f32.mrf.mxu0 }
 0x123   :  { %v614_v28 = vpop.f32.mrf.mxu1  ;;  %3438 = vmatmul.mubr.msk.f32.gmra.mxu0 %vm119_vm0, %v4519_v49 }
 0x124   :  { %v5092_v27 = vadd.f32 %v614_v28, %v378_v37  ;;  %1465 = vmatprep.mubr.f32.mxu0 %v6794_v3  ;;  %v5098_v38 = vpop.f32.mrf.mxu0 }
 0x125   :  { %v5100_v5 = vpop.f32.mrf.mxu1 }
 0x126   :  { %v384_v31 = vpop.f32.mrf.mxu0 }
 0x127   :  { %v620_v20 = vpop.f32.mrf.mxu1  ;;  %3439 = vmatmul.mubr.msk.f32.gmra.mxu0 %vm119_vm0, %v4530_v50  ;;  %v3478_v50 = vld [vmem:[%s6784_s3 + $0x1a8] sm:$0xff] }
 0x128   :  { %v5107_v49 = vadd.f32 %v620_v20, %v384_v31  ;;  %1471 = vmatprep.mubr.f32.mxu0 %v6794_v3  ;;  %v5110_v28 = vpop.f32.mrf.mxu0  ;;  %v3477_v20 = vld [vmem:[%s6784_s3 + $0x1a0] sm:$0xff]  ;;  %1776 = vmatprep.subr.mxu1 %v3478_v50 }
 0x129   :  { %v5112_v37 = vpop.f32.mrf.mxu1  ;;  %1777 = vmatpush1.msra.mxu1 %v3477_v20 }
 0x12a   :  { %v390_v19 = vpop.f32.mrf.mxu0  ;;  %1778 = vmatprep.subr.mxu1 %v3476_v8 }
 0x12b   :  { %v626_v46 = vpop.f32.mrf.mxu1  ;;  %3440 = vmatmul.mubr.msk.f32.gmra.mxu0 %vm119_vm0, %v4541_v51 }
 0x12c   :  { %v5116_v13 = vadd.f32 %v626_v46, %v390_v19  ;;  %1477 = vmatprep.mubr.f32.mxu0 %v6794_v3  ;;  %v5125_v21 = vpop.f32.mrf.mxu0 }
 0x12d   :  { %v5127_v31 = vpop.f32.mrf.mxu1 }
 0x12e   :  { %v396_v12 = vpop.f32.mrf.mxu0 }
 0x12f   :  { %v632_v51 = vpop.f32.mrf.mxu1  ;;  %3441 = vmatmul.mubr.msk.f32.gmra.mxu0 %vm119_vm0, %v4552_v52  ;;  %v3475_v52 = vld [vmem:[%s6784_s3 + $0x190] sm:$0xff] }
 0x130   :  { %v5131_v19 = vadd.f32 %v632_v51, %v396_v12  ;;  %1483 = vmatprep.mubr.f32.mxu0 %v6794_v3  ;;  %v5134_v46 = vpop.f32.mrf.mxu0  ;;  %1779 = vmatpush1.msra.mxu1 %v3475_v52  ;;  %v3473_v52 = vld [vmem:[%s6784_s3 + $0x180] sm:$0xff] }
 0x131   :  { %v5136_v54 = vpop.f32.mrf.mxu1 }
 0x132   :  { %v402_v48 = vpop.f32.mrf.mxu0 }
 0x133   :  { %v638_v50 = vpop.f32.mrf.mxu1  ;;  %3442 = vmatmul.mubr.msk.f32.gmra.mxu0 %vm119_vm0, %v4563_v53 }
 0x134   :  { %v5143_v20 = vadd.f32 %v638_v50, %v402_v48  ;;  %1489 = vmatprep.mubr.f32.mxu0 %v6794_v3  ;;  %v5149_v12 = vpop.f32.mrf.mxu0  ;;  %v3474_v50 = vld [vmem:[%s6784_s3 + $0x188] sm:$0xff] }
 0x135   :  { %v5151_v51 = vpop.f32.mrf.mxu1  ;;  %1780 = vmatprep.subr.mxu1 %v3474_v50 }
 0x136   :  { %v408_v47 = vpop.f32.mrf.mxu0  ;;  %1781 = vmatpush1.msra.mxu1 %v3473_v52 }
 0x137   :  { %v644_v42 = vpop.f32.mrf.mxu1  ;;  %3443 = vmatmul.mubr.msk.f32.gmra.mxu0 %vm119_vm0, %v4574_v55 }
 0x138   :  { %v5155_v53 = vadd.f32 %v644_v42, %v408_v47  ;;  %1495 = vmatprep.mubr.f32.mxu0 %v6794_v3  ;;  %v5158_v48 = vpop.f32.mrf.mxu0 }
 0x139   :  { %v5160_v8 = vpop.f32.mrf.mxu1 }
 0x13a   :  { %6825 = vst [vmem:[#allocation30_spill] sm:$0xff] %v5155_v53  ;;  %6826 = vst [vmem:[#allocation31_spill] sm:$0xff] %v5160_v8  ;;  %v414_v40 = vpop.f32.mrf.mxu0 }
 0x13b   :  { %v650_v35 = vpop.f32.mrf.mxu1  ;;  %3444 = vmatmul.mubr.msk.f32.gmra.mxu0 %vm119_vm0, %v4585_v56  ;;  %v3472_v56 = vld [vmem:[%s6784_s3 + $0x178] sm:$0xff] }
 0x13c   :  { %v5170_v55 = vadd.f32 %v650_v35, %v414_v40  ;;  %1501 = vmatprep.mubr.f32.mxu0 %v6794_v3  ;;  %v5173_v42 = vpop.f32.mrf.mxu0  ;;  %1782 = vmatprep.subr.mxu1 %v3472_v56  ;;  %v3551_v56 = vld [vmem:[%s6784_s3 + $0x3f0] sm:$0xff] }
 0x13d   :  { %v5175_v47 = vpop.f32.mrf.mxu1 }
 0x13e   :  { %6827 = vst [vmem:[#allocation32_spill] sm:$0xff] %v5170_v55  ;;  %v420_v34 = vpop.f32.mrf.mxu0 }
 0x13f   :  { %v656_v53 = vpop.f32.mrf.mxu1  ;;  %3445 = vmatmul.mubr.msk.f32.gmra.mxu0 %vm119_vm0, %v4596_v58  ;;  %v3552_v58 = vld [vmem:[%s6784_s3 + $0x3f8] sm:$0xff] }
 0x140   :  { %v5179_v8 = vadd.f32 %v656_v53, %v420_v34  ;;  %1507 = vmatprep.mubr.f32.mxu0 %v6794_v3  ;;  %v5185_v35 = vpop.f32.mrf.mxu0  ;;  %v3471_v53 = vld [vmem:[%s6784_s3 + $0x170] sm:$0xff]  ;;  %2227 = vmatprep.subr.mxu0 %v3552_v58  ;;  %v3469_v58 = vld [vmem:[%s6784_s3 + $0x160] sm:$0xff] }
 0x141   :  { %6829 = vst [vmem:[#allocation34_spill] sm:$0xff] %v5185_v35  ;;  %v5187_v40 = vpop.f32.mrf.mxu1  ;;  %1783 = vmatpush1.msra.mxu1 %v3471_v53  ;;  %2228 = vmatpush1.msra.mxu0 %v3551_v56  ;;  %v3543_v35 = vld [vmem:[%s6784_s3 + $0x3b0] sm:$0xff] }
 0x142   :  { %6828 = vst [vmem:[#allocation33_spill] sm:$0xff] %v5179_v8  ;;  %6830 = vst [vmem:[#allocation35_spill] sm:$0xff] %v5187_v40  ;;  %v426_v50 = vpop.f32.mrf.mxu0 }
 0x143   :  { %v662_v52 = vpop.f32.mrf.mxu1  ;;  %3446 = vmatmul.mubr.msk.f32.gmra.mxu0 %vm119_vm0, %v4607_v59 }
 0x144   :  { %v5194_v34 = vadd.f32 %v662_v52, %v426_v50  ;;  %1513 = vmatprep.mubr.f32.mxu0 %v6794_v3  ;;  %v5203_v8 = vpop.f32.mrf.mxu0  ;;  %v3470_v50 = vld [vmem:[%s6784_s3 + $0x168] sm:$0xff]  ;;  %v3549_v3 = vld [vmem:[%s6784_s3 + $0x3e0] sm:$0xff] }
 0x145   :  { %6832 = vst [vmem:[#allocation37_spill] sm:$0xff] %v5203_v8  ;;  %v5205_v59 = vpop.f32.mrf.mxu1  ;;  %v3550_v52 = vld [vmem:[%s6784_s3 + $0x3e8] sm:$0xff]  ;;  %1784 = vmatprep.subr.mxu1 %v3470_v50  ;;  %v3548_v50 = vld [vmem:[%s6784_s3 + $0x3d8] sm:$0xff]  ;;  %v3467_v8 = vld [vmem:[%s6784_s3 + $0x150] sm:$0xff] }
 0x146   :  { %6831 = vst [vmem:[#allocation36_spill] sm:$0xff] %v5194_v34  ;;  %6833 = vst [vmem:[#allocation38_spill] sm:$0xff] %v5205_v59  ;;  %2229 = vmatprep.subr.mxu0 %v3550_v52  ;;  %v432_v53 = vpop.f32.mrf.mxu0  ;;  %1785 = vmatpush1.msra.mxu1 %v3469_v58  ;;  %v3468_v34 = vld [vmem:[%s6784_s3 + $0x158] sm:$0xff]  ;;  %v6835_v59 = vmov 0.0  }
 0x147   :  { %v668_v56 = vpop.f32.mrf.mxu1  ;;  %3447 = vmatmul.mubr.msk.f32.gmra.mxu0 %vm119_vm0, %v4618_v60  ;;  %v3547_v60 = vld [vmem:[%s6784_s3 + $0x3d0] sm:$0xff]  ;;  %1786 = vmatprep.subr.mxu1 %v3468_v34 }
 0x148   :  { %v5227_v52 = vadd.f32 %v668_v56, %v432_v53  ;;  %1519 = vmatprep.mubr.f32.mxu0 %v6835_v59  ;;  %2230 = vmatpush1.msra.mxu0 %v3549_v3  ;;  %v5236_v58 = vpop.f32.mrf.mxu0  ;;  %v3466_v53 = vld [vmem:[%s6784_s3 + $0x148] sm:$0xff]  ;;  %v3465_v56 = vld [vmem:[%s6784_s3 + $0x140] sm:$0xff] }
 0x149   :  { %6836 = vst [vmem:[#allocation40_spill] sm:$0xff] %v5236_v58  ;;  %v5238_v40 = vpop.f32.mrf.mxu1  ;;  %2231 = vmatprep.subr.mxu0 %v3548_v50  ;;  %v3546_v3 = vld [vmem:[%s6784_s3 + $0x3c8] sm:$0xff]  ;;  %1787 = vmatpush1.msra.mxu1 %v3467_v8  ;;  %v3544_v8 = vld [vmem:[%s6784_s3 + $0x3b8] sm:$0xff]  ;;  %v3463_v58 = vld [vmem:[%s6784_s3 + $0x130] sm:$0xff] }
 0x14a   :  { %6834 = vst [vmem:[#allocation39_spill] sm:$0xff] %v5227_v52  ;;  %6837 = vst [vmem:[#allocation41_spill] sm:$0xff] %v5238_v40  ;;  %2232 = vmatpush1.msra.mxu0 %v3547_v60  ;;  %v3545_v52 = vld [vmem:[%s6784_s3 + $0x3c0] sm:$0xff]  ;;  %v767_v34 = vpop.f32.mrf.mxu0  ;;  %1788 = vmatprep.subr.mxu1 %v3466_v53  ;;  %v3464_v40 = vld [vmem:[%s6784_s3 + $0x138] sm:$0xff] }
 0x14b   :  { %3448 = vmatmul.mubr.msk.f32.gmra.mxu0 %vm119_vm0, %v4629_v61  ;;  %v1084_v50 = vpop.f32.mrf.mxu1  ;;  %v934_v60 = vadd.f32 %v767_v34, %v4874_v33  ;;  %2233 = vmatprep.subr.mxu0 %v3546_v3  ;;  %v3462_v33 = vld [vmem:[%s6784_s3 + $0x128] sm:$0xff] }
 0x14c   :  { %1525 = vmatprep.mubr.f32.mxu0 %v6835_v59  ;;  %v5265_v61 = vpop.f32.mrf.mxu0  ;;  %1789 = vmatpush1.msra.mxu1 %v3465_v56  ;;  %v3542_v3 = vld [vmem:[%s6784_s3 + $0x3a8] sm:$0xff]  ;;  %v3461_v56 = vld [vmem:[%s6784_s3 + $0x120] sm:$0xff] }
 0x14d   :  { %v5267_v53 = vpop.f32.mrf.mxu1  ;;  %2234 = vmatpush1.msra.mxu0 %v3545_v52  ;;  %v5272_v55 = vadd.f32 %v1084_v50, %v934_v60  ;;  %1790 = vmatprep.subr.mxu1 %v3464_v40  ;;  %v3541_v40 = vld [vmem:[%s6784_s3 + $0x3a0] sm:$0xff] }
 0x14e   :  { %2235 = vmatprep.subr.mxu0 %v3544_v8  ;;  %1791 = vmatpush1.msra.mxu1 %v3463_v58  ;;  %v3460_v8 = vld [vmem:[%s6784_s3 + $0x118] sm:$0xff] }
 0x14f   :  { %v773_v34 = vpop.f32.mrf.mxu0  ;;  %3449 = vmatmul.mubr.msk.f32.gmra.mxu0 %vm119_vm0, %v4640_v62  ;;  %v1090_v52 = vpop.f32.mrf.mxu1  ;;  %1792 = vmatprep.subr.mxu1 %v3462_v33  ;;  %v3540_v58 = vld [vmem:[%s6784_s3 + $0x398] sm:$0xff]  ;;  %v3458_v33 = vld [vmem:[%s6784_s3 + $0x108] sm:$0xff] }
 0x150   :  { %v936_v50 = vadd.f32 %v773_v34, %v4886_v39  ;;  %1531 = vmatprep.mubr.f32.mxu0 %v6835_v59  ;;  %2236 = vmatpush1.msra.mxu0 %v3543_v35  ;;  %v3459_v39 = vld [vmem:[%s6784_s3 + $0x110] sm:$0xff] }
 0x151   :  { %v5293_v62 = vpop.f32.mrf.mxu0  ;;  %2237 = vmatprep.subr.mxu0 %v3542_v3  ;;  %1793 = vmatpush1.msra.mxu1 %v3461_v56  ;;  %v3539_v35 = vld [vmem:[%s6784_s3 + $0x390] sm:$0xff]  ;;  %v3538_v3 = vld [vmem:[%s6784_s3 + $0x388] sm:$0xff]  ;;  %v3457_v56 = vld [vmem:[%s6784_s3 + $0x100] sm:$0xff] }
 0x152   :  { %v5298_v60 = vadd.f32 %v1090_v52, %v936_v50  ;;  %2238 = vmatpush1.msra.mxu0 %v3541_v40  ;;  %1794 = vmatprep.subr.mxu1 %v3460_v8  ;;  %v3537_v50 = vld [vmem:[%s6784_s3 + $0x380] sm:$0xff] }
 0x153   :  { %v779_v34 = vpop.f32.mrf.mxu0  ;;  %3450 = vmatmul.mubr.msk.f32.gmra.mxu0 %vm119_vm0, %v4651_v63  ;;  %2239 = vmatprep.subr.mxu0 %v3540_v58  ;;  %v5321_v63 = vpop.f32.mrf.mxu1  ;;  %v3535_v58 = vld [vmem:[%s6784_s3 + $0x370] sm:$0xff] }
 0x154   :  { %v5315_v52 = vadd.f32 %v779_v34, %v4898_v45  ;;  %1537 = vmatprep.mubr.f32.mxu0 %v6835_v59  ;;  %1795 = vmatpush1.msra.mxu1 %v3459_v39  ;;  %v3536_v45 = vld [vmem:[%s6784_s3 + $0x378] sm:$0xff] }
 0x155   :  { %v5323_v40 = vpop.f32.mrf.mxu0  ;;  %2240 = vmatpush1.msra.mxu0 %v3539_v35  ;;  %1796 = vmatprep.subr.mxu1 %v3458_v33  ;;  %v3534_v35 = vld [vmem:[%s6784_s3 + $0x368] sm:$0xff]  ;;  %v5343_v34 = vpop.f32.mrf.mxu1 }
 0x156   :  { %2241 = vmatprep.subr.mxu0 %v3538_v3  ;;  %1797 = vmatpush1.msra.mxu1 %v3457_v56  ;;  %v3531_v56 = vld [vmem:[%s6784_s3 + $0x350] sm:$0xff] }
 0x157   :  { %v785_v8 = vpop.f32.mrf.mxu0  ;;  %3451 = vmatmul.mubr.msk.f32.gmra.mxu0 %vm119_vm0, %v4662_v1  ;;  %v3533_v1 = vld [vmem:[%s6784_s3 + $0x360] sm:$0xff] }
 0x158   :  { %v5337_v39 = vadd.f32 %v785_v8, %v4910_v7  ;;  %1543 = vmatprep.mubr.f32.mxu0 %v6835_v59  ;;  %2242 = vmatpush1.msra.mxu0 %v3537_v50  ;;  %v3532_v7 = vld [vmem:[%s6784_s3 + $0x358] sm:$0xff]  ;;  %v5365_v8 = vpop.f32.mrf.mxu1 }
 0x159   :  { %v5345_v33 = vpop.f32.mrf.mxu0  ;;  %2243 = vmatprep.subr.mxu0 %v3536_v45  ;;  %v3530_v45 = vld [vmem:[%s6784_s3 + $0x348] sm:$0xff] }
 0x15a   :  { %2244 = vmatpush1.msra.mxu0 %v3535_v58 }
 0x15b   :  { %v791_v3 = vpop.f32.mrf.mxu0  ;;  %3452 = vmatmul.mubr.msk.f32.gmra.mxu0 %vm119_vm0, %v4673_v2  ;;  %2245 = vmatprep.subr.mxu0 %v3534_v35  ;;  %v3529_v2 = vld [vmem:[%s6784_s3 + $0x340] sm:$0xff] }
 0x15c   :  { %v5359_v50 = vadd.f32 %v791_v3, %v4922_v10  ;;  %1549 = vmatprep.mubr.f32.mxu0 %v6835_v59  ;;  %2246 = vmatpush1.msra.mxu0 %v3533_v1  ;;  %v3528_v10 = vld [vmem:[%s6784_s3 + $0x338] sm:$0xff]  ;;  %v3527_v1 = vld [vmem:[%s6784_s3 + $0x330] sm:$0xff]  ;;  %v3526_v3 = vld [vmem:[%s6784_s3 + $0x328] sm:$0xff] }
 0x15d   :  { %v5367_v58 = vpop.f32.mrf.mxu0  ;;  %2247 = vmatprep.subr.mxu0 %v3532_v7 }
 0x15e   :  { %6838 = vst [vmem:[#allocation42_spill] sm:$0xff] %v5359_v50  ;;  %2248 = vmatpush1.msra.mxu0 %v3531_v56  ;;  %v5387_v56 = vpop.f32.mrf.mxu1 }
 0x15f   :  { %v797_v35 = vpop.f32.mrf.mxu0  ;;  %3453 = vmatmul.mubr.msk.f32.gmra.mxu0 %vm119_vm0, %v4941_v18  ;;  %2249 = vmatprep.subr.mxu0 %v3530_v45  ;;  %v3525_v18 = vld [vmem:[%s6784_s3 + $0x320] sm:$0xff] }
 0x160   :  { %v5381_v7 = vadd.f32 %v797_v35, %v4934_v17  ;;  %1555 = vmatprep.mubr.f32.mxu0 %v6835_v59  ;;  %2250 = vmatpush1.msra.mxu0 %v3529_v2  ;;  %v3524_v17 = vld [vmem:[%s6784_s3 + $0x318] sm:$0xff]  ;;  %v3523_v2 = vld [vmem:[%s6784_s3 + $0x310] sm:$0xff] }
 0x161   :  { %v5389_v50 = vpop.f32.mrf.mxu0  ;;  %2251 = vmatprep.subr.mxu0 %v3528_v10  ;;  %v69_v35 = vld [vmem:[%s6783_s0 + $0xf8] sm:$0xff] }
 0x162   :  { %6839 = vst [vmem:[#allocation43_spill] sm:$0xff] %v5381_v7  ;;  %2252 = vmatpush1.msra.mxu0 %v3527_v1  ;;  %v3522_v1 = vld [vmem:[%s6784_s3 + $0x308] sm:$0xff] }
 0x163   :  { %v803_v45 = vpop.f32.mrf.mxu0  ;;  %3454 = vmatmul.mubr.msk.f32.gmra.mxu0 %vm119_vm0, %v4958_v25  ;;  %2253 = vmatprep.subr.mxu0 %v3526_v3  ;;  %v5412_v25 = vpop.f32.mrf.mxu1 }
 0x164   :  { %v5403_v10 = vadd.f32 %v803_v45, %v4951_v24  ;;  %1561 = vmatprep.mubr.f32.mxu0 %v6835_v59  ;;  %2254 = vmatpush1.msra.mxu0 %v3525_v18  ;;  %v3521_v24 = vld [vmem:[%s6784_s3 + $0x300] sm:$0xff] }
 0x165   :  { %v5414_v3 = vpop.f32.mrf.mxu0  ;;  %2255 = vmatprep.subr.mxu0 %v3524_v17 }
 0x166   :  { %6840 = vst [vmem:[#allocation44_spill] sm:$0xff] %v5403_v10  ;;  %6841 = vst [vmem:[#allocation45_spill] sm:$0xff] %v5414_v3  ;;  %2256 = vmatpush1.msra.mxu0 %v3523_v2  ;;  %v5424_v10 = vpop.f32.mrf.mxu1 }
 0x167   :  { %v809_v45 = vpop.f32.mrf.mxu0  ;;  %3455 = vmatmul.mubr.msk.f32.gmra.mxu0 %vm119_vm0, %v69_v35  ;;  %2257 = vmatprep.subr.mxu0 %v3522_v1 }
 0x168   :  { %v5421_v18 = vadd.f32 %v809_v45, %v4968_v32  ;;  %2258 = vmatpush1.msra.mxu0 %v3521_v24  ;;  %2291 = vmatprep.mubr.f32.mxu0 %v6835_v59  ;;  %v5432_v2 = vpop.f32.mrf.mxu1 }
 0x169   :  { %v5426_v7 = vpop.f32.mrf.mxu0  ;;  %3772 = vmatprep.subr.mxu0 %v6835_v59 }
 0x16a   :  { %6842 = vst [vmem:[#allocation46_spill] sm:$0xff] %v5421_v18  ;;  %6843 = vst [vmem:[#allocation47_spill] sm:$0xff] %v5426_v7  ;;  %v5439_v24 = vpop.f32.mrf.mxu1 }
 0x16b   :  { %v815_v17 = vpop.f32.mrf.mxu0 }
 0x16c   :  { %v5430_v3 = vadd.f32 %v815_v17, %v4978_v4  ;;  %v5446_v59 = vpop.f32.mrf.mxu1 }
 0x16d   :  { %v5434_v35 = vpop.f32.mrf.mxu0 }
 0x16e   :  { %6844 = vst [vmem:[#allocation48_spill] sm:$0xff] %v5430_v3  ;;  %6845 = vst [vmem:[#allocation49_spill] sm:$0xff] %v5434_v35  ;;  %v5453_v35 = vpop.f32.mrf.mxu1 }
 0x16f   :  { %v821_v1 = vpop.f32.mrf.mxu0 }
 0x170   :  { %v5437_v32 = vadd.f32 %v821_v1, %v4987_v15  ;;  %v1732_v1 = vld [vmem:[%s6784_s3 + $0xf8] sm:$0xff] }
 0x171   :  { %v5441_v45 = vpop.f32.mrf.mxu0  ;;  %1891 = vmatprep.subr.mxu1 %v1732_v1 }
 0x172   :  { %6846 = vst [vmem:[#allocation50_spill] sm:$0xff] %v5437_v32  ;;  %6847 = vst [vmem:[#allocation51_spill] sm:$0xff] %v5441_v45  ;;  %v593_v45 = vadd.f32 %v5049_v44, %v5047_v23 }
 0x173   :  { %v827_v18 = vpop.f32.mrf.mxu0 }
 0x174   :  { %v5444_v7 = vadd.f32 %v827_v18, %v4996_v30  ;;  %v5463_v18 = vpop.f32.mrf.mxu1 }
 0x175   :  { %v5448_v4 = vpop.f32.mrf.mxu0 }
 0x176   :  { %6848 = vst [vmem:[#allocation52_spill] sm:$0xff] %v5444_v7  ;;  %6849 = vst [vmem:[#allocation53_spill] sm:$0xff] %v5448_v4 }
 0x177   :  { %v833_v17 = vpop.f32.mrf.mxu0 }
 0x178   :  { %v5451_v3 = vadd.f32 %v833_v17, %v5005_v14  ;;  %v5470_v17 = vpop.f32.mrf.mxu1 }
 0x179   :  { %v5455_v15 = vpop.f32.mrf.mxu0  ;;  %6855 = vst [vmem:[#allocation59_spill] sm:$0xff] %v5470_v17 }
 0x17a   :  { %6850 = vst [vmem:[#allocation54_spill] sm:$0xff] %v5451_v3  ;;  %6851 = vst [vmem:[#allocation55_spill] sm:$0xff] %v5455_v15 }
 0x17b   :  { %v839_v32 = vpop.f32.mrf.mxu0 }
 0x17c   :  { %v5461_v30 = vadd.f32 %v839_v32, %v5020_v16  ;;  %v5479_v16 = vpop.f32.mrf.mxu1 }
 0x17d   :  { %v5465_v7 = vpop.f32.mrf.mxu0 }
 0x17e   :  { %6852 = vst [vmem:[#allocation56_spill] sm:$0xff] %v5461_v30  ;;  %6853 = vst [vmem:[#allocation57_spill] sm:$0xff] %v5465_v7 }
 0x17f   :  { %v845_v4 = vpop.f32.mrf.mxu0 }
 0x180   :  { %v5468_v14 = vadd.f32 %v845_v4, %v5029_v0  ;;  %v599_v0 = vadd.f32 %v5064_v26, %v5062_v57 }
 0x181   :  { %v5472_v3 = vpop.f32.mrf.mxu0 }
 0x182   :  { %6854 = vst [vmem:[#allocation58_spill] sm:$0xff] %v5468_v14  ;;  %6856 = vst [vmem:[#allocation60_spill] sm:$0xff] %v5472_v3  ;;  %v5488_v14 = vpop.f32.mrf.mxu1 }
 0x183   :  { %v851_v15 = vpop.f32.mrf.mxu0 }
 0x184   :  { %v5477_v1 = vadd.f32 %v851_v15, %v5044_v11  ;;  %v605_v11 = vadd.f32 %v5073_v29, %v5071_v6 }
 0x185   :  { %v853_v32 = vpop.f32.mrf.mxu0 }
 0x186   :  { %v5481_v30 = vadd.f32 %v853_v32, %v593_v45  ;;  %v5497_v45 = vpop.f32.mrf.mxu1 }
 0x187   :  { %v857_v7 = vpop.f32.mrf.mxu0 }
 0x188   :  { %v5486_v4 = vadd.f32 %v857_v7, %v5056_v43  ;;  %v611_v43 = vadd.f32 %v5088_v22, %v5086_v9  ;;  %v5506_v7 = vpop.f32.mrf.mxu1 }
 0x189   :  { %v859_v3 = vpop.f32.mrf.mxu0 }
 0x18a   :  { %v5490_v17 = vadd.f32 %v859_v3, %v599_v0 }
 0x18b   :  { %v863_v44 = vpop.f32.mrf.mxu0 }
 0x18c   :  { %v5495_v23 = vadd.f32 %v863_v44, %v5068_v36  ;;  %v617_v36 = vadd.f32 %v5100_v5, %v5098_v38  ;;  %v5515_v44 = vpop.f32.mrf.mxu1 }
 0x18d   :  { %v865_v15 = vpop.f32.mrf.mxu0 }
 0x18e   :  { %v5499_v32 = vadd.f32 %v865_v15, %v605_v11 }
 0x18f   :  { %v869_v57 = vpop.f32.mrf.mxu0 }
 0x190   :  { %v5504_v26 = vadd.f32 %v869_v57, %v5083_v41  ;;  %v623_v41 = vadd.f32 %v5112_v37, %v5110_v28  ;;  %v5524_v57 = vpop.f32.mrf.mxu1 }
 0x191   :  { %v871_v3 = vpop.f32.mrf.mxu0 }
 0x192   :  { %v5508_v0 = vadd.f32 %v871_v3, %v611_v43 }
 0x193   :  { %v875_v6 = vpop.f32.mrf.mxu0 }
 0x194   :  { %v5513_v29 = vadd.f32 %v875_v6, %v5092_v27  ;;  %v629_v27 = vadd.f32 %v5127_v31, %v5125_v21  ;;  %v5533_v6 = vpop.f32.mrf.mxu1 }
 0x195   :  { %v877_v11 = vpop.f32.mrf.mxu0 }
 0x196   :  { %v5517_v15 = vadd.f32 %v877_v11, %v617_v36 }
 0x197   :  { %v881_v9 = vpop.f32.mrf.mxu0 }
 0x198   :  { %v5522_v22 = vadd.f32 %v881_v9, %v5107_v49  ;;  %v635_v49 = vadd.f32 %v5136_v54, %v5134_v46  ;;  %v5542_v9 = vpop.f32.mrf.mxu1 }
 0x199   :  { %v883_v43 = vpop.f32.mrf.mxu0 }
 0x19a   :  { %6857 = vst [vmem:[#allocation61_spill] sm:$0xff] %v5522_v22  ;;  %v5526_v3 = vadd.f32 %v883_v43, %v623_v41 }
 0x19b   :  { %v887_v38 = vpop.f32.mrf.mxu0 }
 0x19c   :  { %6858 = vst [vmem:[#allocation62_spill] sm:$0xff] %v5526_v3  ;;  %v5531_v5 = vadd.f32 %v887_v38, %v5116_v13  ;;  %v641_v13 = vadd.f32 %v5151_v51, %v5149_v12  ;;  %v5551_v38 = vpop.f32.mrf.mxu1  ;;  %v6869_v51 = vld [vmem:[#allocation32_spill] sm:$0xff] }
 0x19d   :  { %v889_v36 = vpop.f32.mrf.mxu0 }
 0x19e   :  { %6859 = vst [vmem:[#allocation63_spill] sm:$0xff] %v5531_v5  ;;  %v5535_v11 = vadd.f32 %v889_v36, %v629_v27  ;;  %v6885_v5 = vld [vmem:[#allocation41_spill] sm:$0xff] }
 0x19f   :  { %v893_v28 = vpop.f32.mrf.mxu0 }
 0x1a0   :  { %6860 = vst [vmem:[#allocation64_spill] sm:$0xff] %v5535_v11  ;;  %v5540_v37 = vadd.f32 %v893_v28, %v5131_v19  ;;  %v6865_v19 = vld [vmem:[#allocation31_spill] sm:$0xff]  ;;  %v6866_v28 = vld [vmem:[#allocation30_spill] sm:$0xff] }
 0x1a1   :  { %v895_v41 = vpop.f32.mrf.mxu0  ;;  %v647_v46 = vadd.f32 %v6865_v19, %v5158_v48  ;;  %v6873_v19 = vld [vmem:[#allocation35_spill] sm:$0xff] }
 0x1a2   :  { %6861 = vst [vmem:[#allocation65_spill] sm:$0xff] %v5540_v37  ;;  %v5544_v43 = vadd.f32 %v895_v41, %v635_v49  ;;  %v5560_v49 = vpop.f32.mrf.mxu1 }
 0x1a3   :  { %v899_v21 = vpop.f32.mrf.mxu0 }
 0x1a4   :  { %6862 = vst [vmem:[#allocation66_spill] sm:$0xff] %v5544_v43  ;;  %v5549_v31 = vadd.f32 %v899_v21, %v5143_v20  ;;  %v653_v20 = vadd.f32 %v5175_v47, %v5173_v42  ;;  %v6877_v47 = vld [vmem:[#allocation37_spill] sm:$0xff] }
 0x1a5   :  { %v901_v27 = vpop.f32.mrf.mxu0 }
 0x1a6   :  { %6863 = vst [vmem:[#allocation67_spill] sm:$0xff] %v5549_v31  ;;  %v5553_v36 = vadd.f32 %v901_v27, %v641_v13  ;;  %v5569_v13 = vpop.f32.mrf.mxu1 }
 0x1a7   :  { %v905_v54 = vpop.f32.mrf.mxu0 }
 0x1a8   :  { %6864 = vst [vmem:[#allocation68_spill] sm:$0xff] %v5553_v36  ;;  %v5558_v37 = vadd.f32 %v905_v54, %v6866_v28  ;;  %v6872_v54 = vld [vmem:[#allocation34_spill] sm:$0xff] }
 0x1a9   :  { %v907_v41 = vpop.f32.mrf.mxu0  ;;  %v659_v28 = vadd.f32 %v6873_v19, %v6872_v54  ;;  %v6882_v54 = vld [vmem:[#allocation3_spill] sm:$0xff] }
 0x1aa   :  { %6867 = vst [vmem:[#allocation31_spill] sm:$0xff] %v5558_v37  ;;  %v5562_v43 = vadd.f32 %v907_v41, %v647_v46  ;;  %v6874_v37 = vld [vmem:[#allocation33_spill] sm:$0xff]  ;;  %v5578_v46 = vpop.f32.mrf.mxu1 }
 0x1ab   :  { %v911_v12 = vpop.f32.mrf.mxu0 }
 0x1ac   :  { %6868 = vst [vmem:[#allocation30_spill] sm:$0xff] %v5562_v43  ;;  %v5567_v21 = vadd.f32 %v911_v12, %v6869_v51  ;;  %v6878_v12 = vld [vmem:[#allocation38_spill] sm:$0xff] }
 0x1ad   :  { %v913_v27 = vpop.f32.mrf.mxu0  ;;  %v665_v51 = vadd.f32 %v6878_v12, %v6877_v47  ;;  %v6889_v12 = vld [vmem:[#allocation5_spill] sm:$0xff] }
 0x1ae   :  { %6870 = vst [vmem:[#allocation32_spill] sm:$0xff] %v5567_v21  ;;  %v5571_v36 = vadd.f32 %v913_v27, %v653_v20  ;;  %v6879_v21 = vld [vmem:[#allocation36_spill] sm:$0xff]  ;;  %v5587_v20 = vpop.f32.mrf.mxu1 }
 0x1af   :  { %v917_v48 = vpop.f32.mrf.mxu0 }
 0x1b0   :  { %6871 = vst [vmem:[#allocation69_spill] sm:$0xff] %v5571_v36  ;;  %v5576_v31 = vadd.f32 %v917_v48, %v6874_v37  ;;  %v6881_v36 = vld [vmem:[#allocation2_spill] sm:$0xff]  ;;  %v5599_v47 = vpop.f32.mrf.mxu1 }
 0x1b1   :  { %v919_v41 = vpop.f32.mrf.mxu0  ;;  %v509_v19 = vadd.f32 %v6882_v54, %v6881_v36  ;;  %v6891_v54 = vld [vmem:[#allocation7_spill] sm:$0xff] }
 0x1b2   :  { %6875 = vst [vmem:[#allocation34_spill] sm:$0xff] %v5576_v31  ;;  %v5580_v43 = vadd.f32 %v919_v41, %v659_v28  ;;  %v6884_v31 = vld [vmem:[#allocation40_spill] sm:$0xff] }
 0x1b3   :  { %v923_v42 = vpop.f32.mrf.mxu0  ;;  %v671_v28 = vadd.f32 %v6885_v5, %v6884_v31  ;;  %v935_v41 = vadd.f32 %v5265_v61, %v509_v19  ;;  %v5608_v31 = vpop.f32.mrf.mxu1 }
 0x1b4   :  { %6876 = vst [vmem:[#allocation35_spill] sm:$0xff] %v5580_v43  ;;  %v5585_v11 = vadd.f32 %v923_v42, %v6879_v21  ;;  %v6886_v43 = vld [vmem:[#allocation39_spill] sm:$0xff]  ;;  %v6888_v42 = vld [vmem:[#allocation4_spill] sm:$0xff] }
 0x1b5   :  { %v925_v27 = vpop.f32.mrf.mxu0 }
 0x1b6   :  { %6880 = vst [vmem:[#allocation33_spill] sm:$0xff] %v5585_v11  ;;  %v5591_v37 = vadd.f32 %v925_v27, %v665_v51  ;;  %v515_v11 = vadd.f32 %v6889_v12, %v6888_v42  ;;  %v1252_v51 = vadd.f32 %v5267_v53, %v935_v41  ;;  %v5615_v53 = vpop.f32.mrf.mxu1 }
 0x1b7   :  { %v929_v48 = vpop.f32.mrf.mxu0 }
 0x1b8   :  { %6883 = vst [vmem:[#allocation37_spill] sm:$0xff] %v5591_v37  ;;  %v5597_v3 = vadd.f32 %v929_v48, %v6886_v43  ;;  %v937_v27 = vadd.f32 %v5293_v62, %v515_v11  ;;  %v6890_v43 = vld [vmem:[#allocation6_spill] sm:$0xff]  ;;  %v6892_v11 = vld [vmem:[#allocation8_spill] sm:$0xff] }
 0x1b9   :  { %v931_v21 = vpop.f32.mrf.mxu0  ;;  %v521_v19 = vadd.f32 %v6891_v54, %v6890_v43  ;;  %v1255_v43 = vadd.f32 %v5343_v34, %v5315_v52 }
 0x1ba   :  { %6887 = vst [vmem:[#allocation38_spill] sm:$0xff] %v5597_v3  ;;  %v5603_v22 = vadd.f32 %v931_v21, %v671_v28  ;;  %v1254_v37 = vadd.f32 %v5321_v63, %v937_v27 }
 0x1bb   :  { %v1401_v36 = vpop.f32.mrf.mxu0  ;;  %v939_v28 = vadd.f32 %v5323_v40, %v521_v19  ;;  %v5623_v40 = vpop.f32.mrf.mxu1 }
 0x1bc   :  { %v1568_v5 = vadd.f32 %v1401_v36, %v5272_v55  ;;  %v6893_v55 = vld [vmem:[#allocation9_spill] sm:$0xff] }
 0x1bd   :  { %v1403_v61 = vpop.f32.mrf.mxu0  ;;  %v527_v41 = vadd.f32 %v6893_v55, %v6892_v11  ;;  %v6897_v11 = vld [vmem:[#allocation13_spill] sm:$0xff] }
 0x1be   :  { %v1569_v48 = vadd.f32 %v1403_v61, %v1252_v51  ;;  %v1256_v51 = vadd.f32 %v5365_v8, %v939_v28  ;;  %v5633_v8 = vpop.f32.mrf.mxu1 }
 0x1bf   :  { %v1407_v3 = vpop.f32.mrf.mxu0  ;;  %v941_v63 = vadd.f32 %v5345_v33, %v527_v41 }
 0x1c0   :  { %v1624_v21 = vmax.f32 %v1568_v5, %v1569_v48  ;;  %v1570_v42 = vadd.f32 %v1407_v3, %v5298_v60  ;;  %v6894_v60 = vld [vmem:[#allocation10_spill] sm:$0xff]  ;;  %v6895_v3 = vld [vmem:[#allocation11_spill] sm:$0xff] }
 0x1c1   :  { %v1409_v62 = vpop.f32.mrf.mxu0  ;;  %v533_v61 = vadd.f32 %v6895_v3, %v6894_v60  ;;  %v1258_v52 = vadd.f32 %v5412_v25, %v941_v63  ;;  %v5641_v25 = vpop.f32.mrf.mxu1  ;;  %v6899_v63 = vld [vmem:[#allocation14_spill] sm:$0xff] }
 0x1c2   :  { %v1571_v12 = vadd.f32 %v1409_v62, %v1254_v37  ;;  %v1257_v62 = vadd.f32 %v5387_v56, %v5337_v39 }
 0x1c3   :  { %v1413_v36 = vpop.f32.mrf.mxu0  ;;  %v943_v34 = vadd.f32 %v5367_v58, %v533_v61 }
 0x1c4   :  { %v1625_v27 = vmax.f32 %v1570_v42, %v1571_v12  ;;  %v1572_v19 = vadd.f32 %v1413_v36, %v1255_v43  ;;  %v6896_v42 = vld [vmem:[#allocation12_spill] sm:$0xff]  ;;  %v6898_v36 = vld [vmem:[#allocation42_spill] sm:$0xff] }
 0x1c5   :  { %v1415_v5 = vpop.f32.mrf.mxu0  ;;  %v539_v55 = vadd.f32 %v6897_v11, %v6896_v42  ;;  %v1259_v43 = vadd.f32 %v5424_v10, %v6898_v36  ;;  %v5650_v10 = vld [vmem:[%s6785_s2] ss:$0 sm:$0xff]  ;;  %v6903_v42 = vld [vmem:[#allocation16_spill] sm:$0xff]  ;;  %v6904_v11 = vld [vmem:[#allocation17_spill] sm:$0xff] }
 0x1c6   :  { %v5627_v54 = vmax.f32 %v1624_v21, %v1625_v27  ;;  %v1573_v48 = vadd.f32 %v1415_v5, %v1256_v51  ;;  %v1260_v51 = vadd.f32 %v5432_v2, %v943_v34  ;;  %v6900_v27 = vld [vmem:[#allocation15_spill] sm:$0xff] }
 0x1c7   :  { %v1419_v37 = vpop.f32.mrf.mxu0  ;;  %v945_v39 = vadd.f32 %v5389_v50, %v539_v55  ;;  %v545_v5 = vadd.f32 %v6900_v27, %v6899_v63  ;;  %v1730_v36 = vld [vmem:[%s6784_s3 + $0xe8] sm:$0xff]  ;;  %v1729_v27 = vld [vmem:[%s6784_s3 + $0xe0] sm:$0xff] }
 0x1c8   :  { %v1626_v33 = vmax.f32 %v1572_v19, %v1573_v48  ;;  %v1574_v41 = vadd.f32 %v1419_v37, %v1257_v62  ;;  %v6901_v19 = vld [vmem:[#allocation43_spill] sm:$0xff]  ;;  %v6902_v37 = vld [vmem:[#allocation45_spill] sm:$0xff] }
 0x1c9   :  { %v1421_v28 = vpop.f32.mrf.mxu0  ;;  %v1261_v48 = vadd.f32 %v5439_v24, %v6901_v19  ;;  %v1262_v50 = vadd.f32 %v5446_v59, %v945_v39  ;;  %v947_v62 = vadd.f32 %v6902_v37, %v545_v5  ;;  %v551_v24 = vadd.f32 %v6904_v11, %v6903_v42  ;;  %v1731_v59 = vld [vmem:[%s6784_s3 + $0xf0] sm:$0xff] }
 0x1ca   :  { %v1575_v21 = vadd.f32 %v1421_v28, %v1258_v52  ;;  %v1727_v37 = vld [vmem:[%s6784_s3 + $0xd0] sm:$0xff] }
 0x1cb   :  { %v1425_v12 = vpop.f32.mrf.mxu0  ;;  %v1264_v39 = vadd.f32 %v5463_v18, %v947_v62  ;;  %v6908_v18 = vld [vmem:[#allocation18_spill] sm:$0xff] }
 0x1cc   :  { %v1627_v56 = vmax.f32 %v1574_v41, %v1575_v21  ;;  %v1576_v3 = vadd.f32 %v1425_v12, %v1259_v43  ;;  %v6905_v43 = vld [vmem:[#allocation44_spill] sm:$0xff]  ;;  %v6910_v62 = vld [vmem:[#allocation46_spill] sm:$0xff] }
 0x1cd   :  { %v1427_v58 = vpop.f32.mrf.mxu0 }
 0x1ce   :  { %v1653_v60 = vmax.f32 %v1626_v33, %v1627_v56  ;;  %v1577_v61 = vadd.f32 %v1427_v58, %v1260_v51  ;;  %v5657_v33 = vpop.f32.mrf.mxu1  ;;  %v1263_v51 = vadd.f32 %v5453_v35, %v6905_v43  ;;  %v6906_v56 = vld [vmem:[#allocation47_spill] sm:$0xff]  ;;  %v1728_v35 = vld [vmem:[%s6784_s3 + $0xd8] sm:$0xff] }
 0x1cf   :  { %v1431_v2 = vpop.f32.mrf.mxu0  ;;  %v949_v58 = vadd.f32 %v6906_v56, %v551_v24  ;;  %v1726_v24 = vld [vmem:[%s6784_s3 + $0xc8] sm:$0xff]  ;;  %v6913_v56 = vld [vmem:[#allocation20_spill] sm:$0xff] }
 0x1d0   :  { %v5655_v52 = vadd.f32 %v5650_v10, %v1653_v60  ;;  %v1628_v34 = vmax.f32 %v1576_v3, %v1577_v61  ;;  %v1578_v41 = vadd.f32 %v1431_v2, %v1261_v48  ;;  %v5677_v5 = vpop.f32.mrf.mxu1  ;;  %v6907_v3 = vmov 0.0   ;;  %v6909_v61 = vld [vmem:[#allocation19_spill] sm:$0xff] }
 0x1d1   :  { %v1433_v28 = vpop.f32.mrf.mxu0  ;;  %v557_v19 = vadd.f32 %v6909_v61, %v6908_v18  ;;  %v6915_v18 = vld [vmem:[#allocation48_spill] sm:$0xff] }
 0x1d2   :  { %v1688_v55 = vmax.f32 %v5655_v52, 0.0  ;;  %v1579_v21 = vadd.f32 %v1433_v28, %v1262_v50  ;;  %v6911_v28 = vld [vmem:[#allocation59_spill] sm:$0xff]  ;;  %v5699_v43 = vpop.f32.mrf.mxu1  ;;  %v1267_v61 = vadd.f32 %v5488_v14, %v6915_v18  ;;  %v1717_v18 = vld [vmem:[%s6784_s3 + $0x80] sm:$0xff] }
 0x1d3   :  { %v1437_v12 = vpop.f32.mrf.mxu0  ;;  %v1265_v42 = vadd.f32 %v6911_v28, %v6910_v62  ;;  %v1721_v28 = vld [vmem:[%s6784_s3 + $0xa0] sm:$0xff] }
 0x1d4   :  { %v1629_v63 = vmax.f32 %v1578_v41, %v1579_v21  ;;  %1831 = vmatmul.mubr.f32.vlgmr.msra.gmra.mxu1 %v1688_v55  ;;  %v1580_v2 = vadd.f32 %v1437_v12, %v1263_v51  ;;  %v1266_v41 = vadd.f32 %v5479_v16, %v949_v58  ;;  %v6912_v21 = vld [vmem:[#allocation49_spill] sm:$0xff]  ;;  %v3513_v52 = vld [vmem:[%s6784_s3 + $0x2c0] sm:$0xff] }
 0x1d5   :  { %v1439_v60 = vpop.f32.mrf.mxu0  ;;  %1836 = vmatprep.mubr.f32.mxu1 %v6907_v3  ;;  %1892 = vmatpush1.msra.mxu1 %v1731_v59  ;;  %v6914_v16 = vld [vmem:[#allocation21_spill] sm:$0xff] }
 0x1d6   :  { %v1654_v48 = vmax.f32 %v1628_v34, %v1629_v63  ;;  %v1581_v50 = vadd.f32 %v1439_v60, %v1264_v39  ;;  %1893 = vmatprep.subr.mxu1 %v1730_v36  ;;  %v951_v34 = vadd.f32 %v6912_v21, %v557_v19  ;;  %v1725_v36 = vld [vmem:[%s6784_s3 + $0xc0] sm:$0xff]  ;;  %v1724_v39 = vld [vmem:[%s6784_s3 + $0xb8] sm:$0xff]  ;;  %v563_v58 = vadd.f32 %v6914_v16, %v6913_v56  ;;  %v1718_v16 = vld [vmem:[%s6784_s3 + $0x88] sm:$0xff] }
 0x1d7   :  { %v1443_v11 = vpop.f32.mrf.mxu0  ;;  %1894 = vmatpush1.msra.mxu1 %v1729_v27 }
 0x1d8   :  { %v1675_v59 = vadd.f32 %v5650_v10, %v1654_v48  ;;  %v1630_v12 = vmax.f32 %v1580_v2, %v1581_v50  ;;  %1895 = vmatprep.subr.mxu1 %v1728_v35  ;;  %v1582_v27 = vadd.f32 %v1443_v11, %v1265_v42  ;;  %v1723_v35 = vld [vmem:[%s6784_s3 + $0xb0] sm:$0xff]  ;;  %v1722_v48 = vld [vmem:[%s6784_s3 + $0xa8] sm:$0xff]  ;;  %v1268_v2 = vadd.f32 %v5497_v45, %v951_v34  ;;  %v5722_v42 = vpop.f32.mrf.mxu1  ;;  %v1720_v45 = vld [vmem:[%s6784_s3 + $0x98] sm:$0xff] }
 0x1d9   :  { %v1445_v51 = vpop.f32.mrf.mxu0  ;;  %1896 = vmatpush1.msra.mxu1 %v1727_v37  ;;  %v6916_v50 = vld [vmem:[#allocation51_spill] sm:$0xff]  ;;  %v6917_v11 = vld [vmem:[#allocation22_spill] sm:$0xff] }
 0x1da   :  { %v5706_v63 = vmax.f32 %v1675_v59, 0.0  ;;  %v1583_v60 = vadd.f32 %v1445_v51, %v1266_v41  ;;  %1897 = vmatprep.subr.mxu1 %v1726_v24  ;;  %v953_v37 = vadd.f32 %v6916_v50, %v563_v58  ;;  %v6918_v24 = vld [vmem:[#allocation23_spill] sm:$0xff]  ;;  %v6919_v51 = vld [vmem:[#allocation50_spill] sm:$0xff] }
 0x1db   :  { %v1449_v19 = vpop.f32.mrf.mxu0  ;;  %1898 = vmatpush1.msra.mxu1 %v1725_v36  ;;  %v569_v41 = vadd.f32 %v6918_v24, %v6917_v11  ;;  %v1719_v36 = vld [vmem:[%s6784_s3 + $0x90] sm:$0xff]  ;;  %v6924_v24 = vld [vmem:[#allocation55_spill] sm:$0xff] }
 0x1dc   :  { %v1631_v62 = vmax.f32 %v1582_v27, %v1583_v60  ;;  %1837 = vmatmul.mubr.f32.gmra.mxu1 %v5706_v63  ;;  %1899 = vmatprep.subr.mxu1 %v1724_v39  ;;  %v1584_v34 = vadd.f32 %v1449_v19, %v1267_v61  ;;  %v1269_v39 = vadd.f32 %v5506_v7, %v6919_v51  ;;  %v6920_v27 = vld [vmem:[#allocation53_spill] sm:$0xff]  ;;  %v5744_v61 = vpop.f32.mrf.mxu1  ;;  %v6921_v19 = vld [vmem:[#allocation24_spill] sm:$0xff]  ;;  %v6926_v51 = vld [vmem:[#allocation27_spill] sm:$0xff] }
 0x1dd   :  { %v1451_v14 = vpop.f32.mrf.mxu0  ;;  %1842 = vmatprep.mubr.f32.mxu1 %v6907_v3  ;;  %1900 = vmatpush1.msra.mxu1 %v1723_v35  ;;  %v1270_v58 = vadd.f32 %v5515_v44, %v953_v37 }
 0x1de   :  { %v1655_v21 = vmax.f32 %v1630_v12, %v1631_v62  ;;  %v1585_v59 = vadd.f32 %v1451_v14, %v1268_v2  ;;  %1901 = vmatprep.subr.mxu1 %v1722_v48  ;;  %v955_v12 = vadd.f32 %v6920_v27, %v569_v41  ;;  %v6922_v48 = vld [vmem:[#allocation25_spill] sm:$0xff]  ;;  %v6923_v62 = vld [vmem:[#allocation52_spill] sm:$0xff]  ;;  %v1713_v27 = vld [vmem:[%s6784_s3 + $0x60] sm:$0xff] }
 0x1df   :  { %v1455_v56 = vpop.f32.mrf.mxu0  ;;  %1902 = vmatpush1.msra.mxu1 %v1721_v28  ;;  %v575_v2 = vadd.f32 %v6922_v48, %v6921_v19  ;;  %v1271_v28 = vadd.f32 %v5524_v57, %v6923_v62  ;;  %v5762_v57 = vpop.f32.mrf.mxu1  ;;  %v6928_v48 = vld [vmem:[#allocation57_spill] sm:$0xff] }
 0x1e0   :  { %v1676_v60 = vadd.f32 %v5650_v10, %v1655_v21  ;;  %v1632_v35 = vmax.f32 %v1584_v34, %v1585_v59  ;;  %1903 = vmatprep.subr.mxu1 %v1720_v45  ;;  %v1586_v44 = vadd.f32 %v1455_v56, %v1269_v39  ;;  %v1716_v45 = vld [vmem:[%s6784_s3 + $0x78] sm:$0xff]  ;;  %v1272_v11 = vadd.f32 %v5533_v6, %v955_v12  ;;  %v1715_v34 = vld [vmem:[%s6784_s3 + $0x70] sm:$0xff]  ;;  %v1714_v6 = vld [vmem:[%s6784_s3 + $0x68] sm:$0xff] }
 0x1e1   :  { %v1457_v7 = vpop.f32.mrf.mxu0  ;;  %1904 = vmatpush1.msra.mxu1 %v1719_v36  ;;  %v957_v41 = vadd.f32 %v6924_v24, %v575_v2  ;;  %v6925_v36 = vld [vmem:[#allocation26_spill] sm:$0xff]  ;;  %v5785_v62 = vpop.f32.mrf.mxu1 }
 0x1e2   :  { %v5748_v50 = vmax.f32 %v1676_v60, 0.0  ;;  %v1587_v37 = vadd.f32 %v1457_v7, %v1270_v58  ;;  %1905 = vmatprep.subr.mxu1 %v1718_v16  ;;  %v581_v39 = vadd.f32 %v6926_v51, %v6925_v36  ;;  %v6927_v12 = vld [vmem:[#allocation54_spill] sm:$0xff]  ;;  %v1712_v7 = vld [vmem:[%s6784_s3 + $0x58] sm:$0xff]  ;;  %v6932_v36 = vld [vmem:[#allocation60_spill] sm:$0xff] }
 0x1e3   :  { %v1461_v14 = vpop.f32.mrf.mxu0  ;;  %1906 = vmatpush1.msra.mxu1 %v1717_v18  ;;  %v1273_v60 = vadd.f32 %v5542_v9, %v6927_v12  ;;  %v1274_v19 = vadd.f32 %v5551_v38, %v957_v41  ;;  %v6931_v41 = vld [vmem:[#allocation56_spill] sm:$0xff] }
 0x1e4   :  { %v1633_v21 = vmax.f32 %v1586_v44, %v1587_v37  ;;  %1843 = vmatmul.mubr.f32.gmra.mxu1 %v5748_v50  ;;  %2292 = vmatmul.mubr.f32.vlgmr.msra.gmra.mxu0 %v5748_v50  ;;  %v1588_v16 = vadd.f32 %v1461_v14, %v1271_v28  ;;  %v1711_v37 = vld [vmem:[%s6784_s3 + $0x50] sm:$0xff]  ;;  %v6930_v14 = vld [vmem:[#allocation29_spill] sm:$0xff] }
 0x1e5   :  { %v1463_v59 = vpop.f32.mrf.mxu0  ;;  %1848 = vmatprep.mubr.f32.mxu1 %v6907_v3  ;;  %2297 = vmatprep.mubr.f32.mxu0 %v6907_v3  ;;  %v6929_v28 = vld [vmem:[#allocation28_spill] sm:$0xff] }
 0x1e6   :  { %v1656_v56 = vmax.f32 %v1632_v35, %v1633_v21  ;;  %v1589_v58 = vadd.f32 %v1463_v59, %v1272_v11  ;;  %1907 = vmatprep.subr.mxu1 %v1716_v45  ;;  %v959_v35 = vadd.f32 %v6928_v48, %v581_v39  ;;  %v587_v45 = vadd.f32 %v6930_v14, %v6929_v28  ;;  %v1710_v59 = vld [vmem:[%s6784_s3 + $0x48] sm:$0xff] }
 0x1e7   :  { %v1467_v18 = vpop.f32.mrf.mxu0  ;;  %1908 = vmatpush1.msra.mxu1 %v1715_v34  ;;  %v1275_v21 = vadd.f32 %v5560_v49, %v6931_v41  ;;  %v5803_v49 = vpop.f32.mrf.mxu1  ;;  %v1280_v41 = vadd.f32 %v5608_v31, %v5481_v30  ;;  %v1702_v30 = vld [vmem:[%s6784_s3 + $0x8] sm:$0xff] }
 0x1e8   :  { %v1677_v2 = vadd.f32 %v5650_v10, %v1656_v56  ;;  %v1634_v44 = vmax.f32 %v1588_v16, %v1589_v58  ;;  %1909 = vmatprep.subr.mxu1 %v1714_v6  ;;  %v1590_v38 = vadd.f32 %v1467_v18, %v1273_v60  ;;  %v1276_v6 = vadd.f32 %v5569_v13, %v959_v35  ;;  %v1709_v56 = vld [vmem:[%s6784_s3 + $0x40] sm:$0xff]  ;;  %v1708_v13 = vld [vmem:[%s6784_s3 + $0x38] sm:$0xff]  ;;  %v1707_v60 = vld [vmem:[%s6784_s3 + $0x30] sm:$0xff] }
 0x1e9   :  { %v1469_v9 = vpop.f32.mrf.mxu0  ;;  %1910 = vmatpush1.msra.mxu1 %v1713_v27  ;;  %v961_v51 = vadd.f32 %v6932_v36, %v587_v45  ;;  %v1701_v36 = vld [vmem:[%s6784_s3] sm:$0xff] }
 0x1ea   :  { %v5789_v11 = vmax.f32 %v1677_v2, 0.0  ;;  %v1591_v24 = vadd.f32 %v1469_v9, %v1274_v19  ;;  %1911 = vmatprep.subr.mxu1 %v1712_v7  ;;  %v1706_v7 = vld [vmem:[%s6784_s3 + $0x28] sm:$0xff]  ;;  %v6933_v19 = vld [vmem:[#allocation58_spill] sm:$0xff]  ;;  %v5823_v9 = vpop.f32.mrf.mxu1 }
 0x1eb   :  { %v1473_v34 = vpop.f32.mrf.mxu0  ;;  %1912 = vmatpush1.msra.mxu1 %v1711_v37  ;;  %v1277_v48 = vadd.f32 %v5578_v46, %v6933_v19  ;;  %v1278_v35 = vadd.f32 %v5587_v20, %v961_v51  ;;  %v1705_v37 = vld [vmem:[%s6784_s3 + $0x20] sm:$0xff]  ;;  %v1704_v20 = vld [vmem:[%s6784_s3 + $0x18] sm:$0xff] }
 0x1ec   :  { %v1635_v39 = vmax.f32 %v1590_v38, %v1591_v24  ;;  %1849 = vmatmul.mubr.f32.gmra.mxu1 %v5789_v11  ;;  %2298 = vmatmul.mubr.f32.gmra.mxu0 %v5789_v11  ;;  %v1592_v27 = vadd.f32 %v1473_v34, %v1275_v21  ;;  %v1279_v24 = vadd.f32 %v5599_v47, %v5477_v1  ;;  %v1703_v34 = vld [vmem:[%s6784_s3 + $0x10] sm:$0xff] }
 0x1ed   :  { %v1475_v16 = vpop.f32.mrf.mxu0  ;;  %1854 = vmatprep.mubr.f32.mxu1 %v6907_v3  ;;  %2303 = vmatprep.mubr.f32.mxu0 %v6907_v3 }
 0x1ee   :  { %v1657_v58 = vmax.f32 %v1634_v44, %v1635_v39  ;;  %v1593_v12 = vadd.f32 %v1475_v16, %v1276_v6  ;;  %1913 = vmatprep.subr.mxu1 %v1710_v59  ;;  %v5839_v59 = vpop.f32.mrf.mxu1  ;;  %v3520_v39 = vld [vmem:[%s6784_s3 + $0x2f8] sm:$0xff]  ;;  %v1282_v16 = vadd.f32 %v5623_v40, %v5490_v17  ;;  %v1284_v17 = vadd.f32 %v5641_v25, %v5499_v32 }
 0x1ef   :  { %v1479_v18 = vpop.f32.mrf.mxu0  ;;  %1914 = vmatpush1.msra.mxu1 %v1709_v56  ;;  %v1281_v56 = vadd.f32 %v5615_v53, %v5486_v4  ;;  %v1283_v4 = vadd.f32 %v5633_v8, %v5495_v23  ;;  %v1285_v23 = vadd.f32 %v5657_v33, %v5504_v26  ;;  %v1286_v32 = vadd.f32 %v5677_v5, %v5508_v0 }
 0x1f0   :  { %v1678_v2 = vadd.f32 %v5650_v10, %v1657_v58  ;;  %v1636_v44 = vmax.f32 %v1592_v27, %v1593_v12  ;;  %1915 = vmatprep.subr.mxu1 %v1708_v13  ;;  %v1594_v45 = vadd.f32 %v1479_v18, %v1277_v48  ;;  %v5857_v27 = vpop.f32.mrf.mxu1  ;;  %v1288_v26 = vadd.f32 %v5722_v42, %v5517_v15 }
 0x1f1   :  { %v1481_v28 = vpop.f32.mrf.mxu0  ;;  %1916 = vmatpush1.msra.mxu1 %v1707_v60 }
 0x1f2   :  { %v5825_v14 = vmax.f32 %v1678_v2, 0.0  ;;  %v1595_v38 = vadd.f32 %v1481_v28, %v1278_v35  ;;  %1917 = vmatprep.subr.mxu1 %v1706_v7  ;;  %v5867_v40 = vpop.f32.mrf.mxu1 }
 0x1f3   :  { %v1485_v46 = vpop.f32.mrf.mxu0  ;;  %1918 = vmatpush1.msra.mxu1 %v1705_v37 }
 0x1f4   :  { %v1637_v21 = vmax.f32 %v1594_v45, %v1595_v38  ;;  %1855 = vmatmul.mubr.f32.gmra.mxu1 %v5825_v14  ;;  %2304 = vmatmul.mubr.f32.gmra.mxu0 %v5825_v14  ;;  %v1596_v47 = vadd.f32 %v1485_v46, %v1279_v24  ;;  %v5876_v28 = vpop.f32.mrf.mxu1 }
 0x1f5   :  { %v1487_v6 = vpop.f32.mrf.mxu0  ;;  %1860 = vmatprep.mubr.f32.mxu1 %v6907_v3  ;;  %2309 = vmatprep.mubr.f32.mxu0 %v6907_v3 }
 0x1f6   :  { %v1658_v1 = vmax.f32 %v1636_v44, %v1637_v21  ;;  %v1597_v31 = vadd.f32 %v1487_v6, %v1280_v41  ;;  %1919 = vmatprep.subr.mxu1 %v1704_v20  ;;  %v1287_v41 = vadd.f32 %v5699_v43, %v5513_v29  ;;  %v1224_v0 = vpop.f32.mrf.mxu1  ;;  %v6935_v43 = vld [vmem:[#allocation62_spill] sm:$0xff] }
 0x1f7   :  { %v1491_v51 = vpop.f32.mrf.mxu0  ;;  %1920 = vmatpush1.msra.mxu1 %v1703_v34  ;;  %v1290_v15 = vadd.f32 %v5762_v57, %v6935_v43 }
 0x1f8   :  { %v1679_v13 = vadd.f32 %v5650_v10, %v1658_v1  ;;  %v1638_v58 = vmax.f32 %v1596_v47, %v1597_v31  ;;  %1921 = vmatprep.subr.mxu1 %v1702_v30  ;;  %v1598_v18 = vadd.f32 %v1491_v51, %v1281_v56  ;;  %v6934_v1 = vld [vmem:[#allocation61_spill] sm:$0xff]  ;;  %v1228_v31 = vpop.f32.mrf.mxu1 }
 0x1f9   :  { %v1493_v12 = vpop.f32.mrf.mxu0  ;;  %1922 = vmatpush1.msra.mxu1 %v1701_v36  ;;  %v1289_v29 = vadd.f32 %v5744_v61, %v6934_v1 }
 0x1fa   :  { %v5859_v60 = vmax.f32 %v1679_v13, 0.0  ;;  %v1599_v7 = vadd.f32 %v1493_v12, %v1282_v16  ;;  %2049 = vmatprep.subr.mxu1 %v3520_v39  ;;  %v6936_v13 = vld [vmem:[#allocation63_spill] sm:$0xff]  ;;  %v6937_v12 = vld [vmem:[#allocation64_spill] sm:$0xff]  ;;  %v1230_v57 = vpop.f32.mrf.mxu1 }
 0x1fb   :  { %v1497_v19 = vpop.f32.mrf.mxu0 }
 0x1fc   :  { %v1639_v53 = vmax.f32 %v1598_v18, %v1599_v7  ;;  %1861 = vmatmul.mubr.f32.gmra.mxu1 %v5859_v60  ;;  %2310 = vmatmul.mubr.f32.gmra.mxu0 %v5859_v60  ;;  %v1600_v2 = vadd.f32 %v1497_v19, %v1283_v4  ;;  %v1292_v18 = vadd.f32 %v5803_v49, %v6937_v12 }
 0x1fd   :  { %v1499_v48 = vpop.f32.mrf.mxu0  ;;  %1866 = vmatprep.mubr.f32.mxu1 %v6907_v3  ;;  %2315 = vmatprep.mubr.f32.mxu0 %v6907_v3 }
 0x1fe   :  { %v1659_v35 = vmax.f32 %v1638_v58, %v1639_v53  ;;  %v1601_v44 = vadd.f32 %v1499_v48, %v1284_v17  ;;  %v1291_v58 = vadd.f32 %v5785_v62, %v6936_v13  ;;  %v6938_v48 = vld [vmem:[#allocation65_spill] sm:$0xff] }
 0x1ff   :  { %v1503_v37 = vpop.f32.mrf.mxu0  ;;  %v1293_v62 = vadd.f32 %v5823_v9, %v6938_v48  ;;  %v6947_v48 = vld [vmem:[#allocation35_spill] sm:$0xff] }
 0x200   :  { %v1680_v8 = vadd.f32 %v5650_v10, %v1659_v35  ;;  %v1640_v25 = vmax.f32 %v1600_v2, %v1601_v44  ;;  %v1602_v46 = vadd.f32 %v1503_v37, %v1285_v23  ;;  %v6939_v35 = vld [vmem:[#allocation66_spill] sm:$0xff]  ;;  %v1234_v37 = vpop.f32.mrf.mxu1 }
 0x201   :  { %v1505_v45 = vpop.f32.mrf.mxu0  ;;  %v1294_v49 = vadd.f32 %v5839_v59, %v6939_v35 }
 0x202   :  { %v5878_v38 = vmax.f32 %v1680_v8, 0.0  ;;  %v1603_v20 = vadd.f32 %v1505_v45, %v1286_v32  ;;  %v1236_v59 = vpop.f32.mrf.mxu1 }
 0x203   :  { %v1509_v24 = vpop.f32.mrf.mxu0 }
 0x204   :  { %v1641_v33 = vmax.f32 %v1602_v46, %v1603_v20  ;;  %1867 = vmatmul.mubr.f32.gmra.mxu1 %v5878_v38  ;;  %2316 = vmatmul.mubr.f32.gmra.mxu0 %v5878_v38  ;;  %v1604_v34 = vadd.f32 %v1509_v24, %v1287_v41  ;;  %v6940_v46 = vld [vmem:[#allocation67_spill] sm:$0xff]  ;;  %v6941_v24 = vld [vmem:[#allocation68_spill] sm:$0xff]  ;;  %v1240_v43 = vpop.f32.mrf.mxu1 }
 0x205   :  { %v1511_v5 = vpop.f32.mrf.mxu0  ;;  %1872 = vmatprep.mubr.f32.mxu1 %v6907_v3  ;;  %2321 = vmatprep.mubr.f32.mxu0 %v6907_v3  ;;  %v1295_v20 = vadd.f32 %v5857_v27, %v6940_v46  ;;  %v1296_v41 = vadd.f32 %v5867_v40, %v6941_v24  ;;  %v6948_v24 = vld [vmem:[#allocation33_spill] sm:$0xff] }
 0x206   :  { %v1660_v21 = vmax.f32 %v1640_v25, %v1641_v33  ;;  %v1605_v6 = vadd.f32 %v1511_v5, %v1288_v26 }
 0x207   :  { %v1515_v30 = vpop.f32.mrf.mxu0 }
 0x208   :  { %v1681_v42 = vadd.f32 %v5650_v10, %v1660_v21  ;;  %v1642_v47 = vmax.f32 %v1604_v34, %v1605_v6  ;;  %v1606_v39 = vadd.f32 %v1515_v30, %v1289_v29  ;;  %v6942_v6 = vld [vmem:[#allocation31_spill] sm:$0xff]  ;;  %v6943_v30 = vld [vmem:[#allocation30_spill] sm:$0xff] }
 0x209   :  { %v1517_v36 = vpop.f32.mrf.mxu0  ;;  %v1297_v27 = vadd.f32 %v5876_v28, %v6942_v6  ;;  %v1298_v40 = vadd.f32 %v1224_v0, %v6943_v30  ;;  %v1242_v0 = vpop.f32.mrf.mxu1  ;;  %v3512_v30 = vld [vmem:[%s6784_s3 + $0x2b8] sm:$0xff] }
 0x20a   :  { %v5893_v51 = vmax.f32 %v1681_v42, 0.0  ;;  %v1607_v56 = vadd.f32 %v1517_v36, %v1290_v15  ;;  %v1673_v42 = vadd.f32 %v5650_v10, %v5627_v54 }
 0x20b   :  { %v1521_v16 = vpop.f32.mrf.mxu0 }
 0x20c   :  { %v1643_v61 = vmax.f32 %v1606_v39, %v1607_v56  ;;  %1873 = vmatmul.mubr.f32.gmra.mxu1 %v5893_v51  ;;  %2322 = vmatmul.mubr.f32.gmra.mxu0 %v5893_v51  ;;  %v1608_v4 = vadd.f32 %v1521_v16, %v1291_v58  ;;  %v6944_v16 = vld [vmem:[#allocation32_spill] sm:$0xff]  ;;  %v6945_v58 = vld [vmem:[#allocation69_spill] sm:$0xff]  ;;  %v1687_v54 = vmax.f32 %v1673_v42, 0.0 }
 0x20d   :  { %v1523_v7 = vpop.f32.mrf.mxu0  ;;  %1878 = vmatprep.mubr.f32.mxu1 %v6907_v3  ;;  %2327 = vmatprep.mubr.f32.mxu0 %v6907_v3  ;;  %v1299_v13 = vadd.f32 %v1228_v31, %v6944_v16  ;;  %v1300_v12 = vadd.f32 %v1230_v57, %v6945_v58  ;;  %v3519_v31 = vld [vmem:[%s6784_s3 + $0x2f0] sm:$0xff]  ;;  %v3508_v58 = vld [vmem:[%s6784_s3 + $0x298] sm:$0xff] }
 0x20e   :  { %v1661_v19 = vmax.f32 %v1642_v47, %v1643_v61  ;;  %v1609_v17 = vadd.f32 %v1523_v7, %v1292_v18  ;;  %v3511_v42 = vld [vmem:[%s6784_s3 + $0x2b0] sm:$0xff] }
 0x20f   :  { %v1527_v53 = vpop.f32.mrf.mxu0 }
 0x210   :  { %v1682_v2 = vadd.f32 %v5650_v10, %v1661_v19  ;;  %v1644_v44 = vmax.f32 %v1608_v4, %v1609_v17  ;;  %v1610_v8 = vadd.f32 %v1527_v53, %v1293_v62  ;;  %v3518_v4 = vld [vmem:[%s6784_s3 + $0x2e8] sm:$0xff]  ;;  %v6946_v17 = vld [vmem:[#allocation34_spill] sm:$0xff]  ;;  %v1302_v62 = vadd.f32 %v1236_v59, %v6947_v48  ;;  %v3495_v48 = vld [vmem:[%s6784_s3 + $0x230] sm:$0xff] }
 0x211   :  { %v1529_v23 = vpop.f32.mrf.mxu0  ;;  %v1301_v53 = vadd.f32 %v1234_v37, %v6946_v17  ;;  %v3516_v37 = vld [vmem:[%s6784_s3 + $0x2d8] sm:$0xff]  ;;  %v3497_v17 = vld [vmem:[%s6784_s3 + $0x240] sm:$0xff] }
 0x212   :  { %v5908_v32 = vmax.f32 %v1682_v2, 0.0  ;;  %v1611_v25 = vadd.f32 %v1529_v23, %v1294_v49  ;;  %v3517_v2 = vld [vmem:[%s6784_s3 + $0x2e0] sm:$0xff] }
 0x213   :  { %v1533_v45 = vpop.f32.mrf.mxu0 }
 0x214   :  { %v1645_v9 = vmax.f32 %v1610_v8, %v1611_v25  ;;  %1879 = vmatmul.mubr.f32.gmra.mxu1 %v5908_v32  ;;  %2328 = vmatmul.mubr.f32.gmra.mxu0 %v5908_v32  ;;  %v1612_v5 = vadd.f32 %v1533_v45, %v1295_v20  ;;  %v3515_v20 = vld [vmem:[%s6784_s3 + $0x2d0] sm:$0xff] }
 0x215   :  { %v1535_v26 = vpop.f32.mrf.mxu0  ;;  %1884 = vmatprep.mubr.f32.mxu1 %v6907_v3  ;;  %2333 = vmatprep.mubr.f32.mxu0 %v6907_v3 }
 0x216   :  { %v1662_v33 = vmax.f32 %v1644_v44, %v1645_v9  ;;  %v1613_v21 = vadd.f32 %v1535_v26, %v1296_v41  ;;  %v1246_v44 = vpop.f32.mrf.mxu1  ;;  %v1303_v41 = vadd.f32 %v1240_v43, %v6948_v24  ;;  %v6949_v9 = vld [vmem:[#allocation37_spill] sm:$0xff]  ;;  %v3579_v24 = vld [vmem:[%s6784_s3 + $0x4d0] sm:$0xff] }
 0x217   :  { %v1539_v34 = vpop.f32.mrf.mxu0  ;;  %v1304_v59 = vadd.f32 %v1242_v0, %v6949_v9  ;;  %v3506_v0 = vld [vmem:[%s6784_s3 + $0x288] sm:$0xff]  ;;  %v3576_v9 = vld [vmem:[%s6784_s3 + $0x4b8] sm:$0xff] }
 0x218   :  { %v1683_v1 = vadd.f32 %v5650_v10, %v1662_v33  ;;  %v1646_v29 = vmax.f32 %v1612_v5, %v1613_v21  ;;  %v1614_v36 = vadd.f32 %v1539_v34, %v1297_v27  ;;  %v3514_v33 = vld [vmem:[%s6784_s3 + $0x2c8] sm:$0xff]  ;;  %v1248_v5 = vpop.f32.mrf.mxu1 }
 0x219   :  { %v1541_v15 = vpop.f32.mrf.mxu0 }
 0x21a   :  { %v5924_v47 = vmax.f32 %v1683_v1, 0.0  ;;  %v1615_v39 = vadd.f32 %v1541_v15, %v1298_v40  ;;  %v6950_v40 = vld [vmem:[#allocation38_spill] sm:$0xff] }
 0x21b   :  { %v1545_v56 = vpop.f32.mrf.mxu0  ;;  %v1305_v1 = vadd.f32 %v1246_v44, %v6950_v40  ;;  %v3490_v44 = vld [vmem:[%s6784_s3 + $0x208] sm:$0xff]  ;;  %v3563_v40 = vld [vmem:[%s6784_s3 + $0x450] sm:$0xff] }
 0x21c   :  { %v1647_v28 = vmax.f32 %v1614_v36, %v1615_v39  ;;  %1885 = vmatmul.mubr.f32.gmra.mxu1 %v5924_v47  ;;  %2334 = vmatmul.mubr.f32.gmra.mxu0 %v5924_v47  ;;  %v1616_v7 = vadd.f32 %v1545_v56, %v1299_v13 }
 0x21d   :  { %v1547_v18 = vpop.f32.mrf.mxu0  ;;  %1955 = vmatprep.mubr.f32.mxu1 %v6907_v3  ;;  %2339 = vmatprep.mubr.f32.mxu0 %v6907_v3 }
 0x21e   :  { %v1663_v61 = vmax.f32 %v1646_v29, %v1647_v28  ;;  %v1617_v19 = vadd.f32 %v1547_v18, %v1300_v12  ;;  %v1306_v29 = vadd.f32 %v1248_v5, %v5603_v22  ;;  %v3510_v22 = vld [vmem:[%s6784_s3 + $0x2a8] sm:$0xff]  ;;  %v3507_v28 = vld [vmem:[%s6784_s3 + $0x290] sm:$0xff]  ;;  %v3505_v18 = vld [vmem:[%s6784_s3 + $0x280] sm:$0xff] }
 0x21f   :  { %v1551_v57 = vpop.f32.mrf.mxu0  ;;  %v3571_v5 = vld [vmem:[%s6784_s3 + $0x490] sm:$0xff] }
 0x220   :  { %v1684_v35 = vadd.f32 %v5650_v10, %v1663_v61  ;;  %v1648_v49 = vmax.f32 %v1616_v7, %v1617_v19  ;;  %1956 = vmatmul.mubr.f32.vlgmr.msra.gmra.mxu1 %v1687_v54  ;;  %v1618_v25 = vadd.f32 %v1551_v57, %v1301_v53  ;;  %v3504_v54 = vld [vmem:[%s6784_s3 + $0x278] sm:$0xff]  ;;  %v3503_v61 = vld [vmem:[%s6784_s3 + $0x270] sm:$0xff]  ;;  %v3502_v7 = vld [vmem:[%s6784_s3 + $0x268] sm:$0xff] }
 0x221   :  { %v1553_v23 = vpop.f32.mrf.mxu0  ;;  %2050 = vmatpush1.msra.mxu1 %v3519_v31  ;;  %1961 = vmatprep.mubr.f32.mxu1 %v6907_v3  ;;  %v3501_v19 = vld [vmem:[%s6784_s3 + $0x260] sm:$0xff]  ;;  %v3500_v31 = vld [vmem:[%s6784_s3 + $0x258] sm:$0xff]  ;;  %v3499_v57 = vld [vmem:[%s6784_s3 + $0x250] sm:$0xff] }
 0x222   :  { %v5945_v8 = vmax.f32 %v1684_v35, 0.0  ;;  %v1619_v45 = vadd.f32 %v1553_v23, %v1302_v62  ;;  %2051 = vmatprep.subr.mxu1 %v3518_v4  ;;  %v3498_v4 = vld [vmem:[%s6784_s3 + $0x248] sm:$0xff]  ;;  %v3496_v53 = vld [vmem:[%s6784_s3 + $0x238] sm:$0xff]  ;;  %v3493_v35 = vld [vmem:[%s6784_s3 + $0x220] sm:$0xff] }
 0x223   :  { %v1557_v46 = vpop.f32.mrf.mxu0  ;;  %2052 = vmatpush1.msra.mxu1 %v3517_v2  ;;  %v3494_v62 = vld [vmem:[%s6784_s3 + $0x228] sm:$0xff]  ;;  %v3491_v2 = vld [vmem:[%s6784_s3 + $0x210] sm:$0xff]  ;;  %v3489_v23 = vld [vmem:[%s6784_s3 + $0x200] sm:$0xff] }
 0x224   :  { %v1649_v26 = vmax.f32 %v1618_v25, %v1619_v45  ;;  %1962 = vmatmul.mubr.f32.gmra.mxu1 %v1688_v55  ;;  %2340 = vmatmul.mubr.f32.gmra.mxu0 %v5945_v8  ;;  %v1620_v6 = vadd.f32 %v1557_v46, %v1303_v41  ;;  %v3584_v25 = vld [vmem:[%s6784_s3 + $0x4f8] sm:$0xff]  ;;  %v3583_v45 = vld [vmem:[%s6784_s3 + $0x4f0] sm:$0xff]  ;;  %v3581_v46 = vld [vmem:[%s6784_s3 + $0x4e0] sm:$0xff] }
 0x225   :  { %v1559_v21 = vpop.f32.mrf.mxu0  ;;  %2053 = vmatprep.subr.mxu1 %v3516_v37  ;;  %1967 = vmatprep.mubr.f32.mxu1 %v6907_v3  ;;  %v3582_v37 = vld [vmem:[%s6784_s3 + $0x4e8] sm:$0xff]  ;;  %v3577_v41 = vld [vmem:[%s6784_s3 + $0x4c0] sm:$0xff] }
 0x226   :  { %v1664_v34 = vmax.f32 %v1648_v49, %v1649_v26  ;;  %v1621_v27 = vadd.f32 %v1559_v21, %v1304_v59  ;;  %2054 = vmatpush1.msra.mxu1 %v3515_v20  ;;  %2345 = vmatprep.mubr.f32.mxu0 %v6907_v3  ;;  %v3492_v49 = vld [vmem:[%s6784_s3 + $0x218] sm:$0xff]  ;;  %v3575_v59 = vld [vmem:[%s6784_s3 + $0x4b0] sm:$0xff]  ;;  %v3573_v26 = vld [vmem:[%s6784_s3 + $0x4a0] sm:$0xff] }
 0x227   :  { %v1563_v55 = vpop.f32.mrf.mxu0  ;;  %2055 = vmatprep.subr.mxu1 %v3514_v33  ;;  %v3580_v20 = vld [vmem:[%s6784_s3 + $0x4d8] sm:$0xff]  ;;  %v3570_v21 = vld [vmem:[%s6784_s3 + $0x488] sm:$0xff] }
 0x228   :  { %v5972_v43 = vadd.f32 %v5650_v10, %v1664_v34  ;;  %v1650_v15 = vmax.f32 %v1620_v6, %v1621_v27  ;;  %1968 = vmatmul.mubr.f32.gmra.mxu1 %v5706_v63  ;;  %v1622_v56 = vadd.f32 %v1563_v55, %v1305_v1  ;;  %v3509_v10 = vld [vmem:[%s6784_s3 + $0x2a0] sm:$0xff]  ;;  %v3572_v33 = vld [vmem:[%s6784_s3 + $0x498] sm:$0xff]  ;;  %v3567_v27 = vld [vmem:[%s6784_s3 + $0x470] sm:$0xff] }
 0x229   :  { %v1565_v36 = vpop.f32.mrf.mxu0  ;;  %2056 = vmatpush1.msra.mxu1 %v3513_v52  ;;  %1973 = vmatprep.mubr.f32.mxu1 %v6907_v3  ;;  %v3569_v34 = vld [vmem:[%s6784_s3 + $0x480] sm:$0xff]  ;;  %v3568_v6 = vld [vmem:[%s6784_s3 + $0x478] sm:$0xff]  ;;  %v3566_v52 = vld [vmem:[%s6784_s3 + $0x468] sm:$0xff] }
 0x22a   :  { %v1699_v39 = vmax.f32 %v5972_v43, 0.0  ;;  %v1623_v16 = vadd.f32 %v1565_v36, %v1306_v29  ;;  %2057 = vmatprep.subr.mxu1 %v3512_v30  ;;  %v3565_v55 = vld [vmem:[%s6784_s3 + $0x460] sm:$0xff]  ;;  %v3564_v30 = vld [vmem:[%s6784_s3 + $0x458] sm:$0xff]  ;;  %v3562_v1 = vld [vmem:[%s6784_s3 + $0x448] sm:$0xff] }
 0x22b   :  { %2058 = vmatpush1.msra.mxu1 %v3511_v42  ;;  %v3561_v29 = vld [vmem:[%s6784_s3 + $0x440] sm:$0xff]  ;;  %v3559_v42 = vld [vmem:[%s6784_s3 + $0x430] sm:$0xff]  ;;  %v3558_v36 = vld [vmem:[%s6784_s3 + $0x428] sm:$0xff] }
 0x22c   :  { %v1651_v13 = vmax.f32 %v1622_v56, %v1623_v16  ;;  %1974 = vmatmul.mubr.f32.gmra.mxu1 %v5748_v50  ;;  %2346 = vmatmul.mubr.f32.gmra.mxu0 %v1699_v39  ;;  %v3557_v56 = vld [vmem:[%s6784_s3 + $0x420] sm:$0xff]  ;;  %v3556_v16 = vld [vmem:[%s6784_s3 + $0x418] sm:$0xff] }
 0x22d   :  { %2059 = vmatprep.subr.mxu1 %v3510_v22  ;;  %1979 = vmatprep.mubr.f32.mxu1 %v6907_v3  ;;  %v3555_v22 = vld [vmem:[%s6784_s3 + $0x410] sm:$0xff] }
 0x22e   :  { %v5993_v12 = vmax.f32 %v1650_v15, %v1651_v13  ;;  %2060 = vmatpush1.msra.mxu1 %v3509_v10  ;;  %v3560_v15 = vld [vmem:[%s6784_s3 + $0x438] sm:$0xff]  ;;  %v3554_v10 = vld [vmem:[%s6784_s3 + $0x408] sm:$0xff]  ;;  %v3553_v13 = vld [vmem:[%s6784_s3 + $0x400] sm:$0xff]  ;;  %3804 = vmatprep.mubr.msk.f32.mxu0 %vm4021_vm1, %v6907_v3 }
 0x22f   :  { %2061 = vmatprep.subr.mxu1 %v3508_v58  ;;  %v3599_v58 = vld [vmem:[%s6786_s5 + $0xe8] sm:$0xff] }
 0x230   :  { %1980 = vmatmul.mubr.f32.gmra.mxu1 %v5789_v11 }
 0x231   :  { %2062 = vmatpush1.msra.mxu1 %v3507_v28  ;;  %1985 = vmatprep.mubr.f32.mxu1 %v6907_v3 }
 0x232   :  { %2063 = vmatprep.subr.mxu1 %v3506_v0  ;;  %v2592_v0 = vld [vmem:[%s6786_s5 + $0x50] sm:$0xff] }
 0x233   :  { %2064 = vmatpush1.msra.mxu1 %v3505_v18  ;;  %v3598_v18 = vld [vmem:[%s6786_s5 + $0xe0] sm:$0xff] }
 0x234   :  { %1986 = vmatmul.mubr.f32.gmra.mxu1 %v5825_v14  ;;  %2065 = vmatprep.subr.mxu1 %v3504_v54 }
 0x235   :  { %2066 = vmatpush1.msra.mxu1 %v3503_v61  ;;  %1991 = vmatprep.mubr.f32.mxu1 %v6907_v3  ;;  %v2591_v61 = vld [vmem:[%s6786_s5 + $0x48] sm:$0xff] }
 0x236   :  { %2067 = vmatprep.subr.mxu1 %v3502_v7  ;;  %v3597_v7 = vld [vmem:[%s6786_s5 + $0xd8] sm:$0xff] }
 0x237   :  { %2068 = vmatpush1.msra.mxu1 %v3501_v19  ;;  %v2590_v19 = vld [vmem:[%s6786_s5 + $0x40] sm:$0xff] }
 0x238   :  { %1992 = vmatmul.mubr.f32.gmra.mxu1 %v5859_v60  ;;  %2069 = vmatprep.subr.mxu1 %v3500_v31  ;;  %v3596_v31 = vld [vmem:[%s6786_s5 + $0xd0] sm:$0xff] }
 0x239   :  { %2070 = vmatpush1.msra.mxu1 %v3499_v57  ;;  %1997 = vmatprep.mubr.f32.mxu1 %v6907_v3 }
 0x23a   :  { %2071 = vmatprep.subr.mxu1 %v3498_v4  ;;  %v2589_v4 = vld [vmem:[%s6786_s5 + $0x38] sm:$0xff] }
 0x23b   :  { %2072 = vmatpush1.msra.mxu1 %v3497_v17  ;;  %v3595_v17 = vld [vmem:[%s6786_s5 + $0xc8] sm:$0xff] }
 0x23c   :  { %1998 = vmatmul.mubr.f32.gmra.mxu1 %v5878_v38  ;;  %2073 = vmatprep.subr.mxu1 %v3496_v53 }
 0x23d   :  { %2003 = vmatprep.mubr.f32.mxu1 %v6907_v3  ;;  %2074 = vmatpush1.msra.mxu1 %v3495_v48  ;;  %v2588_v48 = vld [vmem:[%s6786_s5 + $0x30] sm:$0xff] }
 0x23e   :  { %2075 = vmatprep.subr.mxu1 %v3494_v62  ;;  %v2587_v62 = vld [vmem:[%s6786_s5 + $0x28] sm:$0xff] }
 0x23f   :  { %2076 = vmatpush1.msra.mxu1 %v3493_v35  ;;  %v3594_v35 = vld [vmem:[%s6786_s5 + $0xc0] sm:$0xff] }
 0x240   :  { %2004 = vmatmul.mubr.f32.gmra.mxu1 %v5893_v51  ;;  %2077 = vmatprep.subr.mxu1 %v3492_v49 }
 0x241   :  { %2009 = vmatprep.mubr.f32.mxu1 %v6907_v3  ;;  %2078 = vmatpush1.msra.mxu1 %v3491_v2  ;;  %v2586_v2 = vld [vmem:[%s6786_s5 + $0x20] sm:$0xff] }
 0x242   :  { %2079 = vmatprep.subr.mxu1 %v3490_v44 }
 0x243   :  { %2080 = vmatpush1.msra.mxu1 %v3489_v23  ;;  %v3593_v23 = vld [vmem:[%s6786_s5 + $0xb8] sm:$0xff] }
 0x244   :  { %2010 = vmatmul.mubr.f32.gmra.mxu1 %v5908_v32  ;;  %2405 = vmatprep.subr.mxu1 %v3584_v25  ;;  %v2585_v25 = vld [vmem:[%s6786_s5 + $0x18] sm:$0xff] }
 0x245   :  { %2113 = vmatprep.mubr.f32.mxu1 %v6907_v3 }
 0x248   :  { %2114 = vmatmul.mubr.f32.vlgmr.msra.gmra.mxu1 %v5706_v63  ;;  %v3578_v63 = vld [vmem:[%s6784_s3 + $0x4c8] sm:$0xff] }
 0x249   :  { %2406 = vmatpush1.msra.mxu1 %v3583_v45  ;;  %2119 = vmatprep.mubr.f32.mxu1 %v6907_v3  ;;  %v3592_v45 = vld [vmem:[%s6786_s5 + $0xb0] sm:$0xff] }
 0x24a   :  { %2407 = vmatprep.subr.mxu1 %v3582_v37  ;;  %v2584_v37 = vld [vmem:[%s6786_s5 + $0x10] sm:$0xff] }
 0x24b   :  { %2408 = vmatpush1.msra.mxu1 %v3581_v46 }
 0x24c   :  { %2120 = vmatmul.mubr.f32.gmra.mxu1 %v5748_v50  ;;  %2409 = vmatprep.subr.mxu1 %v3580_v20  ;;  %v3574_v50 = vld [vmem:[%s6784_s3 + $0x4a8] sm:$0xff] }
 0x24d   :  { %2410 = vmatpush1.msra.mxu1 %v3579_v24  ;;  %2125 = vmatprep.mubr.f32.mxu1 %v6907_v3  ;;  %v3591_v20 = vld [vmem:[%s6786_s5 + $0xa8] sm:$0xff] }
 0x24e   :  { %2411 = vmatprep.subr.mxu1 %v3578_v63  ;;  %v2583_v24 = vld [vmem:[%s6786_s5 + $0x8] sm:$0xff] }
 0x24f   :  { %2412 = vmatpush1.msra.mxu1 %v3577_v41  ;;  %v3590_v41 = vld [vmem:[%s6786_s5 + $0xa0] sm:$0xff] }
 0x250   :  { %2126 = vmatmul.mubr.f32.gmra.mxu1 %v5789_v11  ;;  %2413 = vmatprep.subr.mxu1 %v3576_v9  ;;  %v2582_v9 = vld [vmem:[%s6786_s5] sm:$0xff] }
 0x251   :  { %2131 = vmatprep.mubr.f32.mxu1 %v6907_v3  ;;  %2414 = vmatpush1.msra.mxu1 %v3575_v59  ;;  %v3589_v59 = vld [vmem:[%s6786_s5 + $0x98] sm:$0xff] }
 0x252   :  { %2415 = vmatprep.subr.mxu1 %v3574_v50 }
 0x253   :  { %2416 = vmatpush1.msra.mxu1 %v3573_v26  ;;  %v3588_v26 = vld [vmem:[%s6786_s5 + $0x90] sm:$0xff] }
 0x254   :  { %2132 = vmatmul.mubr.f32.gmra.mxu1 %v5825_v14  ;;  %2417 = vmatprep.subr.mxu1 %v3572_v33 }
 0x255   :  { %2137 = vmatprep.mubr.f32.mxu1 %v6907_v3  ;;  %2418 = vmatpush1.msra.mxu1 %v3571_v5  ;;  %v3587_v5 = vld [vmem:[%s6786_s5 + $0x88] sm:$0xff] }
 0x256   :  { %2419 = vmatprep.subr.mxu1 %v3570_v21  ;;  %v3586_v21 = vld [vmem:[%s6786_s5 + $0x80] sm:$0xff] }
 0x257   :  { %2420 = vmatpush1.msra.mxu1 %v3569_v34 }
 0x258   :  { %2138 = vmatmul.mubr.f32.gmra.mxu1 %v5859_v60  ;;  %2421 = vmatprep.subr.mxu1 %v3568_v6 }
 0x259   :  { %2143 = vmatprep.mubr.f32.mxu1 %v6907_v3  ;;  %2422 = vmatpush1.msra.mxu1 %v3567_v27 }
 0x25a   :  { %2423 = vmatprep.subr.mxu1 %v3566_v52 }
 0x25b   :  { %2424 = vmatpush1.msra.mxu1 %v3565_v55 }
 0x25c   :  { %2144 = vmatmul.mubr.f32.gmra.mxu1 %v5878_v38  ;;  %2425 = vmatprep.subr.mxu1 %v3564_v30 }
 0x25d   :  { %2149 = vmatprep.mubr.f32.mxu1 %v6907_v3  ;;  %2426 = vmatpush1.msra.mxu1 %v3563_v40 }
 0x25e   :  { %2427 = vmatprep.subr.mxu1 %v3562_v1 }
 0x25f   :  { %2428 = vmatpush1.msra.mxu1 %v3561_v29 }
 0x260   :  { %2150 = vmatmul.mubr.f32.gmra.mxu1 %v5893_v51  ;;  %2429 = vmatprep.subr.mxu1 %v3560_v15 }
 0x261   :  { %2155 = vmatprep.mubr.f32.mxu1 %v6907_v3  ;;  %2430 = vmatpush1.msra.mxu1 %v3559_v42 }
 0x262   :  { %2431 = vmatprep.subr.mxu1 %v3558_v36 }
 0x263   :  { %2432 = vmatpush1.msra.mxu1 %v3557_v56 }
 0x264   :  { %2156 = vmatmul.mubr.f32.gmra.mxu1 %v5908_v32  ;;  %2433 = vmatprep.subr.mxu1 %v3556_v16 }
 0x265   :  { %2161 = vmatprep.mubr.f32.mxu1 %v6907_v3  ;;  %2434 = vmatpush1.msra.mxu1 %v3555_v22 }
 0x266   :  { %2435 = vmatprep.subr.mxu1 %v3554_v10 }
 0x267   :  { %2436 = vmatpush1.msra.mxu1 %v3553_v13 }
 0x268   :  { %2162 = vmatmul.mubr.f32.gmra.mxu1 %v5924_v47  ;;  %3807 = vmatprep.subr.mxu1 %v6907_v3 }
 0x269   :  { %2167 = vmatprep.mubr.f32.mxu1 %v6907_v3 }
 0x26c   :  { %2168 = vmatmul.mubr.f32.gmra.mxu1 %v5945_v8 }
 0x26d   :  { %2469 = vmatprep.mubr.f32.mxu1 %v6907_v3 }
 0x270   :  { %2470 = vmatmul.mubr.f32.vlgmr.msra.gmra.mxu1 %v5789_v11  ;;  %v4019_v11 = vld [vmem:[%s6785_s2] ss:$0 sm:$0xff] }
 0x271   :  { %2475 = vmatprep.mubr.f32.mxu1 %v6907_v3 }
 0x274   :  { %2476 = vmatmul.mubr.f32.gmra.mxu1 %v5825_v14  ;;  %v1686_v14 = vadd.f32 %v4019_v11, %v5993_v12  ;;  %v2593_v12 = vld [vmem:[%s6786_s5 + $0x58] sm:$0xff] }
 0x275   :  { %2481 = vmatprep.mubr.f32.mxu1 %v6907_v3 }
 0x278   :  { %2482 = vmatmul.mubr.f32.gmra.mxu1 %v5859_v60  ;;  %v1700_v60 = vmax.f32 %v1686_v14, 0.0 }
 0x279   :  { %2487 = vmatprep.mubr.f32.mxu1 %v6907_v3 }
 0x27c   :  { %2488 = vmatmul.mubr.f32.gmra.mxu1 %v5878_v38  ;;  %v2597_v38 = vld [vmem:[%s6786_s5 + $0x78] sm:$0xff] }
 0x27d   :  { %2493 = vmatprep.mubr.f32.mxu1 %v6907_v3  ;;  %3808 = vmatpush3.msra.mxu1 %v2597_v38 }
 0x27e   :  { %3809 = vmatprep.subr.mxu1 %v6907_v3 }
 0x280   :  { %2494 = vmatmul.mubr.f32.gmra.mxu1 %v5893_v51  ;;  %v2596_v51 = vld [vmem:[%s6786_s5 + $0x70] sm:$0xff] }
 0x281   :  { %2499 = vmatprep.mubr.f32.mxu1 %v6907_v3  ;;  %3810 = vmatpush3.msra.mxu1 %v2596_v51 }
 0x282   :  { %3811 = vmatprep.subr.mxu1 %v6907_v3 }
 0x284   :  { %2500 = vmatmul.mubr.f32.gmra.mxu1 %v5908_v32  ;;  %v3601_v32 = vld [vmem:[%s6786_s5 + $0xf8] sm:$0xff] }
 0x285   :  { %2505 = vmatprep.mubr.f32.mxu1 %v6907_v3  ;;  %3773 = vmatpush3.msra.mxu0 %v3601_v32 }
 0x286   :  { %3774 = vmatprep.subr.mxu0 %v6907_v3 }
 0x288   :  { %2506 = vmatmul.mubr.f32.gmra.mxu1 %v5924_v47  ;;  %v2595_v47 = vld [vmem:[%s6786_s5 + $0x68] sm:$0xff] }
 0x289   :  { %2511 = vmatprep.mubr.f32.mxu1 %v6907_v3  ;;  %3812 = vmatpush3.msra.mxu1 %v2595_v47 }
 0x28a   :  { %3813 = vmatprep.subr.mxu1 %v6907_v3 }
 0x28c   :  { %2512 = vmatmul.mubr.f32.gmra.mxu1 %v5945_v8  ;;  %v3600_v8 = vld [vmem:[%s6786_s5 + $0xf0] sm:$0xff] }
 0x28d   :  { %2517 = vmatprep.mubr.f32.mxu1 %v6907_v3  ;;  %3775 = vmatpush3.msra.mxu0 %v3600_v8 }
 0x28e   :  { %3776 = vmatprep.subr.mxu0 %v6907_v3 }
 0x28f   :  { %3777 = vmatpush3.msra.mxu0 %v3599_v58 }
 0x290   :  { %2518 = vmatmul.mubr.f32.gmra.mxu1 %v1699_v39  ;;  %v2594_v39 = vld [vmem:[%s6786_s5 + $0x60] sm:$0xff]  ;;  %3778 = vmatprep.subr.mxu0 %v6907_v3 }
 0x291   :  { %2523 = vmatprep.mubr.f32.mxu1 %v6907_v3  ;;  %3814 = vmatpush3.msra.mxu1 %v2594_v39 }
 0x292   :  { %3815 = vmatprep.subr.mxu1 %v6907_v3  ;;  %3779 = vmatpush3.msra.mxu0 %v3598_v18 }
 0x293   :  { %3816 = vmatpush3.msra.mxu1 %v2593_v12  ;;  %3780 = vmatprep.subr.mxu0 %v6907_v3 }
 0x294   :  { %2524 = vmatmul.mubr.f32.gmra.mxu1 %v1700_v60  ;;  %v6222_v43 = vpop.f32.mrf.mxu1  ;;  %3817 = vmatprep.subr.mxu1 %v6907_v3 }
 0x295   :  { %3818 = vmatpush3.msra.mxu1 %v2592_v0  ;;  %3781 = vmatpush3.msra.mxu0 %v3597_v7 }
 0x296   :  { %v6237_v28 = vpop.f32.mrf.mxu1  ;;  %3819 = vmatprep.subr.mxu1 %v6907_v3  ;;  %3782 = vmatprep.subr.mxu0 %v6907_v3 }
 0x297   :  { %3820 = vmatpush3.msra.mxu1 %v2591_v61  ;;  %3783 = vmatpush3.msra.mxu0 %v3596_v31 }
 0x298   :  { %3821 = vmatprep.subr.mxu1 %v6907_v3  ;;  %3784 = vmatprep.subr.mxu0 %v6907_v3 }
 0x299   :  { %3822 = vmatpush3.msra.mxu1 %v2590_v19  ;;  %3785 = vmatpush3.msra.mxu0 %v3595_v17 }
 0x29a   :  { %3823 = vmatprep.subr.mxu1 %v6907_v3  ;;  %3786 = vmatprep.subr.mxu0 %v6907_v3 }
 0x29b   :  { %3824 = vmatpush3.msra.mxu1 %v2589_v4  ;;  %3787 = vmatpush3.msra.mxu0 %v3594_v35 }
 0x29c   :  { %v6246_v54 = vpop.f32.mrf.mxu1  ;;  %3825 = vmatprep.subr.mxu1 %v6907_v3  ;;  %3788 = vmatprep.subr.mxu0 %v6907_v3 }
 0x29d   :  { %3826 = vmatpush3.msra.mxu1 %v2588_v48  ;;  %3789 = vmatpush3.msra.mxu0 %v3593_v23 }
 0x29e   :  { %v6264_v57 = vpop.f32.mrf.mxu1  ;;  %3827 = vmatprep.subr.mxu1 %v6907_v3  ;;  %3790 = vmatprep.subr.mxu0 %v6907_v3 }
 0x29f   :  { %3828 = vmatpush3.msra.mxu1 %v2587_v62  ;;  %3791 = vmatpush3.msra.mxu0 %v3592_v45 }
 0x2a0   :  { %3829 = vmatprep.subr.mxu1 %v6907_v3  ;;  %3792 = vmatprep.subr.mxu0 %v6907_v3 }
 0x2a1   :  { %3830 = vmatpush3.msra.mxu1 %v2586_v2  ;;  %3793 = vmatpush3.msra.mxu0 %v3591_v20 }
 0x2a2   :  { %3831 = vmatprep.subr.mxu1 %v6907_v3  ;;  %3794 = vmatprep.subr.mxu0 %v6907_v3 }
 0x2a3   :  { %3832 = vmatpush3.msra.mxu1 %v2585_v25  ;;  %3795 = vmatpush3.msra.mxu0 %v3590_v41 }
 0x2a4   :  { %v6274_v53 = vpop.f32.mrf.mxu1  ;;  %3833 = vmatprep.subr.mxu1 %v6907_v3  ;;  %3796 = vmatprep.subr.mxu0 %v6907_v3 }
 0x2a5   :  { %3834 = vmatpush3.msra.mxu1 %v2584_v37  ;;  %3839 = vmatprep.mubr.msk.f32.mxu1 %vm4021_vm1, %v6907_v3 }
 0x2a6   :  { %v6288_v49 = vpop.f32.mrf.mxu1  ;;  %3835 = vmatprep.subr.mxu1 %v6907_v3  ;;  %3797 = vmatpush3.msra.mxu0 %v3589_v59 }
 0x2a7   :  { %3836 = vmatpush3.msra.mxu1 %v2583_v24  ;;  %3798 = vmatprep.subr.mxu0 %v6907_v3 }
 0x2a8   :  { %3837 = vmatprep.subr.mxu1 %v6907_v3  ;;  %3799 = vmatpush3.msra.mxu0 %v3588_v26  ;;  %v2293_v26 = vpop.f32.mrf.mxu0 }
 0x2a9   :  { %3838 = vmatpush3.msra.mxu1 %v2582_v9  ;;  %3800 = vmatprep.subr.mxu0 %v6907_v3 }
 0x2aa   :  { %3877 = vmatprep.subr.mxu1 %v6907_v3  ;;  %3801 = vmatpush3.msra.mxu0 %v3587_v5 }
 0x2ab   :  { %3802 = vmatprep.subr.mxu0 %v6907_v3 }
 0x2ac   :  { %v1850_v44 = vpop.f32.mrf.mxu1  ;;  %3803 = vmatpush3.msra.mxu0 %v3586_v21 }
 0x2ad   :  { %3842 = vmatprep.subr.mxu0 %v6907_v3 }
 0x2ae   :  { %v1852_v46 = vpop.f32.mrf.mxu1 }
 0x2b4   :  { %v1856_v63 = vpop.f32.mrf.mxu1 }
 0x2b6   :  { %v1858_v50 = vpop.f32.mrf.mxu1 }
 0x2bc   :  { %v1862_v33 = vpop.f32.mrf.mxu1 }
 0x2be   :  { %v1864_v34 = vpop.f32.mrf.mxu1 }
 0x2c4   :  { %v1868_v6 = vpop.f32.mrf.mxu1 }
 0x2c6   :  { %v1870_v27 = vpop.f32.mrf.mxu1 }
 0x2cc   :  { %v1874_v52 = vpop.f32.mrf.mxu1 }
 0x2ce   :  { %v1876_v55 = vpop.f32.mrf.mxu1 }
 0x2d4   :  { %v1880_v30 = vpop.f32.mrf.mxu1 }
 0x2d6   :  { %v1882_v40 = vpop.f32.mrf.mxu1 }
 0x2dc   :  { %v1886_v1 = vpop.f32.mrf.mxu1 }
 0x2de   :  { %v1888_v29 = vpop.f32.mrf.mxu1 }
 0x2e0   :  { %v1957_v15 = vpop.f32.mrf.mxu1 }
 0x2e2   :  { %v1959_v42 = vpop.f32.mrf.mxu1 }
 0x2e4   :  { %v6348_v36 = vpop.f32.mrf.mxu1 }
 0x2e6   :  { %v6350_v56 = vpop.f32.mrf.mxu1 }
 0x2e8   :  { %v6352_v16 = vpop.f32.mrf.mxu1 }
 0x2ea   :  { %v1971_v22 = vpop.f32.mrf.mxu1 }
 0x2eb   :  { %v6355_v10 = vadd.f32 %v1971_v22, %v6288_v49 }
 0x2ec   :  { %v1975_v13 = vpop.f32.mrf.mxu1 }
 0x2ed   :  { %v6357_v11 = vadd.f32 %v1975_v13, %v1850_v44 }
 0x2ee   :  { %v1977_v14 = vpop.f32.mrf.mxu1 }
 0x2ef   :  { %v6359_v60 = vadd.f32 %v1977_v14, %v1852_v46 }
 0x2f0   :  { %v1981_v38 = vpop.f32.mrf.mxu1 }
 0x2f1   :  { %v1982_v51 = vadd.f32 %v1981_v38, %v1856_v63 }
 0x2f2   :  { %v1983_v32 = vpop.f32.mrf.mxu1 }
 0x2f3   :  { %v1984_v47 = vadd.f32 %v1983_v32, %v1858_v50  ;;  %v1960_v32 = vadd.f32 %v1959_v42, %v6237_v28 }
 0x2f4   :  { %v1987_v8 = vpop.f32.mrf.mxu1 }
 0x2f5   :  { %v6361_v39 = vadd.f32 %v1987_v8, %v1862_v33 }
 0x2f6   :  { %v1989_v58 = vpop.f32.mrf.mxu1 }
 0x2f7   :  { %v6363_v12 = vadd.f32 %v1989_v58, %v1864_v34  ;;  %v2295_v34 = vpop.f32.mrf.mxu0 }
 0x2f8   :  { %v1993_v0 = vpop.f32.mrf.mxu1 }
 0x2f9   :  { %v6365_v18 = vadd.f32 %v1993_v0, %v1868_v6 }
 0x2fa   :  { %v1995_v61 = vpop.f32.mrf.mxu1 }
 0x2fb   :  { %v6367_v7 = vadd.f32 %v1995_v61, %v1870_v27  ;;  %v2299_v27 = vpop.f32.mrf.mxu0 }
 0x2fc   :  { %v1999_v19 = vpop.f32.mrf.mxu1 }
 0x2fd   :  { %v6369_v31 = vadd.f32 %v1999_v19, %v1874_v52 }
 0x2fe   :  { %v2001_v4 = vpop.f32.mrf.mxu1 }
 0x2ff   :  { %v6371_v17 = vadd.f32 %v2001_v4, %v1876_v55 }
 0x300   :  { %v2005_v48 = vpop.f32.mrf.mxu1 }
 0x301   :  { %v2006_v62 = vadd.f32 %v2005_v48, %v1880_v30  ;;  %v2301_v30 = vpop.f32.mrf.mxu0  ;;  %v1964_v48 = vadd.f32 %v6348_v36, %v6246_v54 }
 0x302   :  { %v2007_v35 = vpop.f32.mrf.mxu1 }
 0x303   :  { %v2008_v49 = vadd.f32 %v2007_v35, %v1882_v40 }
 0x304   :  { %v2011_v2 = vpop.f32.mrf.mxu1 }
 0x305   :  { %v2012_v44 = vadd.f32 %v2011_v2, %v1886_v1  ;;  %v2305_v1 = vpop.f32.mrf.mxu0 }
 0x306   :  { %v2013_v23 = vpop.f32.mrf.mxu1 }
 0x307   :  { %v2014_v25 = vadd.f32 %v2013_v23, %v1888_v29  ;;  %v2307_v14 = vpop.f32.mrf.mxu0 }
 0x308   :  { %v2115_v45 = vpop.f32.mrf.mxu1 }
 0x309   :  { %v2311_v8 = vpop.f32.mrf.mxu0 }
 0x30a   :  { %v2117_v37 = vpop.f32.mrf.mxu1 }
 0x30b   :  { %v2175_v61 = vadd.f32 %v2117_v37, %v1960_v32 }
 0x30c   :  { %v2121_v46 = vpop.f32.mrf.mxu1 }
 0x30d   :  { %v2176_v28 = vadd.f32 %v2121_v46, %v1964_v48  ;;  %v2353_v2 = vadd.f32 %v2295_v34, %v2175_v61 }
 0x30e   :  { %v2123_v20 = vpop.f32.mrf.mxu1 }
 0x310   :  { %v2127_v24 = vpop.f32.mrf.mxu1 }
 0x312   :  { %v2129_v63 = vpop.f32.mrf.mxu1 }
 0x313   :  { %v2179_v36 = vadd.f32 %v2129_v63, %v6355_v10  ;;  %v6411_v10 = vld [vmem:[%s6787_s4] ss:$0 sm:$0xff] }
 0x314   :  { %v2133_v41 = vpop.f32.mrf.mxu1 }
 0x315   :  { %v2180_v32 = vadd.f32 %v2133_v41, %v6357_v11 }
 0x316   :  { %v2135_v9 = vpop.f32.mrf.mxu1 }
 0x317   :  { %v2358_v48 = vadd.f32 %v2311_v8, %v2180_v32 }
 0x318   :  { %v2139_v59 = vpop.f32.mrf.mxu1 }
 0x319   :  { %v6373_v50 = vadd.f32 %v2139_v59, %v1982_v51  ;;  %v1958_v51 = vadd.f32 %v1957_v15, %v6222_v43  ;;  %v2313_v43 = vpop.f32.mrf.mxu0 }
 0x31a   :  { %v2141_v33 = vpop.f32.mrf.mxu1 }
 0x31b   :  { %v6375_v5 = vadd.f32 %v2141_v33, %v1984_v47  ;;  %v2174_v0 = vadd.f32 %v2115_v45, %v1958_v51  ;;  %v2317_v23 = vpop.f32.mrf.mxu0 }
 0x31c   :  { %v6377_v21 = vpop.f32.mrf.mxu1  ;;  %v2360_v8 = vadd.f32 %v2317_v23, %v6373_v50 }
 0x31e   :  { %v6379_v6 = vpop.f32.mrf.mxu1 }
 0x320   :  { %v6381_v52 = vpop.f32.mrf.mxu1 }
 0x322   :  { %v6383_v55 = vpop.f32.mrf.mxu1 }
 0x324   :  { %v6385_v40 = vpop.f32.mrf.mxu1 }
 0x326   :  { %v6387_v29 = vpop.f32.mrf.mxu1 }
 0x328   :  { %v2163_v22 = vpop.f32.mrf.mxu1 }
 0x329   :  { %v6389_v13 = vadd.f32 %v2163_v22, %v2006_v62  ;;  %v1966_v62 = vadd.f32 %v6350_v56, %v6264_v57  ;;  %v2354_v56 = vadd.f32 %v2299_v27, %v2176_v28  ;;  %v2319_v22 = vpop.f32.mrf.mxu0  ;;  %v2184_v28 = vadd.f32 %v6377_v21, %v6361_v39 }
 0x32a   :  { %v2165_v38 = vpop.f32.mrf.mxu1 }
 0x32b   :  { %v6393_v47 = vadd.f32 %v2165_v38, %v2008_v49  ;;  %v2177_v42 = vadd.f32 %v2123_v20, %v1966_v62  ;;  %v2352_v49 = vadd.f32 %v2293_v26, %v2174_v0  ;;  %v2323_v26 = vpop.f32.mrf.mxu0 }
 0x32c   :  { %v2169_v58 = vpop.f32.mrf.mxu1 }
 0x32d   :  { %v6395_v19 = vadd.f32 %v2169_v58, %v2012_v44  ;;  %v1970_v44 = vadd.f32 %v6352_v16, %v6274_v53  ;;  %v2181_v53 = vadd.f32 %v2135_v9, %v6359_v60  ;;  %v2357_v58 = vadd.f32 %v2307_v14, %v2179_v36  ;;  %v2325_v0 = vpop.f32.mrf.mxu0 }
 0x32e   :  { %v2171_v4 = vpop.f32.mrf.mxu1 }
 0x32f   :  { %v6401_v35 = vadd.f32 %v2171_v4, %v2014_v25  ;;  %v2178_v33 = vadd.f32 %v2127_v24, %v1970_v44  ;;  %v2355_v25 = vadd.f32 %v2301_v30, %v2177_v42  ;;  %v2359_v11 = vadd.f32 %v2313_v43, %v2181_v53  ;;  %v2329_v41 = vpop.f32.mrf.mxu0  ;;  %v3632_v44 = vld [vmem:[%s6786_s5 + $0x1f0] sm:$0xff] }
 0x330   :  { %v2471_v15 = vpop.f32.mrf.mxu1  ;;  %v2361_v43 = vadd.f32 %v2319_v22, %v6375_v5  ;;  %v2186_v5 = vadd.f32 %v6381_v52, %v6365_v18  ;;  %v3616_v53 = vld [vmem:[%s6786_s5 + $0x170] sm:$0xff] }
 0x331   :  { %v2530_v37 = vadd.f32 %v2471_v15, %v2352_v49  ;;  %v2356_v34 = vadd.f32 %v2305_v1, %v2178_v33  ;;  %v3633_v15 = vld [vmem:[%s6786_s5 + $0x1f8] sm:$0xff]  ;;  %v2185_v49 = vadd.f32 %v6379_v6, %v6363_v12  ;;  %v3631_v12 = vld [vmem:[%s6786_s5 + $0x1e8] sm:$0xff]  ;;  %v2362_v6 = vadd.f32 %v2323_v26, %v2184_v28 }
 0x332   :  { %v2473_v45 = vpop.f32.mrf.mxu1  ;;  %v2187_v33 = vadd.f32 %v6383_v55, %v6367_v7  ;;  %v3617_v7 = vld [vmem:[%s6786_s5 + $0x178] sm:$0xff] }
 0x333   :  { %v2531_v59 = vadd.f32 %v2473_v45, %v2353_v2  ;;  %v2331_v45 = vpop.f32.mrf.mxu0  ;;  %v3629_v55 = vld [vmem:[%s6786_s5 + $0x1d8] sm:$0xff] }
 0x334   :  { %v2477_v54 = vpop.f32.mrf.mxu1  ;;  %v2365_v32 = vadd.f32 %v2331_v45, %v2187_v33 }
 0x335   :  { %v2550_v57 = vmax.f32 %v2530_v37, %v2531_v59  ;;  %v2532_v46 = vadd.f32 %v2477_v54, %v2354_v56  ;;  %v2335_v50 = vpop.f32.mrf.mxu0  ;;  %v3630_v56 = vld [vmem:[%s6786_s5 + $0x1e0] sm:$0xff] }
 0x336   :  { %v2479_v38 = vpop.f32.mrf.mxu1 }
 0x337   :  { %v2533_v20 = vadd.f32 %v2479_v38, %v2355_v25  ;;  %v2337_v38 = vpop.f32.mrf.mxu0 }
 0x338   :  { %v2483_v51 = vpop.f32.mrf.mxu1 }
 0x339   :  { %v2551_v16 = vmax.f32 %v2532_v46, %v2533_v20  ;;  %v2534_v27 = vadd.f32 %v2483_v51, %v2356_v34  ;;  %v2188_v46 = vadd.f32 %v6385_v40, %v6369_v31  ;;  %v2364_v20 = vadd.f32 %v2329_v41, %v2186_v5  ;;  %v2341_v31 = vpop.f32.mrf.mxu0  ;;  %v3610_v5 = vld [vmem:[%s6786_s5 + $0x140] sm:$0xff] }
 0x33a   :  { %v2485_v24 = vpop.f32.mrf.mxu1  ;;  %v2189_v34 = vadd.f32 %v6387_v29, %v6371_v17 }
 0x33b   :  { %v2560_v63 = vmax.f32 %v2550_v57, %v2551_v16  ;;  %v2535_v30 = vadd.f32 %v2485_v24, %v2357_v58  ;;  %v2363_v57 = vadd.f32 %v2325_v0, %v2185_v49  ;;  %v3628_v16 = vld [vmem:[%s6786_s5 + $0x1d0] sm:$0xff]  ;;  %v3615_v24 = vld [vmem:[%s6786_s5 + $0x168] sm:$0xff]  ;;  %v2366_v0 = vadd.f32 %v2335_v50, %v2188_v46 }
 0x33c   :  { %v2489_v61 = vpop.f32.mrf.mxu1 }
 0x33d   :  { %v2572_v1 = vadd.f32 %v6411_v10, %v2560_v63  ;;  %v2552_v4 = vmax.f32 %v2534_v27, %v2535_v30  ;;  %v2536_v14 = vadd.f32 %v2489_v61, %v2358_v48  ;;  %v3627_v63 = vld [vmem:[%s6786_s5 + $0x1c8] sm:$0xff]  ;;  %v2367_v61 = vadd.f32 %v2337_v38, %v2189_v34  ;;  %v2343_v48 = vpop.f32.mrf.mxu0  ;;  %v3618_v38 = vld [vmem:[%s6786_s5 + $0x180] sm:$0xff] }
 0x33e   :  { %v2491_v60 = vpop.f32.mrf.mxu1  ;;  %v2369_v49 = vadd.f32 %v2343_v48, %v6393_v47  ;;  %v3611_v47 = vld [vmem:[%s6786_s5 + $0x148] sm:$0xff]  ;;  %v3634_v48 = vld [vmem:[%s6786_s5 + $0x200] sm:$0xff] }
 0x33f   :  { %v2577_v9 = vmax.f32 %v2572_v1, 0.0  ;;  %v2537_v62 = vadd.f32 %v2491_v60, %v2359_v11  ;;  %v3614_v1 = vld [vmem:[%s6786_s5 + $0x160] sm:$0xff] }
 0x340   :  { %v2495_v42 = vpop.f32.mrf.mxu1 }
 0x341   :  { %v2553_v2 = vmax.f32 %v2536_v14, %v2537_v62  ;;  %3840 = vmatmul.mubr.f32.vlgmr.msra.gmra.mxu1 %v2577_v9  ;;  %v2538_v21 = vadd.f32 %v2495_v42, %v2360_v8  ;;  %v3613_v9 = vld [vmem:[%s6786_s5 + $0x158] sm:$0xff]  ;;  %v2347_v62 = vpop.f32.mrf.mxu0  ;;  %v2368_v42 = vadd.f32 %v2341_v31, %v6389_v13  ;;  %v3624_v8 = vld [vmem:[%s6786_s5 + $0x1b0] sm:$0xff]  ;;  %v3647_v31 = vld [vmem:[%s6786_s5 + $0x268] sm:$0xff] }
 0x342   :  { %3878 = vmatpush3.msra.mxu1 %v3633_v15  ;;  %v2497_v37 = vpop.f32.mrf.mxu1  ;;  %3909 = vmatprep.mubr.msk.f32.mxu1 %vm4021_vm1, %v6907_v3  ;;  %v3625_v14 = vld [vmem:[%s6786_s5 + $0x1b8] sm:$0xff] }
 0x343   :  { %v2561_v39 = vmax.f32 %v2552_v4, %v2553_v2  ;;  %v2539_v59 = vadd.f32 %v2497_v37, %v2361_v43  ;;  %3879 = vmatprep.subr.mxu1 %v6907_v3  ;;  %v3626_v4 = vld [vmem:[%s6786_s5 + $0x1c0] sm:$0xff]  ;;  %v3612_v2 = vld [vmem:[%s6786_s5 + $0x150] sm:$0xff]  ;;  %v3623_v37 = vld [vmem:[%s6786_s5 + $0x1a8] sm:$0xff] }
 0x344   :  { %3880 = vmatpush3.msra.mxu1 %v3632_v44  ;;  %v2501_v23 = vpop.f32.mrf.mxu1 }
 0x345   :  { %v2573_v54 = vadd.f32 %v6411_v10, %v2561_v39  ;;  %v2554_v36 = vmax.f32 %v2538_v21, %v2539_v59  ;;  %3881 = vmatprep.subr.mxu1 %v6907_v3  ;;  %v2540_v18 = vadd.f32 %v2501_v23, %v2362_v6  ;;  %v2349_v39 = vpop.f32.mrf.mxu0  ;;  %v3622_v6 = vld [vmem:[%s6786_s5 + $0x1a0] sm:$0xff] }
 0x346   :  { %3882 = vmatpush3.msra.mxu1 %v3631_v12  ;;  %v2503_v25 = vpop.f32.mrf.mxu1  ;;  %v2370_v12 = vadd.f32 %v2347_v62, %v6395_v19  ;;  %v2371_v50 = vadd.f32 %v2349_v39, %v6401_v35  ;;  %v3609_v19 = vld [vmem:[%s6786_s5 + $0x138] sm:$0xff]  ;;  %v3136_v39 = vld [vmem:[%s6789_s9 + $0x70] sm:$0xff] }
 0x347   :  { %v2578_v22 = vmax.f32 %v2573_v54, 0.0  ;;  %v2541_v52 = vadd.f32 %v2503_v25, %v2363_v57  ;;  %3883 = vmatprep.subr.mxu1 %v6907_v3  ;;  %v3621_v35 = vld [vmem:[%s6786_s5 + $0x198] sm:$0xff]  ;;  %v3608_v57 = vld [vmem:[%s6786_s5 + $0x130] sm:$0xff] }
 0x348   :  { %3884 = vmatpush3.msra.mxu1 %v3630_v56  ;;  %v2507_v26 = vpop.f32.mrf.mxu1  ;;  %v3620_v56 = vld [vmem:[%s6786_s5 + $0x190] sm:$0xff]  ;;  %v3039_v62 = vld [vmem:[%s6788_s7 + $0x58] sm:$0xff] }
 0x349   :  { %v2555_v51 = vmax.f32 %v2540_v18, %v2541_v52  ;;  %3885 = vmatprep.subr.mxu1 %v6907_v3  ;;  %3805 = vmatmul.mubr.f32.vlgmr.msra.gmra.mxu0 %v2578_v22  ;;  %v2542_v17 = vadd.f32 %v2507_v26, %v2364_v20  ;;  %v3607_v18 = vld [vmem:[%s6786_s5 + $0x128] sm:$0xff]  ;;  %v3605_v20 = vld [vmem:[%s6786_s5 + $0x118] sm:$0xff]  ;;  %v3604_v26 = vld [vmem:[%s6786_s5 + $0x110] sm:$0xff] }
 0x34a   :  { %3843 = vmatpush3.msra.mxu0 %v3617_v7  ;;  %3886 = vmatpush3.msra.mxu1 %v3629_v55  ;;  %v2509_v40 = vpop.f32.mrf.mxu1  ;;  %v3619_v52 = vld [vmem:[%s6786_s5 + $0x188] sm:$0xff]  ;;  %v3606_v55 = vld [vmem:[%s6786_s5 + $0x120] sm:$0xff] }
 0x34b   :  { %v6459_v58 = vmax.f32 %v2554_v36, %v2555_v51  ;;  %v2543_v29 = vadd.f32 %v2509_v40, %v2365_v32  ;;  %3844 = vmatprep.subr.mxu0 %v6907_v3  ;;  %3887 = vmatprep.subr.mxu1 %v6907_v3  ;;  %v3603_v51 = vld [vmem:[%s6786_s5 + $0x108] sm:$0xff]  ;;  %v3602_v32 = vld [vmem:[%s6786_s5 + $0x100] sm:$0xff] }
 0x34c   :  { %3845 = vmatpush3.msra.mxu0 %v3616_v53  ;;  %3888 = vmatpush3.msra.mxu1 %v3628_v16  ;;  %v2513_v27 = vpop.f32.mrf.mxu1  ;;  %v3649_v53 = vld [vmem:[%s6786_s5 + $0x278] sm:$0xff]  ;;  %v3648_v16 = vld [vmem:[%s6786_s5 + $0x270] sm:$0xff]  ;;  %v3646_v40 = vld [vmem:[%s6786_s5 + $0x260] sm:$0xff] }
 0x34d   :  { %v2556_v30 = vmax.f32 %v2542_v17, %v2543_v29  ;;  %3846 = vmatprep.subr.mxu0 %v6907_v3  ;;  %3889 = vmatprep.subr.mxu1 %v6907_v3  ;;  %v2544_v41 = vadd.f32 %v2513_v27, %v2366_v0  ;;  %v2574_v34 = vadd.f32 %v6411_v10, %v6459_v58  ;;  %v3645_v58 = vld [vmem:[%s6786_s5 + $0x258] sm:$0xff]  ;;  %v3644_v17 = vld [vmem:[%s6786_s5 + $0x250] sm:$0xff]  ;;  %v3643_v29 = vld [vmem:[%s6786_s5 + $0x248] sm:$0xff] }
 0x34e   :  { %3847 = vmatpush3.msra.mxu0 %v3615_v24  ;;  %3890 = vmatpush3.msra.mxu1 %v3627_v63  ;;  %v2515_v11 = vpop.f32.mrf.mxu1  ;;  %v3642_v24 = vld [vmem:[%s6786_s5 + $0x240] sm:$0xff]  ;;  %v3641_v63 = vld [vmem:[%s6786_s5 + $0x238] sm:$0xff]  ;;  %v3640_v27 = vld [vmem:[%s6786_s5 + $0x230] sm:$0xff] }
 0x34f   :  { %v2545_v60 = vadd.f32 %v2515_v11, %v2367_v61  ;;  %3848 = vmatprep.subr.mxu0 %v6907_v3  ;;  %3891 = vmatprep.subr.mxu1 %v6907_v3  ;;  %v3638_v0 = vld [vmem:[%s6786_s5 + $0x220] sm:$0xff]  ;;  %v3637_v61 = vld [vmem:[%s6786_s5 + $0x218] sm:$0xff] }
 0x350   :  { %3849 = vmatpush3.msra.mxu0 %v3614_v1  ;;  %3892 = vmatpush3.msra.mxu1 %v3626_v4  ;;  %v2519_v15 = vpop.f32.mrf.mxu1  ;;  %v3636_v1 = vld [vmem:[%s6786_s5 + $0x210] sm:$0xff]  ;;  %v3635_v4 = vld [vmem:[%s6786_s5 + $0x208] sm:$0xff] }
 0x351   :  { %v2557_v28 = vmax.f32 %v2544_v41, %v2545_v60  ;;  %3850 = vmatprep.subr.mxu0 %v6907_v3  ;;  %3893 = vmatprep.subr.mxu1 %v6907_v3  ;;  %v2546_v45 = vadd.f32 %v2519_v15, %v2368_v42  ;;  %v3043_v41 = vld [vmem:[%s6788_s7 + $0x78] sm:$0xff]  ;;  %v3042_v60 = vld [vmem:[%s6788_s7 + $0x70] sm:$0xff]  ;;  %v3036_v42 = vld [vmem:[%s6788_s7 + $0x40] sm:$0xff] }
 0x352   :  { %3851 = vmatpush3.msra.mxu0 %v3613_v9  ;;  %3894 = vmatpush3.msra.mxu1 %v3625_v14  ;;  %v2521_v43 = vpop.f32.mrf.mxu1  ;;  %v3041_v9 = vld [vmem:[%s6788_s7 + $0x68] sm:$0xff]  ;;  %v3040_v14 = vld [vmem:[%s6788_s7 + $0x60] sm:$0xff]  ;;  %v3038_v15 = vld [vmem:[%s6788_s7 + $0x50] sm:$0xff] }
 0x353   :  { %v2563_v44 = vmax.f32 %v2556_v30, %v2557_v28  ;;  %v2547_v13 = vadd.f32 %v2521_v43, %v2369_v49  ;;  %3852 = vmatprep.subr.mxu0 %v6907_v3  ;;  %3895 = vmatprep.subr.mxu1 %v6907_v3  ;;  %v3639_v30 = vld [vmem:[%s6786_s5 + $0x228] sm:$0xff]  ;;  %v3035_v49 = vld [vmem:[%s6788_s7 + $0x38] sm:$0xff]  ;;  %v3032_v43 = vld [vmem:[%s6788_s7 + $0x20] sm:$0xff] }
 0x354   :  { %3853 = vmatpush3.msra.mxu0 %v3612_v2  ;;  %3896 = vmatpush3.msra.mxu1 %v3624_v8  ;;  %v2525_v21 = vpop.f32.mrf.mxu1  ;;  %v3037_v28 = vld [vmem:[%s6788_s7 + $0x48] sm:$0xff]  ;;  %v3034_v2 = vld [vmem:[%s6788_s7 + $0x30] sm:$0xff] }
 0x355   :  { %v2558_v59 = vmax.f32 %v2546_v45, %v2547_v13  ;;  %3854 = vmatprep.subr.mxu0 %v6907_v3  ;;  %3897 = vmatprep.subr.mxu1 %v6907_v3  ;;  %v2548_v33 = vadd.f32 %v2525_v21, %v2370_v12  ;;  %v2575_v25 = vadd.f32 %v6411_v10, %v2563_v44  ;;  %v3033_v8 = vld [vmem:[%s6788_s7 + $0x28] sm:$0xff]  ;;  %v3031_v44 = vld [vmem:[%s6788_s7 + $0x18] sm:$0xff]  ;;  %v3030_v45 = vld [vmem:[%s6788_s7 + $0x10] sm:$0xff] }
 0x356   :  { %3855 = vmatpush3.msra.mxu0 %v3611_v47  ;;  %3898 = vmatpush3.msra.mxu1 %v3623_v37  ;;  %v2527_v23 = vpop.f32.mrf.mxu1  ;;  %v3029_v13 = vld [vmem:[%s6788_s7 + $0x8] sm:$0xff]  ;;  %v3028_v47 = vld [vmem:[%s6788_s7] sm:$0xff]  ;;  %v3137_v37 = vld [vmem:[%s6789_s9 + $0x78] sm:$0xff] }
 0x357   :  { %v2549_v54 = vadd.f32 %v2527_v23, %v2371_v50  ;;  %3856 = vmatprep.subr.mxu0 %v6907_v3  ;;  %3899 = vmatprep.subr.mxu1 %v6907_v3  ;;  %v2580_v46 = vmax.f32 %v2575_v25, 0.0  ;;  %v3135_v21 = vld [vmem:[%s6789_s9 + $0x68] sm:$0xff]  ;;  %v3133_v12 = vld [vmem:[%s6789_s9 + $0x58] sm:$0xff]  ;;  %v3132_v50 = vld [vmem:[%s6789_s9 + $0x50] sm:$0xff] }
 0x358   :  { %3857 = vmatpush3.msra.mxu0 %v3610_v5  ;;  %3900 = vmatpush3.msra.mxu1 %v3622_v6  ;;  %v3131_v5 = vld [vmem:[%s6789_s9 + $0x48] sm:$0xff]  ;;  %v3130_v6 = vld [vmem:[%s6789_s9 + $0x40] sm:$0xff]  ;;  %v3129_v23 = vld [vmem:[%s6789_s9 + $0x38] sm:$0xff] }
 0x359   :  { %v2559_v36 = vmax.f32 %v2548_v33, %v2549_v54  ;;  %3858 = vmatprep.subr.mxu0 %v6907_v3  ;;  %3901 = vmatprep.subr.mxu1 %v6907_v3  ;;  %v3128_v33 = vld [vmem:[%s6789_s9 + $0x30] sm:$0xff]  ;;  %v3127_v54 = vld [vmem:[%s6789_s9 + $0x28] sm:$0xff] }
 0x35a   :  { %3859 = vmatpush3.msra.mxu0 %v3609_v19  ;;  %3902 = vmatpush3.msra.mxu1 %v3621_v35  ;;  %v3126_v19 = vld [vmem:[%s6789_s9 + $0x20] sm:$0xff]  ;;  %v3125_v35 = vld [vmem:[%s6789_s9 + $0x18] sm:$0xff] }
 0x35b   :  { %v2564_v22 = vmax.f32 %v2558_v59, %v2559_v36  ;;  %3860 = vmatprep.subr.mxu0 %v6907_v3  ;;  %3903 = vmatprep.subr.mxu1 %v6907_v3  ;;  %v3134_v59 = vld [vmem:[%s6789_s9 + $0x60] sm:$0xff] }
 0x35c   :  { %3861 = vmatpush3.msra.mxu0 %v3608_v57  ;;  %3904 = vmatpush3.msra.mxu1 %v3620_v56 }
 0x35d   :  { %v6539_v7 = vadd.f32 %v6411_v10, %v2564_v22  ;;  %3862 = vmatprep.subr.mxu0 %v6907_v3  ;;  %3905 = vmatprep.subr.mxu1 %v6907_v3  ;;  %v2579_v10 = vmax.f32 %v2574_v34, 0.0 }
 0x35e   :  { %3863 = vmatpush3.msra.mxu0 %v3607_v18  ;;  %3906 = vmatpush3.msra.mxu1 %v3619_v52 }
 0x35f   :  { %3864 = vmatprep.subr.mxu0 %v6907_v3  ;;  %3907 = vmatprep.subr.mxu1 %v6907_v3  ;;  %v2581_v11 = vmax.f32 %v6539_v7, 0.0 }
 0x360   :  { %3865 = vmatpush3.msra.mxu0 %v3606_v55  ;;  %3908 = vmatpush3.msra.mxu1 %v3618_v38 }
 0x361   :  { %3866 = vmatprep.subr.mxu0 %v6907_v3  ;;  %3910 = vmatmul.mubr.f32.vlgmr.msra.gmra.mxu1 %v2580_v46 }
 0x362   :  { %3867 = vmatpush3.msra.mxu0 %v3605_v20  ;;  %3874 = vmatprep.mubr.msk.f32.mxu0 %vm4021_vm1, %v6907_v3 }
 0x363   :  { %3868 = vmatprep.subr.mxu0 %v6907_v3  ;;  %3947 = vmatprep.subr.mxu1 %v6907_v3 }
 0x364   :  { %3869 = vmatpush3.msra.mxu0 %v3604_v26  ;;  %3979 = vmatprep.mubr.msk.f32.mxu1 %vm4021_vm1, %v6907_v3  ;;  %v3650_v26 = vld [vmem:[%s6790_s6] ss:$0 sm:$0xff] }
 0x365   :  { %3870 = vmatprep.subr.mxu0 %v6907_v3  ;;  %3948 = vmatpush3.msra.mxu1 %v3043_v41 }
 0x366   :  { %3871 = vmatpush3.msra.mxu0 %v3603_v51  ;;  %3949 = vmatprep.subr.mxu1 %v6907_v3 }
 0x367   :  { %3872 = vmatprep.subr.mxu0 %v6907_v3  ;;  %3950 = vmatpush3.msra.mxu1 %v3042_v60 }
 0x368   :  { %3873 = vmatpush3.msra.mxu0 %v3602_v32  ;;  %3951 = vmatprep.subr.mxu1 %v6907_v3 }
 0x369   :  { %3875 = vmatmul.mubr.f32.vlgmr.msra.gmra.mxu0 %v2579_v10  ;;  %3912 = vmatprep.subr.mxu0 %v6907_v3 }
 0x36a   :  { %3913 = vmatpush3.msra.mxu0 %v3649_v53  ;;  %3944 = vmatprep.mubr.msk.f32.mxu0 %vm4021_vm1, %v6907_v3  ;;  %v3124_v53 = vld [vmem:[%s6789_s9 + $0x10] sm:$0xff] }
 0x36b   :  { %3914 = vmatprep.subr.mxu0 %v6907_v3  ;;  %3952 = vmatpush3.msra.mxu1 %v3041_v9 }
 0x36c   :  { %3915 = vmatpush3.msra.mxu0 %v3648_v16  ;;  %3953 = vmatprep.subr.mxu1 %v6907_v3  ;;  %v3123_v16 = vld [vmem:[%s6789_s9 + $0x8] sm:$0xff] }
 0x36d   :  { %3916 = vmatprep.subr.mxu0 %v6907_v3  ;;  %3954 = vmatpush3.msra.mxu1 %v3040_v14 }
 0x36e   :  { %3917 = vmatpush3.msra.mxu0 %v3647_v31  ;;  %3955 = vmatprep.subr.mxu1 %v6907_v3  ;;  %v3122_v31 = vld [vmem:[%s6789_s9] sm:$0xff] }
 0x36f   :  { %3918 = vmatprep.subr.mxu0 %v6907_v3  ;;  %3956 = vmatpush3.msra.mxu1 %v3039_v62 }
 0x370   :  { %3919 = vmatpush3.msra.mxu0 %v3646_v40  ;;  %3957 = vmatprep.subr.mxu1 %v6907_v3  ;;  %v3651_v40 = vld [vmem:[%s6791_s8] ss:$0 sm:$0xff] }
 0x371   :  { %3920 = vmatprep.subr.mxu0 %v6907_v3  ;;  %3958 = vmatpush3.msra.mxu1 %v3038_v15 }
 0x372   :  { %3921 = vmatpush3.msra.mxu0 %v3645_v58  ;;  %3959 = vmatprep.subr.mxu1 %v6907_v3 }
 0x373   :  { %3922 = vmatprep.subr.mxu0 %v6907_v3  ;;  %3960 = vmatpush3.msra.mxu1 %v3037_v28 }
 0x374   :  { %3923 = vmatpush3.msra.mxu0 %v3644_v17  ;;  %3961 = vmatprep.subr.mxu1 %v6907_v3 }
 0x375   :  { %3924 = vmatprep.subr.mxu0 %v6907_v3  ;;  %3962 = vmatpush3.msra.mxu1 %v3036_v42 }
 0x376   :  { %3925 = vmatpush3.msra.mxu0 %v3643_v29  ;;  %3963 = vmatprep.subr.mxu1 %v6907_v3 }
 0x377   :  { %3926 = vmatprep.subr.mxu0 %v6907_v3  ;;  %3964 = vmatpush3.msra.mxu1 %v3035_v49 }
 0x378   :  { %3927 = vmatpush3.msra.mxu0 %v3642_v24  ;;  %3965 = vmatprep.subr.mxu1 %v6907_v3 }
 0x379   :  { %3928 = vmatprep.subr.mxu0 %v6907_v3  ;;  %3966 = vmatpush3.msra.mxu1 %v3034_v2 }
 0x37a   :  { %3929 = vmatpush3.msra.mxu0 %v3641_v63  ;;  %3967 = vmatprep.subr.mxu1 %v6907_v3  ;;  %v3652_v63 = vld [vmem:[%s6792_s10] ss:$0 sm:$0xff] }
 0x37b   :  { %3930 = vmatprep.subr.mxu0 %v6907_v3  ;;  %3968 = vmatpush3.msra.mxu1 %v3033_v8 }
 0x37c   :  { %3931 = vmatpush3.msra.mxu0 %v3640_v27  ;;  %3969 = vmatprep.subr.mxu1 %v6907_v3 }
 0x37d   :  { %3932 = vmatprep.subr.mxu0 %v6907_v3  ;;  %3970 = vmatpush3.msra.mxu1 %v3032_v43 }
 0x37e   :  { %3933 = vmatpush3.msra.mxu0 %v3639_v30  ;;  %3971 = vmatprep.subr.mxu1 %v6907_v3 }
 0x37f   :  { %3934 = vmatprep.subr.mxu0 %v6907_v3  ;;  %3972 = vmatpush3.msra.mxu1 %v3031_v44 }
 0x380   :  { %3935 = vmatpush3.msra.mxu0 %v3638_v0  ;;  %3973 = vmatprep.subr.mxu1 %v6907_v3 }
 0x381   :  { %3936 = vmatprep.subr.mxu0 %v6907_v3  ;;  %3974 = vmatpush3.msra.mxu1 %v3030_v45 }
 0x382   :  { %3937 = vmatpush3.msra.mxu0 %v3637_v61  ;;  %3975 = vmatprep.subr.mxu1 %v6907_v3 }
 0x383   :  { %3938 = vmatprep.subr.mxu0 %v6907_v3  ;;  %3976 = vmatpush3.msra.mxu1 %v3029_v13 }
 0x384   :  { %3939 = vmatpush3.msra.mxu0 %v3636_v1  ;;  %3977 = vmatprep.subr.mxu1 %v6907_v3 }
 0x385   :  { %3940 = vmatprep.subr.mxu0 %v6907_v3  ;;  %3978 = vmatpush3.msra.mxu1 %v3028_v47 }
 0x386   :  { %3941 = vmatpush3.msra.mxu0 %v3635_v4 }
 0x387   :  { %3942 = vmatprep.subr.mxu0 %v6907_v3 }
 0x388   :  { %3943 = vmatpush3.msra.mxu0 %v3634_v48 }
 0x389   :  { %3945 = vmatmul.mubr.f32.vlgmr.msra.gmra.mxu0 %v2581_v11  ;;  %3982 = vmatprep.subr.mxu0 %v6907_v3 }
 0x38a   :  { %4014 = vmatprep.mubr.msk.f32.mxu0 %vm4021_vm1, %v6907_v3  ;;  %3983 = vmatpush3.msra.mxu0 %v3137_v37 }
 0x38b   :  { %3984 = vmatprep.subr.mxu0 %v6907_v3 }
 0x38c   :  { %3985 = vmatpush3.msra.mxu0 %v3136_v39 }
 0x38d   :  { %3986 = vmatprep.subr.mxu0 %v6907_v3 }
 0x38e   :  { %3987 = vmatpush3.msra.mxu0 %v3135_v21 }
 0x38f   :  { %3988 = vmatprep.subr.mxu0 %v6907_v3 }
 0x390   :  { %3989 = vmatpush3.msra.mxu0 %v3134_v59 }
 0x391   :  { %3990 = vmatprep.subr.mxu0 %v6907_v3 }
 0x392   :  { %3991 = vmatpush3.msra.mxu0 %v3133_v12 }
 0x393   :  { %3992 = vmatprep.subr.mxu0 %v6907_v3 }
 0x394   :  { %3993 = vmatpush3.msra.mxu0 %v3132_v50 }
 0x395   :  { %3994 = vmatprep.subr.mxu0 %v6907_v3 }
 0x396   :  { %3995 = vmatpush3.msra.mxu0 %v3131_v5 }
 0x397   :  { %3996 = vmatprep.subr.mxu0 %v6907_v3 }
 0x398   :  { %3997 = vmatpush3.msra.mxu0 %v3130_v6 }
 0x399   :  { %3998 = vmatprep.subr.mxu0 %v6907_v3 }
 0x39a   :  { %3999 = vmatpush3.msra.mxu0 %v3129_v23 }
 0x39b   :  { %4000 = vmatprep.subr.mxu0 %v6907_v3 }
 0x39c   :  { %4001 = vmatpush3.msra.mxu0 %v3128_v33 }
 0x39d   :  { %4002 = vmatprep.subr.mxu0 %v6907_v3 }
 0x39e   :  { %4003 = vmatpush3.msra.mxu0 %v3127_v54 }
 0x39f   :  { %4004 = vmatprep.subr.mxu0 %v6907_v3 }
 0x3a0   :  { %4005 = vmatpush3.msra.mxu0 %v3126_v19 }
 0x3a1   :  { %4006 = vmatprep.subr.mxu0 %v6907_v3 }
 0x3a2   :  { %4007 = vmatpush3.msra.mxu0 %v3125_v35 }
 0x3a3   :  { %4008 = vmatprep.subr.mxu0 %v6907_v3 }
 0x3a4   :  { %4009 = vmatpush3.msra.mxu0 %v3124_v53 }
 0x3a5   :  { %4010 = vmatprep.subr.mxu0 %v6907_v3 }
 0x3a6   :  { %4011 = vmatpush3.msra.mxu0 %v3123_v16 }
 0x3a7   :  { %4012 = vmatprep.subr.mxu0 %v6907_v3 }
 0x3a8   :  { %4013 = vmatpush3.msra.mxu0 %v3122_v31 }
 0x401   :  { %v2751_v36 = vpop.f32.mrf.mxu1 }
 0x403   :  { %v3841_v57 = vpop.f32.mrf.mxu1 }
 0x409   :  { %v2681_v56 = vpop.f32.mrf.mxu0 }
 0x40a   :  { %v2752_v55 = vadd.f32 %v2751_v36, %v2681_v56 }
 0x40b   :  { %v3806_v25 = vpop.f32.mrf.mxu0 }
 0x421   :  { %v2926_v22 = vpop.f32.mrf.mxu1 }
 0x423   :  { %v3911_v18 = vpop.f32.mrf.mxu1 }
 0x429   :  { %v2838_v52 = vpop.f32.mrf.mxu0 }
 0x42a   :  { %v2842_v38 = vadd.f32 %v2838_v52, %v2752_v55 }
 0x42b   :  { %v3876_v7 = vpop.f32.mrf.mxu0 }
 0x42c   :  { %v2930_v46 = vadd.f32 %v2926_v22, %v2842_v38 }
 0x449   :  { %v3014_v20 = vpop.f32.mrf.mxu0 }
 0x44a   :  { %v3018_v34 = vadd.f32 %v3014_v20, %v2930_v46 }
 0x44b   :  { %v3946_v51 = vpop.f32.mrf.mxu0 }
 0x44c   :  { %v3026_v32 = vadd.f32 %v3650_v26, %v3018_v34 }
 0x44e   :  { %v3027_v10 = vmax.f32 %v3026_v32, 0.0 }
 0x450   :  { %3980 = vmatmul.mubr.f32.vlgmr.msra.gmra.mxu1 %v3027_v10 }
 0x510   :  { %v3117_v58 = vpop.f32.mrf.mxu1 }
 0x511   :  { %v3118_v17 = vadd.f32 %v3651_v40, %v3117_v58 }
 0x512   :  { %v3981_v29 = vpop.f32.mrf.mxu1 }
 0x513   :  { %v3121_v24 = vmax.f32 %v3118_v17, 0.0 }
 0x515   :  { %4015 = vmatmul.mubr.f32.vlgmr.msra.gmra.mxu0 %v3121_v24 }
 0x5d5   :  { %v3211_v27 = vpop.f32.mrf.mxu0 }
 0x5d6   :  { %v3212_v3 = vadd.f32 %v3652_v63, %v3211_v27 }
 0x5d7   :  { %v4016_v30 = vpop.f32.mrf.mxu0 }
 0x5d8   :  { %3215 = vst [vmem:[%s6793_s11] sm:$0xff] %v3212_v3 }

</bundles_post_ra>
